<compile_context>
chip_gen: v5e
topology: v5e:2x2
jax: 0.10.0
libtpu: 0.0.40
codegen_flags: <defaults>
</compile_context>

<pallas_src>
import jax
import jax.numpy as jnp
from jax.experimental import pallas as pl
from jax.experimental.pallas import tpu as pltpu


LANE = 128                       # lane width; all last dims are multiples of this
VMEM_LIMIT = 32 * 1024 * 1024    # conservative scoped-VMEM budget (safe on v5e/v6e/v7x)


# ------------------------------ tile selection -------------------------------------
def _row_tile(n):
    """Node/dst-row tile: keep >=2 blocks on the 'parallel' axis when possible
    (v7x dual-TC); cap at 256 rows so bigger graphs still pipeline."""
    if n <= 128:
        return n
    if n > 256 and n % 256 == 0:
        return 256
    half = n // 2
    if n % 2 == 0 and half % 8 == 0:
        return half
    return n


def _red_tile(n):
    """Src (reduction) tile: full N up to 512 -> single K step, H_init resident."""
    if n <= 512:
        return n
    return 512 if n % 512 == 0 else n


def _edge_tile(e):
    """Edge-row tile for the score MLP: >=2 blocks when possible, cap at 256."""
    if e <= 128:
        return e
    if e > 256 and e % 256 == 0:
        return 256
    half = e // 2
    if e % 2 == 0 and half % 8 == 0:
        return half
    return e


# ------------------------------ kernels ---------------------------------------------
def _transform_kernel(x_ref, wcat_ref, b_ref, hinit_ref, hroot_ref):
    """T = x @ [W_init | W_root] (fused); init half -> bf16, root half + bias -> f32."""
    t = jnp.dot(x_ref[...], wcat_ref[...], preferred_element_type=jnp.float32)
    c = hinit_ref.shape[-1]
    hinit_ref[...] = t[:, :c].astype(hinit_ref.dtype)
    hroot_ref[...] = t[:, c:] + b_ref[...]


def _prop_xform_kernel(a_ref, hinit_ref, hroot_ref, wcat_ref, b_ref,
                       hinit2_ref, hroot2_ref, acc_ref):
    """h1 = ReLU(A @ H_init + H_root); then (fused epilogue) h1 @ [W_init2|W_root2]."""
    k = pl.program_id(1)

    @pl.when(k == 0)
    def _():
        acc_ref[...] = jnp.zeros_like(acc_ref)

    acc_ref[...] += jnp.dot(a_ref[...], hinit_ref[...],
                            preferred_element_type=jnp.float32)

    @pl.when(k == pl.num_programs(1) - 1)
    def _():
        h1 = jnp.maximum(acc_ref[...] + hroot_ref[...], 0.0)
        t = jnp.dot(h1.astype(wcat_ref.dtype), wcat_ref[...],
                    preferred_element_type=jnp.float32)
        c = hinit2_ref.shape[-1]
        hinit2_ref[...] = t[:, :c].astype(hinit2_ref.dtype)
        hroot2_ref[...] = t[:, c:] + b_ref[...]


def _propagate_kernel(a_ref, hinit_ref, hroot_ref, out_ref, acc_ref):
    """out = ReLU(A @ H_init + H_root); src reduction over grid axis 1 (last)."""
    k = pl.program_id(1)

    @pl.when(k == 0)
    def _():
        acc_ref[...] = jnp.zeros_like(acc_ref)

    acc_ref[...] += jnp.dot(a_ref[...], hinit_ref[...],
                            preferred_element_type=jnp.float32)

    @pl.when(k == pl.num_programs(1) - 1)
    def _():
        out_ref[...] = jnp.maximum(acc_ref[...] + hroot_ref[...], 0.0
                                   ).astype(out_ref.dtype)


def _edge_mlp_kernel(xs_ref, xd_ref, w1a_ref, w1b_ref, b1_ref, w2t_ref, b2_ref,
                     out_ref):
    """score = ReLU(xs @ W1_top + xd @ W1_bot + b1) . w2 + b2.

    The (te, 4C) f32 hidden is processed in 128-lane column slabs so live vector
    state stays ~32 vregs; the final score is a lane-1 column (tiny writeback)."""
    te = xs_ref.shape[0]
    c4 = w1a_ref.shape[1]

    def slab(j, acc):
        sl = pl.ds(pl.multiple_of(j * LANE, LANE), LANE)
        h = jnp.dot(xs_ref[...], w1a_ref[:, sl], preferred_element_type=jnp.float32)
        h = h + jnp.dot(xd_ref[...], w1b_ref[:, sl],
                        preferred_element_type=jnp.float32)
        h = jnp.maximum(h + b1_ref[:, sl], 0.0)
        return acc + jnp.sum(h * w2t_ref[:, sl], axis=1, keepdims=True)

    acc = jax.lax.fori_loop(0, c4 // LANE, slab, jnp.zeros((te, 1), jnp.float32))
    out_ref[...] = acc + b2_ref[...]


# ------------------------------ pallas_call wrappers --------------------------------
def _arma_transform(x_bf16, wcat_bf16, bias_f32, *, out_channels):
    n, f = x_bf16.shape
    c2 = wcat_bf16.shape[1]
    tm = _row_tile(n)
    assert n % tm == 0 and c2 == 2 * out_channels and out_channels % LANE == 0
    cost = pl.CostEstimate(
        flops=2 * n * f * c2, transcendentals=0,
        bytes_accessed=x_bf16.size * 2 + wcat_bf16.size * 2 + n * out_channels * 6)
    return pl.pallas_call(
        _transform_kernel,
        out_shape=(jax.ShapeDtypeStruct((n, out_channels), jnp.bfloat16),
                   jax.ShapeDtypeStruct((n, out_channels), jnp.float32)),
        grid_spec=pltpu.PrefetchScalarGridSpec(
            num_scalar_prefetch=0,
            grid=(n // tm,),
            in_specs=[
                pl.BlockSpec((tm, f), lambda i: (i, 0)),
                pl.BlockSpec((f, c2), lambda i: (0, 0)),
                pl.BlockSpec((1, out_channels), lambda i: (0, 0)),
            ],
            out_specs=[
                pl.BlockSpec((tm, out_channels), lambda i: (i, 0)),
                pl.BlockSpec((tm, out_channels), lambda i: (i, 0)),
            ]),
        compiler_params=pltpu.CompilerParams(
            dimension_semantics=("parallel",), vmem_limit_bytes=VMEM_LIMIT),
        cost_estimate=cost,
    )(x_bf16, wcat_bf16, bias_f32)


def _arma_propagate_transform(a_bf16, hinit_bf16, hroot_f32, wcat_bf16, bias_f32,
                              *, out_channels):
    """Fused: h1 = ReLU(A @ H_init + H_root); return h1 @ [W_init2|W_root2] halves."""
    n = a_bf16.shape[0]
    c = hinit_bf16.shape[1]
    c2 = wcat_bf16.shape[1]
    tm, tk = _row_tile(n), _red_tile(n)
    assert n % tm == 0 and n % tk == 0 and c % LANE == 0
    assert c2 == 2 * out_channels and out_channels % LANE == 0
    cost = pl.CostEstimate(
        flops=2 * n * n * c + 2 * n * c * c2, transcendentals=0,
        bytes_accessed=(a_bf16.size * 2 + hinit_bf16.size * 2 + hroot_f32.size * 4
                        + wcat_bf16.size * 2 + n * out_channels * 6))
    return pl.pallas_call(
        _prop_xform_kernel,
        out_shape=(jax.ShapeDtypeStruct((n, out_channels), jnp.bfloat16),
                   jax.ShapeDtypeStruct((n, out_channels), jnp.float32)),
        grid_spec=pltpu.PrefetchScalarGridSpec(
            num_scalar_prefetch=0,
            grid=(n // tm, n // tk),
            in_specs=[
                pl.BlockSpec((tm, tk), lambda i, k: (i, k)),
                pl.BlockSpec((tk, c), lambda i, k: (k, 0)),
                pl.BlockSpec((tm, c), lambda i, k: (i, 0)),
                pl.BlockSpec((c, c2), lambda i, k: (0, 0)),
                pl.BlockSpec((1, out_channels), lambda i, k: (0, 0)),
            ],
            out_specs=[
                pl.BlockSpec((tm, out_channels), lambda i, k: (i, 0)),
                pl.BlockSpec((tm, out_channels), lambda i, k: (i, 0)),
            ],
            scratch_shapes=[pltpu.VMEM((tm, c), jnp.float32)]),
        compiler_params=pltpu.CompilerParams(
            dimension_semantics=("parallel", "arbitrary"),
            vmem_limit_bytes=VMEM_LIMIT),
        cost_estimate=cost,
    )(a_bf16, hinit_bf16, hroot_f32, wcat_bf16, bias_f32)


def _arma_propagate(a_bf16, hinit_bf16, hroot_f32, *, out_dtype):
    n = a_bf16.shape[0]
    c = hinit_bf16.shape[1]
    tm, tk = _row_tile(n), _red_tile(n)
    assert n % tm == 0 and n % tk == 0 and c % LANE == 0
    cost = pl.CostEstimate(
        flops=2 * n * n * c, transcendentals=0,
        bytes_accessed=(a_bf16.size * 2 + hinit_bf16.size * 2 + hroot_f32.size * 4
                        + n * c * 4))
    return pl.pallas_call(
        _propagate_kernel,
        out_shape=jax.ShapeDtypeStruct((n, c), out_dtype),
        grid_spec=pltpu.PrefetchScalarGridSpec(
            num_scalar_prefetch=0,
            grid=(n // tm, n // tk),
            in_specs=[
                pl.BlockSpec((tm, tk), lambda i, k: (i, k)),
                pl.BlockSpec((tk, c), lambda i, k: (k, 0)),
                pl.BlockSpec((tm, c), lambda i, k: (i, 0)),
            ],
            out_specs=pl.BlockSpec((tm, c), lambda i, k: (i, 0)),
            scratch_shapes=[pltpu.VMEM((tm, c), jnp.float32)]),
        compiler_params=pltpu.CompilerParams(
            dimension_semantics=("parallel", "arbitrary"),
            vmem_limit_bytes=VMEM_LIMIT),
        cost_estimate=cost,
    )(a_bf16, hinit_bf16, hroot_f32)


def _edge_mlp(xs_bf16, xd_bf16, w1a_bf16, w1b_bf16, b1_f32, w2t_f32, b2_f32):
    e, c = xs_bf16.shape
    c4 = w1a_bf16.shape[1]
    te = _edge_tile(e)
    assert e % te == 0 and c % LANE == 0 and c4 % LANE == 0
    cost = pl.CostEstimate(
        flops=4 * e * c * c4 + 3 * e * c4, transcendentals=0,
        bytes_accessed=(xs_bf16.size * 2 + xd_bf16.size * 2
                        + (w1a_bf16.size + w1b_bf16.size) * 2 + e * 4))
    out = pl.pallas_call(
        _edge_mlp_kernel,
        out_shape=jax.ShapeDtypeStruct((e, 1), jnp.float32),
        grid_spec=pltpu.PrefetchScalarGridSpec(
            num_scalar_prefetch=0,
            grid=(e // te,),
            in_specs=[
                pl.BlockSpec((te, c), lambda i: (i, 0)),
                pl.BlockSpec((te, c), lambda i: (i, 0)),
                pl.BlockSpec((c, c4), lambda i: (0, 0)),
                pl.BlockSpec((c, c4), lambda i: (0, 0)),
                pl.BlockSpec((1, c4), lambda i: (0, 0)),
                pl.BlockSpec((1, c4), lambda i: (0, 0)),
                pl.BlockSpec((1, 1), lambda i: (0, 0)),
            ],
            out_specs=pl.BlockSpec((te, 1), lambda i: (i, 0))),
        compiler_params=pltpu.CompilerParams(
            dimension_semantics=("parallel",), vmem_limit_bytes=VMEM_LIMIT),
        cost_estimate=cost,
    )(xs_bf16, xd_bf16, w1a_bf16, w1b_bf16, b1_f32, w2t_f32, b2_f32)
    return out.reshape(-1)


# ------------------------------ full forward ----------------------------------------
def causal_attnet_forward(x, edge_index, edge_attr, batch, params):
    """CausalAttNet.forward up to (node representation x2, edge_score).

    # TODO(synk): split_graph + relabel (per-graph top-k edge partition via host-side
    # numpy argpartition producing ragged/dynamic shapes) have no static-shape Pallas
    # equivalent and are omitted; they consume only `edge_score`, `x2` and `batch`.
    """
    f32, bf16 = jnp.float32, jnp.bfloat16
    n = x.shape[0]
    del batch  # only used by split_graph / relabel (see TODO above)

    # glue: gcn_norm(edge_index, edge_weight, add_self_loops=False) -> dense A_hat
    # TODO(synk): replace the dense O(N^2) adjacency with a CSR / scalar-prefetch
    # sparse propagate for large graphs.
    edge_weight = edge_attr.reshape(-1).astype(f32)
    src, dst = edge_index[0], edge_index[1]
    deg = jnp.zeros((n,), f32).at[dst].add(edge_weight)
    dinv = jnp.where(deg > 0, jax.lax.rsqrt(jnp.maximum(deg, 1e-30)), 0.0)
    norm = dinv[src] * edge_weight * dinv[dst]
    a_hat = jnp.zeros((n, n), f32).at[dst, src].add(norm).astype(bf16)

    c = params["b1"].shape[-1]

    # K1: ARMAConv layer-1 transform  (outer F.relu is idempotent with internal ReLU)
    wcat1 = jnp.concatenate([params["w_init1"], params["w_root1"]], 1).astype(bf16)
    h_init1, h_root1 = _arma_transform(x.astype(bf16), wcat1, params["b1"],
                                       out_channels=c)

    # K2: layer-1 propagate fused with layer-2 transform (h1 never hits HBM)
    wcat2 = jnp.concatenate([params["w_init2"], params["w_root2"]], 1).astype(bf16)
    h_init2, h_root2 = _arma_propagate_transform(a_hat, h_init1, h_root1, wcat2,
                                                 params["b2"], out_channels=c)

    # K3: layer-2 propagate -> x2
    x2 = _arma_propagate(a_hat, h_init2, h_root2, out_dtype=f32)

    # K4: edge-score MLP.  W1 is split into src/dst halves so the [E, 2C] concat is
    # never materialized; the row gathers stay in XLA glue.
    # TODO(synk): fuse the x2[src]/x2[dst] gathers into the MLP kernel (scalar-
    # prefetched indices + fully VMEM-resident x2) to remove the remaining glue.
    xs = jnp.take(x2, src, axis=0).astype(bf16)
    xd = jnp.take(x2, dst, axis=0).astype(bf16)
    w1 = params["w_mlp1"]
    w1a = w1[:c].astype(bf16)        # multiplies x2[row]  (row = edge_index[0])
    w1b = w1[c:].astype(bf16)        # multiplies x2[col]  (col = edge_index[1])
    w2t = params["w_mlp2"].reshape(1, -1).astype(f32)
    edge_score = _edge_mlp(xs, xd, w1a, w1b, params["b_mlp1"], w2t, params["b_mlp2"])

    return x2, edge_score


def init_params(key, in_channels, channels):
    ks = jax.random.split(key, 8)
    s, f32 = 0.1, jnp.float32
    return {
        # ARMAConv(768, C): W_init, W_root, bias
        "w_init1": s * jax.random.normal(ks[0], (in_channels, channels), f32),
        "w_root1": s * jax.random.normal(ks[1], (in_channels, channels), f32),
        "b1": jnp.zeros((1, channels), f32),
        # ARMAConv(C, C)
        "w_init2": s * jax.random.normal(ks[2], (channels, channels), f32),
        "w_root2": s * jax.random.normal(ks[3], (channels, channels), f32),
        "b2": jnp.zeros((1, channels), f32),
        # edge MLP: Linear(2C, 4C) -> ReLU -> Linear(4C, 1)
        "w_mlp1": s * jax.random.normal(ks[4], (2 * channels, 4 * channels), f32),
        "b_mlp1": s * jax.random.normal(ks[5], (1, 4 * channels), f32),
        "w_mlp2": s * jax.random.normal(ks[6], (4 * channels, 1), f32),
        "b_mlp2": s * jax.random.normal(ks[7], (1, 1), f32),
    }


if __name__ == "__main__":
    key = jax.random.PRNGKey(0)
    k_x, k_ei, k_ea, k_p = jax.random.split(key, 4)

    in_channels = 768      # fixed by the module: ARMAConv(in_channels=768, ...)
    channels = 128         # args.channels, chosen lane-dense (multiple of 128)
    nodes_per_graph, num_graphs = 128, 2
    n = nodes_per_graph * num_graphs          # 256 nodes -> row tiles of 128 (2 blocks)
    edges_per_graph = 256
    e = edges_per_graph * num_graphs          # 512 edges -> edge tiles of 256 (2 blocks)

    x = jax.random.normal(k_x, (n, in_channels), jnp.float32)

    # deterministic intra-graph random edges
    eks = jax.random.split(k_ei, num_graphs)
    parts = []
    for g in range(num_graphs):
        base = g * nodes_per_graph
        parts.append(base + jax.random.randint(
            eks[g], (2, edges_per_graph), 0, nodes_per_graph, dtype=jnp.int32))
    edge_index = jnp.concatenate(parts, axis=1)
    edge_attr = jax.random.uniform(k_ea, (e, 1), jnp.float32, 0.1, 1.0)
    batch = jnp.repeat(jnp.arange(num_graphs, dtype=jnp.int32), nodes_per_graph)

    params = init_params(k_p, in_channels, channels)

    fwd = jax.jit(causal_attnet_forward)
    x2, edge_score = fwd(x, edge_index, edge_attr, batch, params)
    jax.block_until_ready((x2, edge_score))

    assert x2.shape == (n, channels)
    assert edge_score.shape == (e,)
    assert bool(jnp.all(jnp.isfinite(x2))) and bool(jnp.all(jnp.isfinite(edge_score)))
    print("KERNEL_OK")
</pallas_src>

<mosaic_0001>
module attributes {stable_mosaic.version = 11 : i64} {
  func.func @_transform_kernel(%arg0: i32, %arg1: memref<128x768xbf16, #tpu.memory_space<vmem>>, %arg2: memref<768x256xbf16, #tpu.memory_space<vmem>>, %arg3: memref<1x128xf32, #tpu.memory_space<vmem>>, %arg4: memref<128x128xbf16, #tpu.memory_space<vmem>>, %arg5: memref<128x128xf32, #tpu.memory_space<vmem>>) attributes {dimension_semantics = [#tpu.dimension_semantics<parallel>], iteration_bounds = array<i64: 2>, scalar_prefetch = 0 : i64, scratch_operands = 0 : i64, tpu.core_type = #tpu.core_type<tc>, window_params = [{transform_indices = @transform_0, window_bounds = array<i64: 128, 768>}, {pipeline_mode = #tpu.pipeline_mode<synchronous>, transform_indices = @transform_1, window_bounds = array<i64: 768, 256>}, {pipeline_mode = #tpu.pipeline_mode<synchronous>, transform_indices = @transform_2, window_bounds = array<i64: 1, 128>}, {transform_indices = @transform_3, window_bounds = array<i64: 128, 128>}, {transform_indices = @transform_4, window_bounds = array<i64: 128, 128>}]} {
    %c0 = arith.constant 0 : index
    %c0_0 = arith.constant 0 : index
    %0 = vector.load %arg1[%c0, %c0_0] : memref<128x768xbf16, #tpu.memory_space<vmem>>, vector<128x768xbf16>
    %c0_1 = arith.constant 0 : index
    %c0_2 = arith.constant 0 : index
    %1 = vector.load %arg2[%c0_1, %c0_2] : memref<768x256xbf16, #tpu.memory_space<vmem>>, vector<768x256xbf16>
    %cst = arith.constant dense<0.000000e+00> : vector<128x256xf32>
    %2 = tpu.matmul %0, %1, %cst {dimension_numbers = #tpu.dot_dimension_numbers<[1], [0], [0], [1], [0, 0, 1, 1], [], []>} : vector<128x768xbf16>, vector<768x256xbf16>, vector<128x256xf32> -> vector<128x256xf32>
    %3 = vector.extract_strided_slice %2 {offsets = [0, 0], sizes = [128, 128], strides = [1, 1]} : vector<128x256xf32> to vector<128x128xf32>
    %4 = arith.truncf %3 : vector<128x128xf32> to vector<128x128xbf16>
    %c0_3 = arith.constant 0 : index
    %c0_4 = arith.constant 0 : index
    %5 = vector.load %arg4[%c0_3, %c0_4] : memref<128x128xbf16, #tpu.memory_space<vmem>>, vector<128x128xbf16>
    tpu.vector_store %arg4[%c0_3, %c0_4], %4 {strides = array<i32>} : memref<128x128xbf16, #tpu.memory_space<vmem>>, vector<128x128xbf16>,
    %6 = vector.extract_strided_slice %2 {offsets = [0, 128], sizes = [128, 128], strides = [1, 1]} : vector<128x256xf32> to vector<128x128xf32>
    %c0_5 = arith.constant 0 : index
    %c0_6 = arith.constant 0 : index
    %7 = vector.load %arg3[%c0_5, %c0_6] : memref<1x128xf32, #tpu.memory_space<vmem>>, vector<1x128xf32>
    %8 = vector.broadcast %7 : vector<1x128xf32> to vector<128x128xf32>
    %9 = arith.addf %6, %8 : vector<128x128xf32>
    %c0_7 = arith.constant 0 : index
    %c0_8 = arith.constant 0 : index
    %10 = vector.load %arg5[%c0_7, %c0_8] : memref<128x128xf32, #tpu.memory_space<vmem>>, vector<128x128xf32>
    tpu.vector_store %arg5[%c0_7, %c0_8], %9 {strides = array<i32>} : memref<128x128xf32, #tpu.memory_space<vmem>>, vector<128x128xf32>,
    return
  }
  func.func @transform_0(%arg0: i32) -> (i32, i32) {
    %c0_i32 = arith.constant 0 : i32
    %c0_i32_0 = arith.constant 0 : i32
    return %arg0, %c0_i32 : i32, i32
  }
  func.func @transform_1(%arg0: i32) -> (i32, i32) {
    %c0_i32 = arith.constant 0 : i32
    %c0_i32_0 = arith.constant 0 : i32
    %c0_i32_1 = arith.constant 0 : i32
    return %c0_i32, %c0_i32_0 : i32, i32
  }
  func.func @transform_2(%arg0: i32) -> (i32, i32) {
    %c0_i32 = arith.constant 0 : i32
    %c0_i32_0 = arith.constant 0 : i32
    %c0_i32_1 = arith.constant 0 : i32
    return %c0_i32, %c0_i32_0 : i32, i32
  }
  func.func @transform_3(%arg0: i32) -> (i32, i32) {
    %c0_i32 = arith.constant 0 : i32
    %c0_i32_0 = arith.constant 0 : i32
    return %arg0, %c0_i32 : i32, i32
  }
  func.func @transform_4(%arg0: i32) -> (i32, i32) {
    %c0_i32 = arith.constant 0 : i32
    %c0_i32_0 = arith.constant 0 : i32
    return %arg0, %c0_i32 : i32, i32
  }
}

module attributes {stable_mosaic.version = 11 : i64} {
  func.func @_propagate_kernel(%arg0: i32, %arg1: i32, %arg2: memref<128x256xbf16, #tpu.memory_space<vmem>>, %arg3: memref<256x128xbf16, #tpu.memory_space<vmem>>, %arg4: memref<128x128xf32, #tpu.memory_space<vmem>>, %arg5: memref<128x128xf32, #tpu.memory_space<vmem>>, %arg6: memref<128x128xf32, #tpu.memory_space<vmem>>) attributes {dimension_semantics = [#tpu.dimension_semantics<parallel>, #tpu.dimension_semantics<arbitrary>], iteration_bounds = array<i64: 2, 1>, scalar_prefetch = 0 : i64, scratch_operands = 1 : i64, tpu.core_type = #tpu.core_type<tc>, window_params = [{transform_indices = @transform_0, window_bounds = array<i64: 128, 256>}, {transform_indices = @transform_1, window_bounds = array<i64: 256, 128>}, {transform_indices = @transform_2, window_bounds = array<i64: 128, 128>}, {transform_indices = @transform_3, window_bounds = array<i64: 128, 128>}]} {
    %c0_i32 = arith.constant 0 : i32
    %0 = arith.cmpi eq, %arg1, %c0_i32 : i32
    %1 = arith.extui %0 : i1 to i32
    %c0_i32_0 = arith.constant 0 : i32
    %2 = arith.cmpi ne, %1, %c0_i32_0 : i32
    scf.if %2 {
      %cst_10 = arith.constant 0.000000e+00 : f32
      %12 = vector.broadcast %cst_10 : f32 to vector<128x128xf32>
      %c0_11 = arith.constant 0 : index
      %c0_12 = arith.constant 0 : index
      %13 = vector.load %arg6[%c0_11, %c0_12] : memref<128x128xf32, #tpu.memory_space<vmem>>, vector<128x128xf32>
      tpu.vector_store %arg6[%c0_11, %c0_12], %12 {strides = array<i32>} : memref<128x128xf32, #tpu.memory_space<vmem>>, vector<128x128xf32>,
    } else {
    }
    %c0 = arith.constant 0 : index
    %c0_1 = arith.constant 0 : index
    %3 = vector.load %arg6[%c0, %c0_1] : memref<128x128xf32, #tpu.memory_space<vmem>>, vector<128x128xf32>
    %c0_2 = arith.constant 0 : index
    %c0_3 = arith.constant 0 : index
    %4 = vector.load %arg2[%c0_2, %c0_3] : memref<128x256xbf16, #tpu.memory_space<vmem>>, vector<128x256xbf16>
    %c0_4 = arith.constant 0 : index
    %c0_5 = arith.constant 0 : index
    %5 = vector.load %arg3[%c0_4, %c0_5] : memref<256x128xbf16, #tpu.memory_space<vmem>>, vector<256x128xbf16>
    %cst = arith.constant dense<0.000000e+00> : vector<128x128xf32>
    %6 = tpu.matmul %4, %5, %cst {dimension_numbers = #tpu.dot_dimension_numbers<[1], [0], [0], [1], [0, 0, 1, 1], [], []>} : vector<128x256xbf16>, vector<256x128xbf16>, vector<128x128xf32> -> vector<128x128xf32>
    %7 = arith.addf %3, %6 : vector<128x128xf32>
    %c0_6 = arith.constant 0 : index
    %c0_7 = arith.constant 0 : index
    %8 = vector.load %arg6[%c0_6, %c0_7] : memref<128x128xf32, #tpu.memory_space<vmem>>, vector<128x128xf32>
    tpu.vector_store %arg6[%c0_6, %c0_7], %7 {strides = array<i32>} : memref<128x128xf32, #tpu.memory_space<vmem>>, vector<128x128xf32>,
    %c0_i32_8 = arith.constant 0 : i32
    %9 = arith.cmpi eq, %arg1, %c0_i32_8 : i32
    %10 = arith.extui %9 : i1 to i32
    %c0_i32_9 = arith.constant 0 : i32
    %11 = arith.cmpi ne, %10, %c0_i32_9 : i32
    scf.if %11 {
      %c0_10 = arith.constant 0 : index
      %c0_11 = arith.constant 0 : index
      %12 = vector.load %arg6[%c0_10, %c0_11] : memref<128x128xf32, #tpu.memory_space<vmem>>, vector<128x128xf32>
      %c0_12 = arith.constant 0 : index
      %c0_13 = arith.constant 0 : index
      %13 = vector.load %arg4[%c0_12, %c0_13] : memref<128x128xf32, #tpu.memory_space<vmem>>, vector<128x128xf32>
      %14 = arith.addf %12, %13 : vector<128x128xf32>
      %cst_14 = arith.constant 0.000000e+00 : f32
      %15 = vector.broadcast %cst_14 : f32 to vector<128x128xf32>
      %16 = arith.maximumf %14, %15 : vector<128x128xf32>
      %c0_15 = arith.constant 0 : index
      %c0_16 = arith.constant 0 : index
      %17 = vector.load %arg5[%c0_15, %c0_16] : memref<128x128xf32, #tpu.memory_space<vmem>>, vector<128x128xf32>
      tpu.vector_store %arg5[%c0_15, %c0_16], %16 {strides = array<i32>} : memref<128x128xf32, #tpu.memory_space<vmem>>, vector<128x128xf32>,
    } else {
    }
    return
  }
  func.func @transform_0(%arg0: i32, %arg1: i32) -> (i32, i32) {
    %c0_i32 = arith.constant 0 : i32
    return %arg0, %arg1 : i32, i32
  }
  func.func @transform_1(%arg0: i32, %arg1: i32) -> (i32, i32) {
    %c0_i32 = arith.constant 0 : i32
    %c0_i32_0 = arith.constant 0 : i32
    return %arg1, %c0_i32 : i32, i32
  }
  func.func @transform_2(%arg0: i32, %arg1: i32) -> (i32, i32) {
    %c0_i32 = arith.constant 0 : i32
    %c0_i32_0 = arith.constant 0 : i32
    return %arg0, %c0_i32 : i32, i32
  }
  func.func @transform_3(%arg0: i32, %arg1: i32) -> (i32, i32) {
    %c0_i32 = arith.constant 0 : i32
    %c0_i32_0 = arith.constant 0 : i32
    return %arg0, %c0_i32 : i32, i32
  }
}

module attributes {stable_mosaic.version = 11 : i64} {
  func.func @_prop_xform_kernel(%arg0: i32, %arg1: i32, %arg2: memref<128x256xbf16, #tpu.memory_space<vmem>>, %arg3: memref<256x128xbf16, #tpu.memory_space<vmem>>, %arg4: memref<128x128xf32, #tpu.memory_space<vmem>>, %arg5: memref<128x256xbf16, #tpu.memory_space<vmem>>, %arg6: memref<1x128xf32, #tpu.memory_space<vmem>>, %arg7: memref<128x128xbf16, #tpu.memory_space<vmem>>, %arg8: memref<128x128xf32, #tpu.memory_space<vmem>>, %arg9: memref<128x128xf32, #tpu.memory_space<vmem>>) attributes {dimension_semantics = [#tpu.dimension_semantics<parallel>, #tpu.dimension_semantics<arbitrary>], iteration_bounds = array<i64: 2, 1>, scalar_prefetch = 0 : i64, scratch_operands = 1 : i64, tpu.core_type = #tpu.core_type<tc>, window_params = [{transform_indices = @transform_0, window_bounds = array<i64: 128, 256>}, {transform_indices = @transform_1, window_bounds = array<i64: 256, 128>}, {transform_indices = @transform_2, window_bounds = array<i64: 128, 128>}, {pipeline_mode = #tpu.pipeline_mode<synchronous>, transform_indices = @transform_3, window_bounds = array<i64: 128, 256>}, {pipeline_mode = #tpu.pipeline_mode<synchronous>, transform_indices = @transform_4, window_bounds = array<i64: 1, 128>}, {transform_indices = @transform_5, window_bounds = array<i64: 128, 128>}, {transform_indices = @transform_6, window_bounds = array<i64: 128, 128>}]} {
    %c0_i32 = arith.constant 0 : i32
    %0 = arith.cmpi eq, %arg1, %c0_i32 : i32
    %1 = arith.extui %0 : i1 to i32
    %c0_i32_0 = arith.constant 0 : i32
    %2 = arith.cmpi ne, %1, %c0_i32_0 : i32
    scf.if %2 {
      %cst_10 = arith.constant 0.000000e+00 : f32
      %12 = vector.broadcast %cst_10 : f32 to vector<128x128xf32>
      %c0_11 = arith.constant 0 : index
      %c0_12 = arith.constant 0 : index
      %13 = vector.load %arg9[%c0_11, %c0_12] : memref<128x128xf32, #tpu.memory_space<vmem>>, vector<128x128xf32>
      tpu.vector_store %arg9[%c0_11, %c0_12], %12 {strides = array<i32>} : memref<128x128xf32, #tpu.memory_space<vmem>>, vector<128x128xf32>,
    } else {
    }
    %c0 = arith.constant 0 : index
    %c0_1 = arith.constant 0 : index
    %3 = vector.load %arg9[%c0, %c0_1] : memref<128x128xf32, #tpu.memory_space<vmem>>, vector<128x128xf32>
    %c0_2 = arith.constant 0 : index
    %c0_3 = arith.constant 0 : index
    %4 = vector.load %arg2[%c0_2, %c0_3] : memref<128x256xbf16, #tpu.memory_space<vmem>>, vector<128x256xbf16>
    %c0_4 = arith.constant 0 : index
    %c0_5 = arith.constant 0 : index
    %5 = vector.load %arg3[%c0_4, %c0_5] : memref<256x128xbf16, #tpu.memory_space<vmem>>, vector<256x128xbf16>
    %cst = arith.constant dense<0.000000e+00> : vector<128x128xf32>
    %6 = tpu.matmul %4, %5, %cst {dimension_numbers = #tpu.dot_dimension_numbers<[1], [0], [0], [1], [0, 0, 1, 1], [], []>} : vector<128x256xbf16>, vector<256x128xbf16>, vector<128x128xf32> -> vector<128x128xf32>
    %7 = arith.addf %3, %6 : vector<128x128xf32>
    %c0_6 = arith.constant 0 : index
    %c0_7 = arith.constant 0 : index
    %8 = vector.load %arg9[%c0_6, %c0_7] : memref<128x128xf32, #tpu.memory_space<vmem>>, vector<128x128xf32>
    tpu.vector_store %arg9[%c0_6, %c0_7], %7 {strides = array<i32>} : memref<128x128xf32, #tpu.memory_space<vmem>>, vector<128x128xf32>,
    %c0_i32_8 = arith.constant 0 : i32
    %9 = arith.cmpi eq, %arg1, %c0_i32_8 : i32
    %10 = arith.extui %9 : i1 to i32
    %c0_i32_9 = arith.constant 0 : i32
    %11 = arith.cmpi ne, %10, %c0_i32_9 : i32
    scf.if %11 {
      %c0_10 = arith.constant 0 : index
      %c0_11 = arith.constant 0 : index
      %12 = vector.load %arg9[%c0_10, %c0_11] : memref<128x128xf32, #tpu.memory_space<vmem>>, vector<128x128xf32>
      %c0_12 = arith.constant 0 : index
      %c0_13 = arith.constant 0 : index
      %13 = vector.load %arg4[%c0_12, %c0_13] : memref<128x128xf32, #tpu.memory_space<vmem>>, vector<128x128xf32>
      %14 = arith.addf %12, %13 : vector<128x128xf32>
      %cst_14 = arith.constant 0.000000e+00 : f32
      %15 = vector.broadcast %cst_14 : f32 to vector<128x128xf32>
      %16 = arith.maximumf %14, %15 : vector<128x128xf32>
      %17 = arith.truncf %16 : vector<128x128xf32> to vector<128x128xbf16>
      %c0_15 = arith.constant 0 : index
      %c0_16 = arith.constant 0 : index
      %18 = vector.load %arg5[%c0_15, %c0_16] : memref<128x256xbf16, #tpu.memory_space<vmem>>, vector<128x256xbf16>
      %cst_17 = arith.constant dense<0.000000e+00> : vector<128x256xf32>
      %19 = tpu.matmul %17, %18, %cst_17 {dimension_numbers = #tpu.dot_dimension_numbers<[1], [0], [0], [1], [0, 0, 1, 1], [], []>} : vector<128x128xbf16>, vector<128x256xbf16>, vector<128x256xf32> -> vector<128x256xf32>
      %20 = vector.extract_strided_slice %19 {offsets = [0, 0], sizes = [128, 128], strides = [1, 1]} : vector<128x256xf32> to vector<128x128xf32>
      %21 = arith.truncf %20 : vector<128x128xf32> to vector<128x128xbf16>
      %c0_18 = arith.constant 0 : index
      %c0_19 = arith.constant 0 : index
      %22 = vector.load %arg7[%c0_18, %c0_19] : memref<128x128xbf16, #tpu.memory_space<vmem>>, vector<128x128xbf16>
      tpu.vector_store %arg7[%c0_18, %c0_19], %21 {strides = array<i32>} : memref<128x128xbf16, #tpu.memory_space<vmem>>, vector<128x128xbf16>,
      %23 = vector.extract_strided_slice %19 {offsets = [0, 128], sizes = [128, 128], strides = [1, 1]} : vector<128x256xf32> to vector<128x128xf32>
      %c0_20 = arith.constant 0 : index
      %c0_21 = arith.constant 0 : index
      %24 = vector.load %arg6[%c0_20, %c0_21] : memref<1x128xf32, #tpu.memory_space<vmem>>, vector<1x128xf32>
      %25 = vector.broadcast %24 : vector<1x128xf32> to vector<128x128xf32>
      %26 = arith.addf %23, %25 : vector<128x128xf32>
      %c0_22 = arith.constant 0 : index
      %c0_23 = arith.constant 0 : index
      %27 = vector.load %arg8[%c0_22, %c0_23] : memref<128x128xf32, #tpu.memory_space<vmem>>, vector<128x128xf32>
      tpu.vector_store %arg8[%c0_22, %c0_23], %26 {strides = array<i32>} : memref<128x128xf32, #tpu.memory_space<vmem>>, vector<128x128xf32>,
    } else {
    }
    return
  }
  func.func @transform_0(%arg0: i32, %arg1: i32) -> (i32, i32) {
    %c0_i32 = arith.constant 0 : i32
    return %arg0, %arg1 : i32, i32
  }
  func.func @transform_1(%arg0: i32, %arg1: i32) -> (i32, i32) {
    %c0_i32 = arith.constant 0 : i32
    %c0_i32_0 = arith.constant 0 : i32
    return %arg1, %c0_i32 : i32, i32
  }
  func.func @transform_2(%arg0: i32, %arg1: i32) -> (i32, i32) {
    %c0_i32 = arith.constant 0 : i32
    %c0_i32_0 = arith.constant 0 : i32
    return %arg0, %c0_i32 : i32, i32
  }
  func.func @transform_3(%arg0: i32, %arg1: i32) -> (i32, i32) {
    %c0_i32 = arith.constant 0 : i32
    %c0_i32_0 = arith.constant 0 : i32
    %c0_i32_1 = arith.constant 0 : i32
    return %c0_i32, %c0_i32_0 : i32, i32
  }
  func.func @transform_4(%arg0: i32, %arg1: i32) -> (i32, i32) {
    %c0_i32 = arith.constant 0 : i32
    %c0_i32_0 = arith.constant 0 : i32
    %c0_i32_1 = arith.constant 0 : i32
    return %c0_i32, %c0_i32_0 : i32, i32
  }
  func.func @transform_5(%arg0: i32, %arg1: i32) -> (i32, i32) {
    %c0_i32 = arith.constant 0 : i32
    %c0_i32_0 = arith.constant 0 : i32
    return %arg0, %c0_i32 : i32, i32
  }
  func.func @transform_6(%arg0: i32, %arg1: i32) -> (i32, i32) {
    %c0_i32 = arith.constant 0 : i32
    %c0_i32_0 = arith.constant 0 : i32
    return %arg0, %c0_i32 : i32, i32
  }
}

module attributes {stable_mosaic.version = 11 : i64} {
  func.func @_edge_mlp_kernel(%arg0: i32, %arg1: memref<256x128xbf16, #tpu.memory_space<vmem>>, %arg2: memref<256x128xbf16, #tpu.memory_space<vmem>>, %arg3: memref<128x512xbf16, #tpu.memory_space<vmem>>, %arg4: memref<128x512xbf16, #tpu.memory_space<vmem>>, %arg5: memref<1x512xf32, #tpu.memory_space<vmem>>, %arg6: memref<1x512xf32, #tpu.memory_space<vmem>>, %arg7: memref<1x1xf32, #tpu.memory_space<vmem>>, %arg8: memref<256x1xf32, #tpu.memory_space<vmem>>) attributes {dimension_semantics = [#tpu.dimension_semantics<parallel>], iteration_bounds = array<i64: 2>, scalar_prefetch = 0 : i64, scratch_operands = 0 : i64, tpu.core_type = #tpu.core_type<tc>, window_params = [{transform_indices = @transform_0, window_bounds = array<i64: 256, 128>}, {transform_indices = @transform_1, window_bounds = array<i64: 256, 128>}, {pipeline_mode = #tpu.pipeline_mode<synchronous>, transform_indices = @transform_2, window_bounds = array<i64: 128, 512>}, {pipeline_mode = #tpu.pipeline_mode<synchronous>, transform_indices = @transform_3, window_bounds = array<i64: 128, 512>}, {pipeline_mode = #tpu.pipeline_mode<synchronous>, transform_indices = @transform_4, window_bounds = array<i64: 1, 512>}, {pipeline_mode = #tpu.pipeline_mode<synchronous>, transform_indices = @transform_5, window_bounds = array<i64: 1, 512>}, {pipeline_mode = #tpu.pipeline_mode<synchronous>, transform_indices = @transform_6, window_bounds = array<i64: 1, 1>}, {transform_indices = @transform_7, window_bounds = array<i64: 256, 1>}]} {
    %cst = arith.constant 0.000000e+00 : f32
    %0 = vector.broadcast %cst : f32 to vector<256x1xf32>
    %c0_i32 = arith.constant 0 : i32
    %c4_i32 = arith.constant 4 : i32
    %1 = arith.addi %c0_i32, %c4_i32 : i32
    %c1_i32 = arith.constant 1 : i32
    %2 = scf.for %arg9 = %c0_i32 to %1 step %c1_i32 iter_args(%arg10 = %0) -> (vector<256x1xf32>)  : i32 {
      %c128_i32 = arith.constant 128 : i32
      %7 = arith.muli %arg9, %c128_i32 : i32
      %8 = tpu.assume_multiple %7, 128 : i32
      %c0_4 = arith.constant 0 : index
      %c0_5 = arith.constant 0 : index
      %9 = vector.load %arg1[%c0_4, %c0_5] : memref<256x128xbf16, #tpu.memory_space<vmem>>, vector<256x128xbf16>
      %c0_6 = arith.constant 0 : index
      %10 = arith.index_cast %8 : i32 to index
      %11 = vector.load %arg3[%c0_6, %10] : memref<128x512xbf16, #tpu.memory_space<vmem>>, vector<128x128xbf16>
      %cst_7 = arith.constant dense<0.000000e+00> : vector<256x128xf32>
      %12 = tpu.matmul %9, %11, %cst_7 {dimension_numbers = #tpu.dot_dimension_numbers<[1], [0], [0], [1], [0, 0, 1, 1], [], []>} : vector<256x128xbf16>, vector<128x128xbf16>, vector<256x128xf32> -> vector<256x128xf32>
      %c0_8 = arith.constant 0 : index
      %c0_9 = arith.constant 0 : index
      %13 = vector.load %arg2[%c0_8, %c0_9] : memref<256x128xbf16, #tpu.memory_space<vmem>>, vector<256x128xbf16>
      %c0_10 = arith.constant 0 : index
      %14 = arith.index_cast %8 : i32 to index
      %15 = vector.load %arg4[%c0_10, %14] : memref<128x512xbf16, #tpu.memory_space<vmem>>, vector<128x128xbf16>
      %cst_11 = arith.constant dense<0.000000e+00> : vector<256x128xf32>
      %16 = tpu.matmul %13, %15, %cst_11 {dimension_numbers = #tpu.dot_dimension_numbers<[1], [0], [0], [1], [0, 0, 1, 1], [], []>} : vector<256x128xbf16>, vector<128x128xbf16>, vector<256x128xf32> -> vector<256x128xf32>
      %17 = arith.addf %12, %16 : vector<256x128xf32>
      %c0_12 = arith.constant 0 : index
      %18 = arith.index_cast %8 : i32 to index
      %19 = vector.load %arg5[%c0_12, %18] : memref<1x512xf32, #tpu.memory_space<vmem>>, vector<1x128xf32>
      %20 = vector.broadcast %19 : vector<1x128xf32> to vector<256x128xf32>
      %21 = arith.addf %17, %20 : vector<256x128xf32>
      %cst_13 = arith.constant 0.000000e+00 : f32
      %22 = vector.broadcast %cst_13 : f32 to vector<256x128xf32>
      %23 = arith.maximumf %21, %22 : vector<256x128xf32>
      %c0_14 = arith.constant 0 : index
      %24 = arith.index_cast %8 : i32 to index
      %25 = vector.load %arg6[%c0_14, %24] : memref<1x512xf32, #tpu.memory_space<vmem>>, vector<1x128xf32>
      %26 = vector.broadcast %25 : vector<1x128xf32> to vector<256x128xf32>
      %27 = arith.mulf %23, %26 : vector<256x128xf32>
      %cst_15 = arith.constant dense<0.000000e+00> : vector<256xf32>
      %28 = vector.multi_reduction <add>, %27, %cst_15 [1] : vector<256x128xf32> to vector<256xf32>
      %29 = vector.shape_cast %28 : vector<256xf32> to vector<256x1xf32>
      %30 = arith.addf %arg10, %29 : vector<256x1xf32>
      scf.yield %30 : vector<256x1xf32>
    }
    %c4_i32_0 = arith.constant 4 : i32
    %c0 = arith.constant 0 : index
    %c0_1 = arith.constant 0 : index
    %3 = vector.load %arg7[%c0, %c0_1] : memref<1x1xf32, #tpu.memory_space<vmem>>, vector<1x1xf32>
    %4 = vector.broadcast %3 : vector<1x1xf32> to vector<256x1xf32>
    %5 = arith.addf %2, %4 : vector<256x1xf32>
    %c0_2 = arith.constant 0 : index
    %c0_3 = arith.constant 0 : index
    %6 = vector.load %arg8[%c0_2, %c0_3] : memref<256x1xf32, #tpu.memory_space<vmem>>, vector<256x1xf32>
    tpu.vector_store %arg8[%c0_2, %c0_3], %5 {strides = array<i32>} : memref<256x1xf32, #tpu.memory_space<vmem>>, vector<256x1xf32>,
    return
  }
  func.func @transform_0(%arg0: i32) -> (i32, i32) {
    %c0_i32 = arith.constant 0 : i32
    %c0_i32_0 = arith.constant 0 : i32
    return %arg0, %c0_i32 : i32, i32
  }
  func.func @transform_1(%arg0: i32) -> (i32, i32) {
    %c0_i32 = arith.constant 0 : i32
    %c0_i32_0 = arith.constant 0 : i32
    return %arg0, %c0_i32 : i32, i32
  }
  func.func @transform_2(%arg0: i32) -> (i32, i32) {
    %c0_i32 = arith.constant 0 : i32
    %c0_i32_0 = arith.constant 0 : i32
    %c0_i32_1 = arith.constant 0 : i32
    return %c0_i32, %c0_i32_0 : i32, i32
  }
  func.func @transform_3(%arg0: i32) -> (i32, i32) {
    %c0_i32 = arith.constant 0 : i32
    %c0_i32_0 = arith.constant 0 : i32
    %c0_i32_1 = arith.constant 0 : i32
    return %c0_i32, %c0_i32_0 : i32, i32
  }
  func.func @transform_4(%arg0: i32) -> (i32, i32) {
    %c0_i32 = arith.constant 0 : i32
    %c0_i32_0 = arith.constant 0 : i32
    %c0_i32_1 = arith.constant 0 : i32
    return %c0_i32, %c0_i32_0 : i32, i32
  }
  func.func @transform_5(%arg0: i32) -> (i32, i32) {
    %c0_i32 = arith.constant 0 : i32
    %c0_i32_0 = arith.constant 0 : i32
    %c0_i32_1 = arith.constant 0 : i32
    return %c0_i32, %c0_i32_0 : i32, i32
  }
  func.func @transform_6(%arg0: i32) -> (i32, i32) {
    %c0_i32 = arith.constant 0 : i32
    %c0_i32_0 = arith.constant 0 : i32
    %c0_i32_1 = arith.constant 0 : i32
    return %c0_i32, %c0_i32_0 : i32, i32
  }
  func.func @transform_7(%arg0: i32) -> (i32, i32) {
    %c0_i32 = arith.constant 0 : i32
    %c0_i32_0 = arith.constant 0 : i32
    return %arg0, %c0_i32 : i32, i32
  }
}

</mosaic_0001>

<bundles_post_ra>
// kernel: causal_attnet_forward.6
= control target key start
LH: loop header
LB: loop body
LE: loop exit
PB: predicated region body
PF: predicated region fallthrough
CT: control target
= control target key end

     0   :  { %s1080_s12 = smov 0   ;;  %s1082_s13 = smov 0   ;;  %s1242_s0 = inlined_call_operand.vmem [shape: bf16[256,256], index: 0, kind: input, shape index: {}]   ;;  %s1243_s1 = inlined_call_operand.vmem [shape: bf16[256,128], index: 1, kind: input, shape index: {}]   ;;  %s1244_s2 = inlined_call_operand.vmem [shape: f32[256,128], index: 2, kind: input, shape index: {}]   ;;  %s1245_s3 = inlined_call_operand.vmem [shape: f32[256,128], index: 3, kind: output, shape index: {}]  }
   0x1   :  { %s1084_s14 = smov 0  }
   0x2 LB: > { %s25_s15 = sadd.s32 1, %s1054_s13  ;;  %p825_p0 = scmp.ge.s32.totalorder %s1058_s14, 1  ;;  %s1058_s14 = sphi %s1084_s14, %s13_s14   ;;  %s1054_s13 = sphi %s1082_s13, %s1247_s13   ;;  %s1050_s12 = sphi %s1080_s12, %s1246_s12  }
   0x3   : > { %p27_p1 = scmp.ge.s32.totalorder %s25_s15, 2  ;;  %p180_p2 = scmp.lt.s32.totalorder %s1058_s14, 3 }
   0x5   : > { %s1249_s15 = smov (%p27_p1, %s25_s15), 0  ;;  %p181_p3 = pnand %p825_p0, %p180_p2 }
   0x6   : > { %s826_s28 = sshll.u32 (!%p181_p3), %s1050_s12, 4 }
   0x7   : > { %184 = sbr.rel (%p181_p3) target bundleno = 240 (0xf0), region = 32  ;;  %p221_p4 = scmp.lt.s32.totalorder (!%p181_p3), %s826_s28, 31 }
   0xc   : > { %v987_v0 = vld [vmem:[%s1243_s1 + $0x38] sm:$0xff]  ;;  %v986_v2 = vld [vmem:[%s1243_s1 + $0x30] sm:$0xff]  ;;  %v985_v4 = vld [vmem:[%s1243_s1 + $0x28] sm:$0xff]  ;;  %s1251_s28 = smov (!%p221_p4, %s826_s28), 31 }
   0xd   : > { %v995_v1 = vld [vmem:[%s1243_s1 + $0x78] sm:$0xff]  ;;  %509 = vmatpush.bf16.msra.mxu0 %v987_v0  ;;  %996 = vmatpush.bf16.msra.mxu2 %v987_v0  ;;  %v994_v3 = vld [vmem:[%s1243_s1 + $0x70] sm:$0xff]  ;;  %v993_v5 = vld [vmem:[%s1243_s1 + $0x68] sm:$0xff]  ;;  %s1137_s17 = sshll.u32 %s1251_s28, 3 }
   0xe   : > { %558 = vmatpush.bf16.msra.mxu1 %v995_v1  ;;  %1004 = vmatpush.bf16.msra.mxu3 %v995_v1  ;;  %v984_v6 = vld [vmem:[%s1243_s1 + $0x20] sm:$0xff]  ;;  %v983_v8 = vld [vmem:[%s1243_s1 + $0x18] sm:$0xff]  ;;  %v982_v10 = vld [vmem:[%s1243_s1 + $0x10] sm:$0xff]  ;;  %s1146_s22 = scalar_lea.vmem %s1242_s0, %s1137_s17  ;;  %s1193_s4 = scalar_lea.vmem %s1244_s2, %s1137_s17 }
   0xf   : > { %v992_v7 = vld [vmem:[%s1243_s1 + $0x60] sm:$0xff]  ;;  %v991_v9 = vld [vmem:[%s1243_s1 + $0x58] sm:$0xff]  ;;  %v990_v11 = vld [vmem:[%s1243_s1 + $0x50] sm:$0xff]  ;;  %s1200_s7 = scalar_lea.vmem %s1245_s3, %s1137_s17 }
  0x10   : > { %v981_v12 = vld [vmem:[%s1243_s1 + $0x8] sm:$0xff]  ;;  %v980_v14 = vld [vmem:[%s1243_s1] sm:$0xff]  ;;  %v843_v28 = vld [vmem:[%s1146_s22 + $0x10] sm:$0xf] }
  0x11   : > { %510 = vmatpush.bf16.msra.mxu0 %v986_v2  ;;  %997 = vmatpush.bf16.msra.mxu2 %v986_v2  ;;  %v989_v13 = vld [vmem:[%s1243_s1 + $0x48] sm:$0xff]  ;;  %v988_v15 = vld [vmem:[%s1243_s1 + $0x40] sm:$0xff]  ;;  %v967_v29 = vld [vmem:[%s1146_s22 + $0x14] sm:$0xf0] }
  0x12   : > { %559 = vmatpush.bf16.msra.mxu1 %v994_v3  ;;  %1005 = vmatpush.bf16.msra.mxu3 %v994_v3  ;;  %v835_v16 = vld [vmem:[%s1146_s22] sm:$0xf]  ;;  %v965_v17 = vld [vmem:[%s1146_s22 + $0x4] sm:$0xf0]  ;;  %v964_v20 = vld [vmem:[%s1146_s22 + $0x4] sm:$0xf]  ;;  %v844_v36 = vor.u32 %v967_v29, %v843_v28 }
  0x13   : > { %v867_v18 = vld [vmem:[%s1146_s22 + $0x40] sm:$0xf]  ;;  %v973_v19 = vld [vmem:[%s1146_s22 + $0x44] sm:$0xf0]  ;;  %v837_v21 = vld [vmem:[%s1146_s22 + $0x8] sm:$0xf0]  ;;  %v836_v24 = vor.u32 %v965_v17, %v835_v16 }
  0x14   : > { %v972_v22 = vld [vmem:[%s1146_s22 + $0x44] sm:$0xf]  ;;  %v869_v23 = vld [vmem:[%s1146_s22 + $0x48] sm:$0xf0]  ;;  %v868_v25 = vor.u32 %v973_v19, %v867_v18  ;;  %v840_v26 = vor.u32 %v964_v20, %v837_v21  ;;  %v875_v30 = vld [vmem:[%s1146_s22 + $0x50] sm:$0xf] }
  0x15   : > { %511 = vmatpush.bf16.msra.mxu0 %v985_v4  ;;  %998 = vmatpush.bf16.msra.mxu2 %v985_v4  ;;  %v872_v27 = vor.u32 %v972_v22, %v869_v23  ;;  %v975_v31 = vld [vmem:[%s1146_s22 + $0x54] sm:$0xf0]  ;;  %v966_v32 = vld [vmem:[%s1146_s22 + $0x14] sm:$0xf]  ;;  %v845_v33 = vld [vmem:[%s1146_s22 + $0x18] sm:$0xf0] }
  0x16   : > { %560 = vmatpush.bf16.msra.mxu1 %v993_v5  ;;  %1006 = vmatpush.bf16.msra.mxu3 %v993_v5  ;;  %v974_v34 = vld [vmem:[%s1146_s22 + $0x54] sm:$0xf]  ;;  %v877_v35 = vld [vmem:[%s1146_s22 + $0x58] sm:$0xf0]  ;;  %v876_v37 = vor.u32 %v975_v31, %v875_v30  ;;  %v848_v38 = vor.u32 %v966_v32, %v845_v33  ;;  %v851_v40 = vld [vmem:[%s1146_s22 + $0x20] sm:$0xf] }
  0x17   : > { %v880_v39 = vor.u32 %v974_v34, %v877_v35  ;;  %v969_v41 = vld [vmem:[%s1146_s22 + $0x24] sm:$0xf0]  ;;  %v883_v42 = vld [vmem:[%s1146_s22 + $0x60] sm:$0xf]  ;;  %v968_v44 = vld [vmem:[%s1146_s22 + $0x24] sm:$0xf] }
  0x18   : > { %v977_v43 = vld [vmem:[%s1146_s22 + $0x64] sm:$0xf0]  ;;  %v853_v45 = vld [vmem:[%s1146_s22 + $0x28] sm:$0xf0]  ;;  %v976_v46 = vld [vmem:[%s1146_s22 + $0x64] sm:$0xf]  ;;  %v852_v48 = vor.u32 %v969_v41, %v851_v40 }
  0x19   : > { %512 = vmatpush.bf16.msra.mxu0 %v984_v6  ;;  %999 = vmatpush.bf16.msra.mxu2 %v984_v6  ;;  %v885_v47 = vld [vmem:[%s1146_s22 + $0x68] sm:$0xf0]  ;;  %v884_v49 = vor.u32 %v977_v43, %v883_v42  ;;  %v856_v50 = vor.u32 %v968_v44, %v853_v45  ;;  %v859_v52 = vld [vmem:[%s1146_s22 + $0x30] sm:$0xf]  ;;  %v971_v53 = vld [vmem:[%s1146_s22 + $0x34] sm:$0xf0] }
  0x1a   : > { %561 = vmatpush.bf16.msra.mxu1 %v992_v7  ;;  %1007 = vmatpush.bf16.msra.mxu3 %v992_v7  ;;  %v888_v51 = vor.u32 %v976_v46, %v885_v47  ;;  %v891_v54 = vld [vmem:[%s1146_s22 + $0x70] sm:$0xf]  ;;  %v979_v55 = vld [vmem:[%s1146_s22 + $0x74] sm:$0xf0]  ;;  %v970_v56 = vld [vmem:[%s1146_s22 + $0x34] sm:$0xf]  ;;  %v860_v60 = vor.u32 %v971_v53, %v859_v52 }
  0x1b   : > { %v861_v57 = vld [vmem:[%s1146_s22 + $0x38] sm:$0xf0]  ;;  %v978_v58 = vld [vmem:[%s1146_s22 + $0x74] sm:$0xf]  ;;  %v892_v61 = vor.u32 %v979_v55, %v891_v54  ;;  %v658_v2 = vld [vmem:[%s1193_s4] sm:$0xff] }
  0x1c   : > { %v893_v59 = vld [vmem:[%s1146_s22 + $0x78] sm:$0xf0]  ;;  %v864_v62 = vor.u32 %v970_v56, %v861_v57  ;;  %v667_v20 = vld [vmem:[%s1193_s4 + $0x48] sm:$0xff]  ;;  %v668_v32 = vld [vmem:[%s1193_s4 + $0x50] sm:$0xff] }
  0x1d   : > { %513 = vmatpush.bf16.msra.mxu0 %v983_v8  ;;  %1000 = vmatpush.bf16.msra.mxu2 %v983_v8  ;;  %v896_v63 = vor.u32 %v978_v58, %v893_v59  ;;  %v666_v8 = vld [vmem:[%s1193_s4 + $0x40] sm:$0xff]  ;;  %v669_v44 = vld [vmem:[%s1193_s4 + $0x58] sm:$0xff] }
  0x1e   : > { %562 = vmatpush.bf16.msra.mxu1 %v991_v9  ;;  %1008 = vmatpush.bf16.msra.mxu3 %v991_v9  ;;  %v670_v56 = vld [vmem:[%s1193_s4 + $0x60] sm:$0xff] }
  0x21   : > { %514 = vmatpush.bf16.msra.mxu0 %v982_v10  ;;  %1001 = vmatpush.bf16.msra.mxu2 %v982_v10 }
  0x22   : > { %563 = vmatpush.bf16.msra.mxu1 %v990_v11  ;;  %1009 = vmatpush.bf16.msra.mxu3 %v990_v11 }
  0x25   : > { %515 = vmatpush.bf16.msra.mxu0 %v981_v12  ;;  %1002 = vmatpush.bf16.msra.mxu2 %v981_v12  ;;  %v659_v12 = vld [vmem:[%s1193_s4 + $0x8] sm:$0xff] }
  0x26   : > { %564 = vmatpush.bf16.msra.mxu1 %v989_v13  ;;  %1010 = vmatpush.bf16.msra.mxu3 %v989_v13 }
  0x29   : > { %516 = vmatpush.bf16.msra.mxu0 %v980_v14  ;;  %1003 = vmatpush.bf16.msra.mxu2 %v980_v14 }
  0x2a   : > { %565 = vmatpush.bf16.msra.mxu1 %v988_v15  ;;  %1011 = vmatpush.bf16.msra.mxu3 %v988_v15 }
  0x2c   : > { %517 = vmatmul.bf16.vlgmr.msra.gmra.mxu0 %v836_v24  ;;  %537 = vmatmul.bf16.vlgmr.msra.gmra.mxu2 %v868_v25  ;;  %v660_v24 = vld [vmem:[%s1193_s4 + $0x10] sm:$0xff] }
  0x2d   : > { %566 = vmatmul.bf16.vlgmr.msra.gmra.mxu1 %v840_v26  ;;  %586 = vmatmul.bf16.vlgmr.msra.gmra.mxu3 %v872_v27 }
  0x3c   : > { %522 = vmatmul.bf16.gmra.mxu0 %v844_v36  ;;  %542 = vmatmul.bf16.gmra.mxu2 %v876_v37  ;;  %v661_v36 = vld [vmem:[%s1193_s4 + $0x18] sm:$0xff] }
  0x3d   : > { %571 = vmatmul.bf16.gmra.mxu1 %v848_v38  ;;  %591 = vmatmul.bf16.gmra.mxu3 %v880_v39 }
  0x4c   : > { %527 = vmatmul.bf16.gmra.mxu0 %v852_v48  ;;  %547 = vmatmul.bf16.gmra.mxu2 %v884_v49  ;;  %v662_v48 = vld [vmem:[%s1193_s4 + $0x20] sm:$0xff] }
  0x4d   : > { %576 = vmatmul.bf16.gmra.mxu1 %v856_v50  ;;  %596 = vmatmul.bf16.gmra.mxu3 %v888_v51 }
  0x5c   : > { %532 = vmatmul.bf16.gmra.mxu0 %v860_v60  ;;  %552 = vmatmul.bf16.gmra.mxu2 %v892_v61  ;;  %v663_v60 = vld [vmem:[%s1193_s4 + $0x28] sm:$0xff] }
  0x5d   : > { %581 = vmatmul.bf16.gmra.mxu1 %v864_v62  ;;  %601 = vmatmul.bf16.gmra.mxu3 %v896_v63 }
  0xa9   : > { %v518_v0 = vpop.f32.mrf.mxu0 }
  0xaa   : > { %v567_v1 = vpop.f32.mrf.mxu1 }
  0xab   : > { %v568_v3 = vadd.f32 %v567_v1, %v518_v0 }
  0xad   : > { %v674_v4 = vadd.f32 %v658_v2, %v568_v3 }
  0xaf   : > { %v690_v5 = vmax.f32 %v674_v4, 0.0  ;;  %v538_v6 = vpop.f32.mrf.mxu2  ;;  %v671_v4 = vld [vmem:[%s1193_s4 + $0x68] sm:$0xff] }
  0xb0   : > { %v587_v7 = vpop.f32.mrf.mxu3 }
  0xb1   : > { %706 = vst [vmem:[%s1200_s7] sm:$0xff] %v690_v5  ;;  %v588_v9 = vadd.f32 %v587_v7, %v538_v6  ;;  %v520_v10 = vpop.f32.mrf.mxu0 }
  0xb2   : > { %v569_v11 = vpop.f32.mrf.mxu1 }
  0xb3   : > { %v682_v13 = vadd.f32 %v666_v8, %v588_v9  ;;  %v570_v14 = vadd.f32 %v569_v11, %v520_v10  ;;  %v664_v8 = vld [vmem:[%s1193_s4 + $0x30] sm:$0xff] }
  0xb5   : > { %v698_v15 = vmax.f32 %v682_v13, 0.0  ;;  %v675_v16 = vadd.f32 %v659_v12, %v570_v14 }
  0xb7   : > { %714 = vst [vmem:[%s1200_s7 + $0x40] sm:$0xff] %v698_v15  ;;  %v691_v17 = vmax.f32 %v675_v16, 0.0  ;;  %v540_v18 = vpop.f32.mrf.mxu2  ;;  %v672_v16 = vld [vmem:[%s1193_s4 + $0x70] sm:$0xff] }
  0xb8   : > { %v589_v19 = vpop.f32.mrf.mxu3 }
  0xb9   : > { %707 = vst [vmem:[%s1200_s7 + $0x8] sm:$0xff] %v691_v17  ;;  %v590_v21 = vadd.f32 %v589_v19, %v540_v18  ;;  %v523_v22 = vpop.f32.mrf.mxu0 }
  0xba   : > { %v572_v23 = vpop.f32.mrf.mxu1 }
  0xbb   : > { %v683_v25 = vadd.f32 %v667_v20, %v590_v21  ;;  %v573_v26 = vadd.f32 %v572_v23, %v523_v22  ;;  %v665_v20 = vld [vmem:[%s1193_s4 + $0x38] sm:$0xff] }
  0xbd   : > { %v699_v27 = vmax.f32 %v683_v25, 0.0  ;;  %v676_v28 = vadd.f32 %v660_v24, %v573_v26 }
  0xbf   : > { %715 = vst [vmem:[%s1200_s7 + $0x48] sm:$0xff] %v699_v27  ;;  %v692_v29 = vmax.f32 %v676_v28, 0.0  ;;  %v543_v30 = vpop.f32.mrf.mxu2  ;;  %v673_v28 = vld [vmem:[%s1193_s4 + $0x78] sm:$0xff] }
  0xc0   : > { %v592_v31 = vpop.f32.mrf.mxu3 }
  0xc1   : > { %708 = vst [vmem:[%s1200_s7 + $0x10] sm:$0xff] %v692_v29  ;;  %v593_v33 = vadd.f32 %v592_v31, %v543_v30  ;;  %v525_v34 = vpop.f32.mrf.mxu0 }
  0xc2   : > { %v574_v35 = vpop.f32.mrf.mxu1 }
  0xc3   : > { %v684_v37 = vadd.f32 %v668_v32, %v593_v33  ;;  %v575_v38 = vadd.f32 %v574_v35, %v525_v34 }
  0xc5   : > { %v700_v39 = vmax.f32 %v684_v37, 0.0  ;;  %v677_v40 = vadd.f32 %v661_v36, %v575_v38 }
  0xc7   : > { %716 = vst [vmem:[%s1200_s7 + $0x50] sm:$0xff] %v700_v39  ;;  %v693_v41 = vmax.f32 %v677_v40, 0.0  ;;  %v545_v42 = vpop.f32.mrf.mxu2 }
  0xc8   : > { %v594_v43 = vpop.f32.mrf.mxu3 }
  0xc9   : > { %709 = vst [vmem:[%s1200_s7 + $0x18] sm:$0xff] %v693_v41  ;;  %v595_v45 = vadd.f32 %v594_v43, %v545_v42  ;;  %v528_v46 = vpop.f32.mrf.mxu0 }
  0xca   : > { %v577_v47 = vpop.f32.mrf.mxu1 }
  0xcb   : > { %v685_v49 = vadd.f32 %v669_v44, %v595_v45  ;;  %v578_v50 = vadd.f32 %v577_v47, %v528_v46 }
  0xcd   : > { %v701_v51 = vmax.f32 %v685_v49, 0.0  ;;  %v678_v52 = vadd.f32 %v662_v48, %v578_v50 }
  0xcf   : > { %717 = vst [vmem:[%s1200_s7 + $0x58] sm:$0xff] %v701_v51  ;;  %v694_v53 = vmax.f32 %v678_v52, 0.0  ;;  %v548_v54 = vpop.f32.mrf.mxu2 }
  0xd0   : > { %v597_v55 = vpop.f32.mrf.mxu3 }
  0xd1   : > { %710 = vst [vmem:[%s1200_s7 + $0x20] sm:$0xff] %v694_v53  ;;  %v598_v57 = vadd.f32 %v597_v55, %v548_v54  ;;  %v530_v58 = vpop.f32.mrf.mxu0 }
  0xd2   : > { %v579_v59 = vpop.f32.mrf.mxu1 }
  0xd3   : > { %v686_v61 = vadd.f32 %v670_v56, %v598_v57  ;;  %v580_v62 = vadd.f32 %v579_v59, %v530_v58 }
  0xd5   : > { %v702_v63 = vmax.f32 %v686_v61, 0.0  ;;  %v679_v0 = vadd.f32 %v663_v60, %v580_v62 }
  0xd7   : > { %718 = vst [vmem:[%s1200_s7 + $0x60] sm:$0xff] %v702_v63  ;;  %v695_v1 = vmax.f32 %v679_v0, 0.0  ;;  %v550_v2 = vpop.f32.mrf.mxu2 }
  0xd8   : > { %v599_v3 = vpop.f32.mrf.mxu3 }
  0xd9   : > { %711 = vst [vmem:[%s1200_s7 + $0x28] sm:$0xff] %v695_v1  ;;  %v600_v5 = vadd.f32 %v599_v3, %v550_v2  ;;  %v533_v6 = vpop.f32.mrf.mxu0 }
  0xda   : > { %v582_v7 = vpop.f32.mrf.mxu1 }
  0xdb   : > { %v687_v9 = vadd.f32 %v671_v4, %v600_v5  ;;  %v583_v10 = vadd.f32 %v582_v7, %v533_v6 }
  0xdd   : > { %v703_v11 = vmax.f32 %v687_v9, 0.0  ;;  %v680_v12 = vadd.f32 %v664_v8, %v583_v10 }
  0xdf   : > { %719 = vst [vmem:[%s1200_s7 + $0x68] sm:$0xff] %v703_v11  ;;  %v696_v13 = vmax.f32 %v680_v12, 0.0  ;;  %v553_v14 = vpop.f32.mrf.mxu2 }
  0xe0   : > { %v602_v15 = vpop.f32.mrf.mxu3 }
  0xe1   : > { %712 = vst [vmem:[%s1200_s7 + $0x30] sm:$0xff] %v696_v13  ;;  %v603_v17 = vadd.f32 %v602_v15, %v553_v14  ;;  %v535_v18 = vpop.f32.mrf.mxu0 }
  0xe2   : > { %v584_v19 = vpop.f32.mrf.mxu1 }
  0xe3   : > { %v688_v21 = vadd.f32 %v672_v16, %v603_v17  ;;  %v585_v22 = vadd.f32 %v584_v19, %v535_v18 }
  0xe5   : > { %v704_v23 = vmax.f32 %v688_v21, 0.0  ;;  %v681_v24 = vadd.f32 %v665_v20, %v585_v22 }
  0xe7   : > { %720 = vst [vmem:[%s1200_s7 + $0x70] sm:$0xff] %v704_v23  ;;  %v697_v25 = vmax.f32 %v681_v24, 0.0  ;;  %v555_v26 = vpop.f32.mrf.mxu2 }
  0xe8   : > { %v604_v27 = vpop.f32.mrf.mxu3 }
  0xe9   : > { %713 = vst [vmem:[%s1200_s7 + $0x38] sm:$0xff] %v697_v25  ;;  %v605_v29 = vadd.f32 %v604_v27, %v555_v26 }
  0xeb   : > { %v689_v30 = vadd.f32 %v673_v28, %v605_v29 }
  0xed   : > { %v705_v31 = vmax.f32 %v689_v30, 0.0 }
  0xef   : > { %721 = vst [vmem:[%s1200_s7 + $0x78] sm:$0xff] %v705_v31 }
  0xf0 PF: > { %s13_s14 = sadd.s32 1, %s1058_s14   ;;  %s1246_s12 = smov %s1054_s13 }
  0xf1   : > { %p10_p5 = scmp.ge.s32.totalorder %s13_s14, 4   ;;  %s1247_s13 = smov %s1249_s15 }
  0xf3   :  { %12 = sbr.rel (!%p10_p5) target bundleno = 2 (0x2), region = 76 }

// kernel: causal_attnet_forward.5
= control target key start
LH: loop header
LB: loop body
LE: loop exit
PB: predicated region body
PF: predicated region fallthrough
CT: control target
= control target key end

     0   :  { %s1592_s21 = smov 0   ;;  %s1594_s22 = smov 0   ;;  %s1888_s0 = inlined_call_operand.vmem [shape: bf16[256,256], index: 0, kind: input, shape index: {}]   ;;  %s1889_s1 = inlined_call_operand.vmem [shape: bf16[256,128], index: 1, kind: input, shape index: {}]   ;;  %s1890_s2 = inlined_call_operand.vmem [shape: f32[256,128], index: 2, kind: input, shape index: {}]   ;;  %s1891_s3 = inlined_call_operand.vmem [shape: bf16[128,256], index: 3, kind: input, shape index: {}]   ;;  %s1892_s4 = inlined_call_operand.vmem [shape: f32[1,128], index: 4, kind: input, shape index: {}]   ;;  %s1893_s5 = inlined_call_operand.vmem [shape: bf16[256,128], index: 5, kind: output, shape index: {0}]   ;;  %s1894_s6 = inlined_call_operand.vmem [shape: f32[256,128], index: 6, kind: output, shape index: {1}]  }
   0x1   :  { %s1596_s23 = smov 0  }
   0x2 LB: > { %s29_s24 = sadd.s32 1, %s1551_s22  ;;  %p1208_p0 = scmp.ge.s32.totalorder %s1555_s23, 1  ;;  %s1555_s23 = sphi %s1596_s23, %s17_s23   ;;  %s1551_s22 = sphi %s1594_s22, %s1896_s22   ;;  %s1547_s21 = sphi %s1592_s21, %s1895_s21  }
   0x3   : > { %p31_p1 = scmp.ge.s32.totalorder %s29_s24, 2  ;;  %p258_p2 = scmp.lt.s32.totalorder %s1555_s23, 3 }
   0x5   : > { %s1898_s24 = smov (%p31_p1, %s29_s24), 0  ;;  %p259_p3 = pnand %p1208_p0, %p258_p2 }
   0x6   : > { %s1209_s13 = sshll.u32 (!%p259_p3), %s1547_s21, 4 }
   0x7   : > { %262 = sbr.rel (%p259_p3) target bundleno = 443 (0x1bb), region = 40  ;;  %p310_p4 = scmp.lt.s32.totalorder (!%p259_p3), %s1209_s13, 31 }
   0xc   : > { %v1436_v0 = vld [vmem:[%s1889_s1 + $0x38] sm:$0xff]  ;;  %v1435_v2 = vld [vmem:[%s1889_s1 + $0x30] sm:$0xff]  ;;  %v1434_v4 = vld [vmem:[%s1889_s1 + $0x28] sm:$0xff]  ;;  %s1900_s13 = smov (!%p310_p4, %s1209_s13), 31 }
   0xd   : > { %v1444_v1 = vld [vmem:[%s1889_s1 + $0x78] sm:$0xff]  ;;  %604 = vmatpush.bf16.msra.mxu0 %v1436_v0  ;;  %v1443_v3 = vld [vmem:[%s1889_s1 + $0x70] sm:$0xff]  ;;  %v1442_v5 = vld [vmem:[%s1889_s1 + $0x68] sm:$0xff]  ;;  %s1652_s29 = sshll.u32 %s1900_s13, 3  ;;  %s1215_s17 = sshll.u32 %s1900_s13, 2 }
   0xe   : > { %653 = vmatpush.bf16.msra.mxu1 %v1444_v1  ;;  %v1433_v6 = vld [vmem:[%s1889_s1 + $0x20] sm:$0xff]  ;;  %v1432_v8 = vld [vmem:[%s1889_s1 + $0x18] sm:$0xff]  ;;  %v1431_v10 = vld [vmem:[%s1889_s1 + $0x10] sm:$0xff]  ;;  %s1664_s12 = scalar_lea.vmem %s1888_s0, %s1652_s29  ;;  %s1804_s10 = scalar_lea.vmem %s1890_s2, %s1652_s29 }
   0xf   : > { %v1441_v7 = vld [vmem:[%s1889_s1 + $0x60] sm:$0xff]  ;;  %v1440_v9 = vld [vmem:[%s1889_s1 + $0x58] sm:$0xff]  ;;  %v1439_v11 = vld [vmem:[%s1889_s1 + $0x50] sm:$0xff]  ;;  %s1831_s16 = scalar_lea.vmem %s1894_s6, %s1652_s29  ;;  %s1839_s20 = scalar_lea.vmem %s1893_s5, %s1215_s17 }
  0x10   : > { %v1430_v12 = vld [vmem:[%s1889_s1 + $0x8] sm:$0xff]  ;;  %v1429_v14 = vld [vmem:[%s1889_s1] sm:$0xff]  ;;  %v1228_v22 = vld [vmem:[%s1664_s12 + $0x10] sm:$0xf] }
  0x11   : > { %605 = vmatpush.bf16.msra.mxu0 %v1435_v2  ;;  %v1438_v13 = vld [vmem:[%s1889_s1 + $0x48] sm:$0xff]  ;;  %v1437_v15 = vld [vmem:[%s1889_s1 + $0x40] sm:$0xff]  ;;  %v1416_v23 = vld [vmem:[%s1664_s12 + $0x14] sm:$0xf0] }
  0x12   : > { %654 = vmatpush.bf16.msra.mxu1 %v1443_v3  ;;  %v1220_v16 = vld [vmem:[%s1664_s12] sm:$0xf]  ;;  %v1414_v17 = vld [vmem:[%s1664_s12 + $0x4] sm:$0xf0]  ;;  %v1413_v18 = vld [vmem:[%s1664_s12 + $0x4] sm:$0xf]  ;;  %v1229_v26 = vor.u32 %v1416_v23, %v1228_v22 }
  0x13   : > { %v1222_v19 = vld [vmem:[%s1664_s12 + $0x8] sm:$0xf0]  ;;  %v1221_v20 = vor.u32 %v1414_v17, %v1220_v16  ;;  %v1415_v24 = vld [vmem:[%s1664_s12 + $0x14] sm:$0xf]  ;;  %v1230_v25 = vld [vmem:[%s1664_s12 + $0x18] sm:$0xf0] }
  0x14   : > { %v1225_v21 = vor.u32 %v1413_v18, %v1222_v19  ;;  %v1233_v27 = vor.u32 %v1415_v24, %v1230_v25  ;;  %v1236_v28 = vld [vmem:[%s1664_s12 + $0x20] sm:$0xf]  ;;  %v1418_v29 = vld [vmem:[%s1664_s12 + $0x24] sm:$0xf0]  ;;  %v1417_v30 = vld [vmem:[%s1664_s12 + $0x24] sm:$0xf] }
  0x15   : > { %606 = vmatpush.bf16.msra.mxu0 %v1434_v4  ;;  %v1238_v31 = vld [vmem:[%s1664_s12 + $0x28] sm:$0xf0]  ;;  %v1237_v32 = vor.u32 %v1418_v29, %v1236_v28  ;;  %v1244_v34 = vld [vmem:[%s1664_s12 + $0x30] sm:$0xf]  ;;  %v1420_v35 = vld [vmem:[%s1664_s12 + $0x34] sm:$0xf0] }
  0x16   : > { %655 = vmatpush.bf16.msra.mxu1 %v1442_v5  ;;  %v1241_v33 = vor.u32 %v1417_v30, %v1238_v31  ;;  %v1419_v36 = vld [vmem:[%s1664_s12 + $0x34] sm:$0xf]  ;;  %v1246_v37 = vld [vmem:[%s1664_s12 + $0x38] sm:$0xf0]  ;;  %v1245_v38 = vor.u32 %v1420_v35, %v1244_v34  ;;  %v1252_v40 = vld [vmem:[%s1664_s12 + $0x40] sm:$0xf] }
  0x17   : > { %v1249_v39 = vor.u32 %v1419_v36, %v1246_v37  ;;  %v1422_v41 = vld [vmem:[%s1664_s12 + $0x44] sm:$0xf0]  ;;  %v1421_v42 = vld [vmem:[%s1664_s12 + $0x44] sm:$0xf]  ;;  %v1254_v43 = vld [vmem:[%s1664_s12 + $0x48] sm:$0xf0] }
  0x18   : > { %v1253_v44 = vor.u32 %v1422_v41, %v1252_v40  ;;  %v1257_v45 = vor.u32 %v1421_v42, %v1254_v43  ;;  %v1404_v46 = vld [vmem:[%s1891_s3 + $0x70] sm:$0xf]  ;;  %v1460_v47 = vld [vmem:[%s1891_s3 + $0x74] sm:$0xf0]  ;;  %v1459_v48 = vld [vmem:[%s1891_s3 + $0x74] sm:$0xf] }
  0x19   : > { %607 = vmatpush.bf16.msra.mxu0 %v1433_v6  ;;  %v1405_v49 = vor.u32 %v1460_v47, %v1404_v46  ;;  %v1406_v50 = vld [vmem:[%s1891_s3 + $0x78] sm:$0xf0]  ;;  %v1260_v52 = vld [vmem:[%s1664_s12 + $0x50] sm:$0xf]  ;;  %v1424_v53 = vld [vmem:[%s1664_s12 + $0x54] sm:$0xf0] }
  0x1a   : > { %656 = vmatpush.bf16.msra.mxu1 %v1441_v7  ;;  %v1409_v51 = vor.u32 %v1459_v48, %v1406_v50  ;;  %v1423_v54 = vld [vmem:[%s1664_s12 + $0x54] sm:$0xf]  ;;  %v1262_v55 = vld [vmem:[%s1664_s12 + $0x58] sm:$0xf0]  ;;  %v1261_v56 = vor.u32 %v1424_v53, %v1260_v52  ;;  %v1396_v58 = vld [vmem:[%s1891_s3 + $0x60] sm:$0xf] }
  0x1b   : > { %905 = vmatpush.bf16.msra.mxu2 %v1405_v49  ;;  %v1265_v57 = vor.u32 %v1423_v54, %v1262_v55  ;;  %v1458_v59 = vld [vmem:[%s1891_s3 + $0x64] sm:$0xf0]  ;;  %v1457_v60 = vld [vmem:[%s1891_s3 + $0x64] sm:$0xf]  ;;  %v1398_v62 = vld [vmem:[%s1891_s3 + $0x68] sm:$0xf0] }
  0x1c   : > { %954 = vmatpush.bf16.msra.mxu3 %v1409_v51  ;;  %v1397_v61 = vor.u32 %v1458_v59, %v1396_v58  ;;  %v1388_v63 = vld [vmem:[%s1891_s3 + $0x50] sm:$0xf]  ;;  %v1456_v0 = vld [vmem:[%s1891_s3 + $0x54] sm:$0xf0]  ;;  %v1401_v1 = vor.u32 %v1457_v60, %v1398_v62  ;;  %v1455_v2 = vld [vmem:[%s1891_s3 + $0x54] sm:$0xf] }
  0x1d   : > { %608 = vmatpush.bf16.msra.mxu0 %v1432_v8  ;;  %v1390_v3 = vld [vmem:[%s1891_s3 + $0x58] sm:$0xf0]  ;;  %v1389_v4 = vor.u32 %v1456_v0, %v1388_v63  ;;  %v1380_v6 = vld [vmem:[%s1891_s3 + $0x40] sm:$0xf]  ;;  %v1454_v7 = vld [vmem:[%s1891_s3 + $0x44] sm:$0xf0] }
  0x1e   : > { %657 = vmatpush.bf16.msra.mxu1 %v1440_v9  ;;  %v1393_v5 = vor.u32 %v1455_v2, %v1390_v3  ;;  %v1453_v8 = vld [vmem:[%s1891_s3 + $0x44] sm:$0xf]  ;;  %v1382_v9 = vld [vmem:[%s1891_s3 + $0x48] sm:$0xf0]  ;;  %v1372_v18 = vld [vmem:[%s1891_s3 + $0x30] sm:$0xf] }
  0x1f   : > { %906 = vmatpush.bf16.msra.mxu2 %v1397_v61  ;;  %v1452_v19 = vld [vmem:[%s1891_s3 + $0x34] sm:$0xf0]  ;;  %v1374_v22 = vld [vmem:[%s1891_s3 + $0x38] sm:$0xf0]  ;;  %v1364_v24 = vld [vmem:[%s1891_s3 + $0x20] sm:$0xf] }
  0x20   : > { %955 = vmatpush.bf16.msra.mxu3 %v1401_v1  ;;  %v1450_v25 = vld [vmem:[%s1891_s3 + $0x24] sm:$0xf0]  ;;  %v1366_v28 = vld [vmem:[%s1891_s3 + $0x28] sm:$0xf0]  ;;  %v1356_v30 = vld [vmem:[%s1891_s3 + $0x10] sm:$0xf] }
  0x21   : > { %609 = vmatpush.bf16.msra.mxu0 %v1431_v10  ;;  %v1381_v10 = vor.u32 %v1454_v7, %v1380_v6  ;;  %v1448_v31 = vld [vmem:[%s1891_s3 + $0x14] sm:$0xf0]  ;;  %v1358_v34 = vld [vmem:[%s1891_s3 + $0x18] sm:$0xf0]  ;;  %v1276_v36 = vld [vmem:[%s1664_s12 + $0x70] sm:$0xf] }
  0x22   : > { %658 = vmatpush.bf16.msra.mxu1 %v1439_v11  ;;  %v1268_v11 = vld [vmem:[%s1664_s12 + $0x60] sm:$0xf]  ;;  %v1428_v37 = vld [vmem:[%s1664_s12 + $0x74] sm:$0xf0]  ;;  %v1445_v40 = vld [vmem:[%s1891_s3 + $0x4] sm:$0xf] }
  0x23   : > { %907 = vmatpush.bf16.msra.mxu2 %v1389_v4  ;;  %v1427_v41 = vld [vmem:[%s1664_s12 + $0x74] sm:$0xf]  ;;  %v1278_v42 = vld [vmem:[%s1664_s12 + $0x78] sm:$0xf0]  ;;  %v1277_v46 = vor.u32 %v1428_v37, %v1276_v36  ;;  %v753_v51 = vld [vmem:[%s1804_s10] sm:$0xff] }
  0x24   : > { %956 = vmatpush.bf16.msra.mxu3 %v1393_v5  ;;  %v1281_v47 = vor.u32 %v1427_v41, %v1278_v42  ;;  %v754_v54 = vld [vmem:[%s1804_s10 + $0x8] sm:$0xff]  ;;  %v755_v0 = vld [vmem:[%s1804_s10 + $0x10] sm:$0xff]  ;;  %v756_v3 = vld [vmem:[%s1804_s10 + $0x18] sm:$0xff] }
  0x25   : > { %610 = vmatpush.bf16.msra.mxu0 %v1430_v12  ;;  %v1385_v12 = vor.u32 %v1453_v8, %v1382_v9  ;;  %v762_v42 = vld [vmem:[%s1804_s10 + $0x48] sm:$0xff] }
  0x26   : > { %659 = vmatpush.bf16.msra.mxu1 %v1438_v13  ;;  %v1426_v13 = vld [vmem:[%s1664_s12 + $0x64] sm:$0xf0] }
  0x27   : > { %908 = vmatpush.bf16.msra.mxu2 %v1381_v10  ;;  %v1269_v16 = vor.u32 %v1426_v13, %v1268_v11  ;;  %v757_v13 = vld [vmem:[%s1804_s10 + $0x20] sm:$0xff] }
  0x28   : > { %957 = vmatpush.bf16.msra.mxu3 %v1385_v12 }
  0x29   : > { %611 = vmatpush.bf16.msra.mxu0 %v1429_v14  ;;  %v1425_v14 = vld [vmem:[%s1664_s12 + $0x64] sm:$0xf] }
  0x2a   : > { %660 = vmatpush.bf16.msra.mxu1 %v1437_v15  ;;  %v1270_v15 = vld [vmem:[%s1664_s12 + $0x68] sm:$0xf0] }
  0x2b   : > { %v1273_v17 = vor.u32 %v1425_v14, %v1270_v15 }
  0x2c   : > { %612 = vmatmul.bf16.vlgmr.msra.gmra.mxu0 %v1221_v20  ;;  %v1451_v20 = vld [vmem:[%s1891_s3 + $0x34] sm:$0xf] }
  0x2d   : > { %661 = vmatmul.bf16.vlgmr.msra.gmra.mxu1 %v1225_v21  ;;  %v1373_v21 = vor.u32 %v1452_v19, %v1372_v18  ;;  %v1377_v23 = vor.u32 %v1451_v20, %v1374_v22 }
  0x2f   : > { %909 = vmatpush.bf16.msra.mxu2 %v1373_v21  ;;  %958 = vmatpush.bf16.msra.mxu3 %v1377_v23 }
  0x3c   : > { %617 = vmatmul.bf16.gmra.mxu0 %v1229_v26  ;;  %v1449_v26 = vld [vmem:[%s1891_s3 + $0x24] sm:$0xf] }
  0x3d   : > { %666 = vmatmul.bf16.gmra.mxu1 %v1233_v27  ;;  %v1365_v27 = vor.u32 %v1450_v25, %v1364_v24  ;;  %v1369_v29 = vor.u32 %v1449_v26, %v1366_v28  ;;  %v759_v26 = vld [vmem:[%s1804_s10 + $0x30] sm:$0xff] }
  0x3f   : > { %910 = vmatpush.bf16.msra.mxu2 %v1365_v27  ;;  %959 = vmatpush.bf16.msra.mxu3 %v1369_v29  ;;  %v760_v29 = vld [vmem:[%s1804_s10 + $0x38] sm:$0xff] }
  0x4c   : > { %622 = vmatmul.bf16.gmra.mxu0 %v1237_v32  ;;  %v1447_v32 = vld [vmem:[%s1891_s3 + $0x14] sm:$0xf] }
  0x4d   : > { %671 = vmatmul.bf16.gmra.mxu1 %v1241_v33  ;;  %v1357_v33 = vor.u32 %v1448_v31, %v1356_v30  ;;  %v1361_v35 = vor.u32 %v1447_v32, %v1358_v34 }
  0x4f   : > { %911 = vmatpush.bf16.msra.mxu2 %v1357_v33  ;;  %960 = vmatpush.bf16.msra.mxu3 %v1361_v35 }
  0x5c   : > { %627 = vmatmul.bf16.gmra.mxu0 %v1245_v38  ;;  %v1348_v38 = vld [vmem:[%s1891_s3] sm:$0xf] }
  0x5d   : > { %676 = vmatmul.bf16.gmra.mxu1 %v1249_v39  ;;  %v1446_v39 = vld [vmem:[%s1891_s3 + $0x4] sm:$0xf0] }
  0x5e   : > { %v1349_v43 = vor.u32 %v1446_v39, %v1348_v38  ;;  %v761_v39 = vld [vmem:[%s1804_s10 + $0x40] sm:$0xff] }
  0x60   : > { %912 = vmatpush.bf16.msra.mxu2 %v1349_v43 }
  0x6c   : > { %632 = vmatmul.bf16.gmra.mxu0 %v1253_v44  ;;  %v1350_v44 = vld [vmem:[%s1891_s3 + $0x8] sm:$0xf0] }
  0x6d   : > { %681 = vmatmul.bf16.gmra.mxu1 %v1257_v45  ;;  %v1353_v45 = vor.u32 %v1445_v40, %v1350_v44 }
  0x6f   : > { %961 = vmatpush.bf16.msra.mxu3 %v1353_v45 }
  0x7c   : > { %637 = vmatmul.bf16.gmra.mxu0 %v1261_v56 }
  0x7d   : > { %686 = vmatmul.bf16.gmra.mxu1 %v1265_v57 }
  0x8c   : > { %642 = vmatmul.bf16.gmra.mxu0 %v1269_v16  ;;  %v758_v16 = vld [vmem:[%s1804_s10 + $0x28] sm:$0xff] }
  0x8d   : > { %691 = vmatmul.bf16.gmra.mxu1 %v1273_v17 }
  0x9c   : > { %647 = vmatmul.bf16.gmra.mxu0 %v1277_v46 }
  0x9d   : > { %696 = vmatmul.bf16.gmra.mxu1 %v1281_v47 }
  0xa9   : > { %v613_v48 = vpop.f32.mrf.mxu0 }
  0xaa   : > { %v662_v49 = vpop.f32.mrf.mxu1 }
  0xab   : > { %v663_v50 = vadd.f32 %v662_v49, %v613_v48 }
  0xad   : > { %v769_v55 = vadd.f32 %v753_v51, %v663_v50 }
  0xaf   : > { %v785_v58 = vmax.f32 %v769_v55, 0.0  ;;  %v764_v55 = vld [vmem:[%s1804_s10 + $0x58] sm:$0xff] }
  0xb1   : > { %v615_v52 = vpop.f32.mrf.mxu0 }
  0xb2   : > { %v664_v53 = vpop.f32.mrf.mxu1 }
  0xb3   : > { %v665_v56 = vadd.f32 %v664_v53, %v615_v52  ;;  %v763_v52 = vld [vmem:[%s1804_s10 + $0x50] sm:$0xff] }
  0xb5   : > { %v770_v57 = vadd.f32 %v754_v54, %v665_v56 }
  0xb7   : > { %v786_v59 = vmax.f32 %v770_v57, 0.0 }
  0xb9   : > { %v801_v60 = vpack.c.bf16 %v786_v59, %v785_v58  ;;  %v618_v61 = vpop.f32.mrf.mxu0 }
  0xba   : > { %v667_v62 = vpop.f32.mrf.mxu1 }
  0xbb   : > { %913 = vmatmul.bf16.vlgmr.msra.gmra.mxu2 %v801_v60  ;;  %962 = vmatmul.bf16.vlgmr.msra.gmra.mxu3 %v801_v60  ;;  %v668_v63 = vadd.f32 %v667_v62, %v618_v61 }
  0xbd   : > { %v771_v4 = vadd.f32 %v755_v0, %v668_v63 }
  0xbf   : > { %v787_v7 = vmax.f32 %v771_v4, 0.0  ;;  %v766_v4 = vld [vmem:[%s1804_s10 + $0x68] sm:$0xff] }
  0xc1   : > { %v620_v1 = vpop.f32.mrf.mxu0 }
  0xc2   : > { %v669_v2 = vpop.f32.mrf.mxu1 }
  0xc3   : > { %v670_v5 = vadd.f32 %v669_v2, %v620_v1  ;;  %v765_v1 = vld [vmem:[%s1804_s10 + $0x60] sm:$0xff] }
  0xc5   : > { %v772_v6 = vadd.f32 %v756_v3, %v670_v5 }
  0xc7   : > { %v788_v8 = vmax.f32 %v772_v6, 0.0 }
  0xc9   : > { %v802_v9 = vpack.c.bf16 %v788_v8, %v787_v7  ;;  %v623_v10 = vpop.f32.mrf.mxu0 }
  0xca   : > { %v672_v11 = vpop.f32.mrf.mxu1 }
  0xcb   : > { %918 = vmatmul.bf16.gmra.mxu2 %v802_v9  ;;  %967 = vmatmul.bf16.gmra.mxu3 %v802_v9  ;;  %v673_v12 = vadd.f32 %v672_v11, %v623_v10 }
  0xcd   : > { %v773_v17 = vadd.f32 %v757_v13, %v673_v12 }
  0xcf   : > { %v789_v20 = vmax.f32 %v773_v17, 0.0  ;;  %v768_v17 = vld [vmem:[%s1804_s10 + $0x78] sm:$0xff] }
  0xd1   : > { %v625_v14 = vpop.f32.mrf.mxu0 }
  0xd2   : > { %v674_v15 = vpop.f32.mrf.mxu1 }
  0xd3   : > { %v675_v18 = vadd.f32 %v674_v15, %v625_v14  ;;  %v767_v14 = vld [vmem:[%s1804_s10 + $0x70] sm:$0xff] }
  0xd5   : > { %v774_v19 = vadd.f32 %v758_v16, %v675_v18 }
  0xd7   : > { %v790_v21 = vmax.f32 %v774_v19, 0.0 }
  0xd9   : > { %v803_v22 = vpack.c.bf16 %v790_v21, %v789_v20  ;;  %v628_v23 = vpop.f32.mrf.mxu0 }
  0xda   : > { %v677_v24 = vpop.f32.mrf.mxu1 }
  0xdb   : > { %923 = vmatmul.bf16.gmra.mxu2 %v803_v22  ;;  %972 = vmatmul.bf16.gmra.mxu3 %v803_v22  ;;  %v678_v25 = vadd.f32 %v677_v24, %v628_v23  ;;  %v1825_v24 = vld [vmem:[%s1892_s4] ss:$0 sm:$0xff] }
  0xdd   : > { %v775_v30 = vadd.f32 %v759_v26, %v678_v25 }
  0xdf   : > { %v791_v33 = vmax.f32 %v775_v30, 0.0 }
  0xe1   : > { %v630_v27 = vpop.f32.mrf.mxu0 }
  0xe2   : > { %v679_v28 = vpop.f32.mrf.mxu1 }
  0xe3   : > { %v680_v31 = vadd.f32 %v679_v28, %v630_v27 }
  0xe5   : > { %v776_v32 = vadd.f32 %v760_v29, %v680_v31 }
  0xe7   : > { %v792_v34 = vmax.f32 %v776_v32, 0.0 }
  0xe9   : > { %v804_v35 = vpack.c.bf16 %v792_v34, %v791_v33  ;;  %v633_v36 = vpop.f32.mrf.mxu0 }
  0xea   : > { %v682_v37 = vpop.f32.mrf.mxu1 }
  0xeb   : > { %928 = vmatmul.bf16.gmra.mxu2 %v804_v35  ;;  %977 = vmatmul.bf16.gmra.mxu3 %v804_v35  ;;  %v683_v38 = vadd.f32 %v682_v37, %v633_v36 }
  0xed   : > { %v777_v43 = vadd.f32 %v761_v39, %v683_v38 }
  0xef   : > { %v793_v46 = vmax.f32 %v777_v43, 0.0 }
  0xf1   : > { %v635_v40 = vpop.f32.mrf.mxu0 }
  0xf2   : > { %v684_v41 = vpop.f32.mrf.mxu1 }
  0xf3   : > { %v685_v44 = vadd.f32 %v684_v41, %v635_v40 }
  0xf5   : > { %v778_v45 = vadd.f32 %v762_v42, %v685_v44 }
  0xf7   : > { %v794_v47 = vmax.f32 %v778_v45, 0.0 }
  0xf9   : > { %v805_v48 = vpack.c.bf16 %v794_v47, %v793_v46  ;;  %v638_v49 = vpop.f32.mrf.mxu0 }
  0xfa   : > { %v687_v50 = vpop.f32.mrf.mxu1 }
  0xfb   : > { %933 = vmatmul.bf16.gmra.mxu2 %v805_v48  ;;  %982 = vmatmul.bf16.gmra.mxu3 %v805_v48  ;;  %v688_v51 = vadd.f32 %v687_v50, %v638_v49 }
  0xfd   : > { %v779_v56 = vadd.f32 %v763_v52, %v688_v51 }
  0xff   : > { %v795_v59 = vmax.f32 %v779_v56, 0.0 }
 0x101   : > { %v640_v53 = vpop.f32.mrf.mxu0 }
 0x102   : > { %v689_v54 = vpop.f32.mrf.mxu1 }
 0x103   : > { %v690_v57 = vadd.f32 %v689_v54, %v640_v53 }
 0x105   : > { %v780_v58 = vadd.f32 %v764_v55, %v690_v57 }
 0x107   : > { %v796_v60 = vmax.f32 %v780_v58, 0.0 }
 0x109   : > { %v806_v61 = vpack.c.bf16 %v796_v60, %v795_v59  ;;  %v643_v62 = vpop.f32.mrf.mxu0 }
 0x10a   : > { %v692_v63 = vpop.f32.mrf.mxu1 }
 0x10b   : > { %938 = vmatmul.bf16.gmra.mxu2 %v806_v61  ;;  %987 = vmatmul.bf16.gmra.mxu3 %v806_v61  ;;  %v693_v0 = vadd.f32 %v692_v63, %v643_v62 }
 0x10d   : > { %v781_v5 = vadd.f32 %v765_v1, %v693_v0 }
 0x10f   : > { %v797_v8 = vmax.f32 %v781_v5, 0.0 }
 0x111   : > { %v645_v2 = vpop.f32.mrf.mxu0 }
 0x112   : > { %v694_v3 = vpop.f32.mrf.mxu1 }
 0x113   : > { %v695_v6 = vadd.f32 %v694_v3, %v645_v2 }
 0x115   : > { %v782_v7 = vadd.f32 %v766_v4, %v695_v6 }
 0x117   : > { %v798_v9 = vmax.f32 %v782_v7, 0.0 }
 0x119   : > { %v807_v10 = vpack.c.bf16 %v798_v9, %v797_v8  ;;  %v648_v11 = vpop.f32.mrf.mxu0 }
 0x11a   : > { %v697_v12 = vpop.f32.mrf.mxu1 }
 0x11b   : > { %943 = vmatmul.bf16.gmra.mxu2 %v807_v10  ;;  %992 = vmatmul.bf16.gmra.mxu3 %v807_v10  ;;  %v698_v13 = vadd.f32 %v697_v12, %v648_v11 }
 0x11d   : > { %v783_v18 = vadd.f32 %v767_v14, %v698_v13 }
 0x11f   : > { %v799_v21 = vmax.f32 %v783_v18, 0.0 }
 0x121   : > { %v650_v15 = vpop.f32.mrf.mxu0 }
 0x122   : > { %v699_v16 = vpop.f32.mrf.mxu1 }
 0x123   : > { %v700_v19 = vadd.f32 %v699_v16, %v650_v15 }
 0x125   : > { %v784_v20 = vadd.f32 %v768_v17, %v700_v19 }
 0x127   : > { %v800_v22 = vmax.f32 %v784_v20, 0.0 }
 0x129   : > { %v808_v23 = vpack.c.bf16 %v800_v22, %v799_v21 }
 0x12b   : > { %948 = vmatmul.bf16.gmra.mxu2 %v808_v23  ;;  %997 = vmatmul.bf16.gmra.mxu3 %v808_v23 }
 0x13e   : > { %v914_v25 = vpop.f32.mrf.mxu2  ;;  %v963_v26 = vpop.f32.mrf.mxu3 }
 0x13f   : > { %v1039_v27 = vadd.f32 %v1825_v24, %v963_v26 }
 0x141   : > { %1055 = vst [vmem:[%s1831_s16] sm:$0xff] %v1039_v27 }
 0x146   : > { %v916_v28 = vpop.f32.mrf.mxu2  ;;  %v965_v29 = vpop.f32.mrf.mxu3 }
 0x147   : > { %v1464_v30 = vpack.c.bf16 %v916_v28, %v914_v25  ;;  %v1040_v31 = vadd.f32 %v1825_v24, %v965_v29 }
 0x149   : > { %1465 = vst [vmem:[%s1839_s20] sm:$0xff] %v1464_v30  }
 0x14a   : > { %1056 = vst [vmem:[%s1831_s16 + $0x8] sm:$0xff] %v1040_v31 }
 0x14e   : > { %v919_v32 = vpop.f32.mrf.mxu2  ;;  %v968_v33 = vpop.f32.mrf.mxu3 }
 0x14f   : > { %v1041_v34 = vadd.f32 %v1825_v24, %v968_v33 }
 0x151   : > { %1057 = vst [vmem:[%s1831_s16 + $0x10] sm:$0xff] %v1041_v34 }
 0x156   : > { %v921_v35 = vpop.f32.mrf.mxu2  ;;  %v970_v36 = vpop.f32.mrf.mxu3 }
 0x157   : > { %v1469_v37 = vpack.c.bf16 %v921_v35, %v919_v32  ;;  %v1042_v38 = vadd.f32 %v1825_v24, %v970_v36 }
 0x159   : > { %1501 = vst [vmem:[%s1839_s20 + $0x8] sm:$0xff] %v1469_v37  }
 0x15a   : > { %1058 = vst [vmem:[%s1831_s16 + $0x18] sm:$0xff] %v1042_v38 }
 0x15e   : > { %v924_v39 = vpop.f32.mrf.mxu2  ;;  %v973_v40 = vpop.f32.mrf.mxu3 }
 0x15f   : > { %v1043_v41 = vadd.f32 %v1825_v24, %v973_v40 }
 0x161   : > { %1059 = vst [vmem:[%s1831_s16 + $0x20] sm:$0xff] %v1043_v41 }
 0x166   : > { %v926_v42 = vpop.f32.mrf.mxu2  ;;  %v975_v43 = vpop.f32.mrf.mxu3 }
 0x167   : > { %v1474_v44 = vpack.c.bf16 %v926_v42, %v924_v39  ;;  %v1044_v45 = vadd.f32 %v1825_v24, %v975_v43 }
 0x169   : > { %1502 = vst [vmem:[%s1839_s20 + $0x10] sm:$0xff] %v1474_v44  }
 0x16a   : > { %1060 = vst [vmem:[%s1831_s16 + $0x28] sm:$0xff] %v1044_v45 }
 0x16e   : > { %v929_v46 = vpop.f32.mrf.mxu2  ;;  %v978_v47 = vpop.f32.mrf.mxu3 }
 0x16f   : > { %v1045_v48 = vadd.f32 %v1825_v24, %v978_v47 }
 0x171   : > { %1061 = vst [vmem:[%s1831_s16 + $0x30] sm:$0xff] %v1045_v48 }
 0x176   : > { %v931_v49 = vpop.f32.mrf.mxu2  ;;  %v980_v50 = vpop.f32.mrf.mxu3 }
 0x177   : > { %v1479_v51 = vpack.c.bf16 %v931_v49, %v929_v46  ;;  %v1046_v52 = vadd.f32 %v1825_v24, %v980_v50 }
 0x179   : > { %1503 = vst [vmem:[%s1839_s20 + $0x18] sm:$0xff] %v1479_v51  }
 0x17a   : > { %1062 = vst [vmem:[%s1831_s16 + $0x38] sm:$0xff] %v1046_v52 }
 0x17e   : > { %v934_v53 = vpop.f32.mrf.mxu2  ;;  %v983_v54 = vpop.f32.mrf.mxu3 }
 0x17f   : > { %v1047_v55 = vadd.f32 %v1825_v24, %v983_v54 }
 0x181   : > { %1063 = vst [vmem:[%s1831_s16 + $0x40] sm:$0xff] %v1047_v55 }
 0x186   : > { %v936_v56 = vpop.f32.mrf.mxu2  ;;  %v985_v57 = vpop.f32.mrf.mxu3 }
 0x187   : > { %v1484_v58 = vpack.c.bf16 %v936_v56, %v934_v53  ;;  %v1048_v59 = vadd.f32 %v1825_v24, %v985_v57 }
 0x189   : > { %1504 = vst [vmem:[%s1839_s20 + $0x20] sm:$0xff] %v1484_v58  }
 0x18a   : > { %1064 = vst [vmem:[%s1831_s16 + $0x48] sm:$0xff] %v1048_v59 }
 0x18e   : > { %v939_v60 = vpop.f32.mrf.mxu2  ;;  %v988_v61 = vpop.f32.mrf.mxu3 }
 0x18f   : > { %v1049_v62 = vadd.f32 %v1825_v24, %v988_v61 }
 0x191   : > { %1065 = vst [vmem:[%s1831_s16 + $0x50] sm:$0xff] %v1049_v62 }
 0x196   : > { %v941_v63 = vpop.f32.mrf.mxu2  ;;  %v990_v0 = vpop.f32.mrf.mxu3 }
 0x197   : > { %v1489_v1 = vpack.c.bf16 %v941_v63, %v939_v60  ;;  %v1050_v2 = vadd.f32 %v1825_v24, %v990_v0 }
 0x199   : > { %1505 = vst [vmem:[%s1839_s20 + $0x28] sm:$0xff] %v1489_v1  }
 0x19a   : > { %1066 = vst [vmem:[%s1831_s16 + $0x58] sm:$0xff] %v1050_v2 }
 0x19e   : > { %v944_v3 = vpop.f32.mrf.mxu2  ;;  %v993_v4 = vpop.f32.mrf.mxu3 }
 0x19f   : > { %v1051_v5 = vadd.f32 %v1825_v24, %v993_v4 }
 0x1a1   : > { %1067 = vst [vmem:[%s1831_s16 + $0x60] sm:$0xff] %v1051_v5 }
 0x1a6   : > { %v946_v6 = vpop.f32.mrf.mxu2  ;;  %v995_v7 = vpop.f32.mrf.mxu3 }
 0x1a7   : > { %v1494_v8 = vpack.c.bf16 %v946_v6, %v944_v3  ;;  %v1052_v9 = vadd.f32 %v1825_v24, %v995_v7 }
 0x1a9   : > { %1506 = vst [vmem:[%s1839_s20 + $0x30] sm:$0xff] %v1494_v8  }
 0x1aa   : > { %1068 = vst [vmem:[%s1831_s16 + $0x68] sm:$0xff] %v1052_v9 }
 0x1ae   : > { %v949_v10 = vpop.f32.mrf.mxu2  ;;  %v998_v11 = vpop.f32.mrf.mxu3 }
 0x1af   : > { %v1053_v12 = vadd.f32 %v1825_v24, %v998_v11 }
 0x1b1   : > { %1069 = vst [vmem:[%s1831_s16 + $0x70] sm:$0xff] %v1053_v12 }
 0x1b6   : > { %v951_v13 = vpop.f32.mrf.mxu2  ;;  %v1000_v14 = vpop.f32.mrf.mxu3 }
 0x1b7   : > { %v1499_v15 = vpack.c.bf16 %v951_v13, %v949_v10  ;;  %v1054_v16 = vadd.f32 %v1825_v24, %v1000_v14 }
 0x1b9   : > { %1507 = vst [vmem:[%s1839_s20 + $0x38] sm:$0xff] %v1499_v15  }
 0x1ba   : > { %1070 = vst [vmem:[%s1831_s16 + $0x78] sm:$0xff] %v1054_v16 }
 0x1bb PF: > { %s17_s23 = sadd.s32 1, %s1555_s23   ;;  %s1895_s21 = smov %s1551_s22 }
 0x1bc   : > { %p14_p5 = scmp.ge.s32.totalorder %s17_s23, 4   ;;  %s1896_s22 = smov %s1898_s24 }
 0x1be   :  { %16 = sbr.rel (!%p14_p5) target bundleno = 2 (0x2), region = 96 }

// kernel: causal_attnet_forward.4
= control target key start
LH: loop header
LB: loop body
LE: loop exit
PB: predicated region body
PF: predicated region fallthrough
CT: control target
= control target key end

     0   :  { %s2651_s15 = smov 0   ;;  %s3689_s0 = inlined_call_operand.vmem [shape: bf16[256,768], index: 0, kind: input, shape index: {}]   ;;  %s3690_s1 = inlined_call_operand.vmem [shape: bf16[768,256], index: 1, kind: input, shape index: {}]   ;;  %s3691_s2 = inlined_call_operand.vmem [shape: f32[1,128], index: 2, kind: input, shape index: {}]   ;;  %s3692_s3 = inlined_call_operand.vmem [shape: bf16[256,128], index: 3, kind: output, shape index: {0}]   ;;  %s3693_s4 = inlined_call_operand.vmem [shape: f32[256,128], index: 4, kind: output, shape index: {1}]  }
   0x1 LB: > { %s1828_s16 = sadd.s32 4294967295, %s2624_s15   ;;  %p1832_p0 = scmp.ge.s32.totalorder %s2624_s15, 1  ;;  %s2624_s15 = sphi %s2651_s15, %s15_s15  }
   0x2   : > { %p167_p1 = scmp.lt.s32.totalorder %s2624_s15, 3 }
   0x4   : > { %p168_p2 = pnand %p1832_p0, %p167_p1 }
   0x5   : > { %s1833_s29 = sshll.u32 (!%p168_p2), %s1828_s16, 4 }
   0x6   : > { %171 = sbr.rel (%p168_p2) target bundleno = 562 (0x232), region = 32  ;;  %p200_p3 = scmp.lt.s32.totalorder (!%p168_p2), %s1833_s29, 31 }
   0xb   : > { %v2089_v0 = vld [vmem:[%s3690_s1 + $0x70] sm:$0xf]  ;;  %v2480_v1 = vld [vmem:[%s3690_s1 + $0x74] sm:$0xf0]  ;;  %v2081_v11 = vld [vmem:[%s3690_s1 + $0x60] sm:$0xf] }
   0xc   : > { %v2153_v2 = vld [vmem:[%s3690_s1 + $0xf0] sm:$0xf]  ;;  %v2090_v3 = vor.u32 %v2480_v1, %v2089_v0  ;;  %v2496_v4 = vld [vmem:[%s3690_s1 + $0xf4] sm:$0xf0]  ;;  %v2478_v13 = vld [vmem:[%s3690_s1 + $0x64] sm:$0xf0] }
   0xd   : > { %v2217_v5 = vld [vmem:[%s3690_s1 + $0x170] sm:$0xf]  ;;  %v2512_v6 = vld [vmem:[%s3690_s1 + $0x174] sm:$0xf0]  ;;  %v2154_v7 = vor.u32 %v2496_v4, %v2153_v2  ;;  %v2145_v14 = vld [vmem:[%s3690_s1 + $0xe0] sm:$0xf]  ;;  %v2082_v16 = vor.u32 %v2478_v13, %v2081_v11 }
   0xe   : > { %v2218_v8 = vor.u32 %v2512_v6, %v2217_v5  ;;  %v2281_v9 = vld [vmem:[%s3690_s1 + $0x1f0] sm:$0xf]  ;;  %v2528_v10 = vld [vmem:[%s3690_s1 + $0x1f4] sm:$0xf0]  ;;  %1082 = vmatpush.bf16.msra.mxu0 %v2090_v3  ;;  %v2494_v15 = vld [vmem:[%s3690_s1 + $0xe4] sm:$0xf0] }
   0xf   : > { %v2282_v12 = vor.u32 %v2528_v10, %v2281_v9  ;;  %1131 = vmatpush.bf16.msra.mxu1 %v2154_v7  ;;  %v2146_v17 = vor.u32 %v2494_v15, %v2145_v14  ;;  %v2209_v18 = vld [vmem:[%s3690_s1 + $0x160] sm:$0xf]  ;;  %v2510_v19 = vld [vmem:[%s3690_s1 + $0x164] sm:$0xf0]  ;;  %v2073_v23 = vld [vmem:[%s3690_s1 + $0x50] sm:$0xf] }
  0x10   : > { %1180 = vmatpush.bf16.msra.mxu2 %v2218_v8  ;;  %v2273_v20 = vld [vmem:[%s3690_s1 + $0x1e0] sm:$0xf]  ;;  %v2210_v21 = vor.u32 %v2510_v19, %v2209_v18  ;;  %v2526_v22 = vld [vmem:[%s3690_s1 + $0x1e4] sm:$0xf0]  ;;  %v2476_v24 = vld [vmem:[%s3690_s1 + $0x54] sm:$0xf0] }
  0x11   : > { %1229 = vmatpush.bf16.msra.mxu3 %v2282_v12  ;;  %v2274_v25 = vor.u32 %v2526_v22, %v2273_v20  ;;  %v2137_v26 = vld [vmem:[%s3690_s1 + $0xd0] sm:$0xf]  ;;  %v2492_v27 = vld [vmem:[%s3690_s1 + $0xd4] sm:$0xf0]  ;;  %v2074_v29 = vor.u32 %v2476_v24, %v2073_v23  ;;  %v2065_v35 = vld [vmem:[%s3690_s1 + $0x40] sm:$0xf] }
  0x12   : > { %v2201_v28 = vld [vmem:[%s3690_s1 + $0x150] sm:$0xf]  ;;  %1083 = vmatpush.bf16.msra.mxu0 %v2082_v16  ;;  %v2508_v30 = vld [vmem:[%s3690_s1 + $0x154] sm:$0xf0]  ;;  %v2138_v33 = vor.u32 %v2492_v27, %v2137_v26  ;;  %v2474_v36 = vld [vmem:[%s3690_s1 + $0x44] sm:$0xf0] }
  0x13   : > { %v2265_v31 = vld [vmem:[%s3690_s1 + $0x1d0] sm:$0xf]  ;;  %v2524_v32 = vld [vmem:[%s3690_s1 + $0x1d4] sm:$0xf0]  ;;  %1132 = vmatpush.bf16.msra.mxu1 %v2146_v17  ;;  %v2202_v34 = vor.u32 %v2508_v30, %v2201_v28  ;;  %v2129_v37 = vld [vmem:[%s3690_s1 + $0xc0] sm:$0xf]  ;;  %v2066_v44 = vor.u32 %v2474_v36, %v2065_v35 }
  0x14   : > { %1181 = vmatpush.bf16.msra.mxu2 %v2210_v21  ;;  %v2266_v38 = vor.u32 %v2524_v32, %v2265_v31  ;;  %v2490_v39 = vld [vmem:[%s3690_s1 + $0xc4] sm:$0xf0]  ;;  %v2193_v40 = vld [vmem:[%s3690_s1 + $0x140] sm:$0xf]  ;;  %v2057_v47 = vld [vmem:[%s3690_s1 + $0x30] sm:$0xf] }
  0x15   : > { %1230 = vmatpush.bf16.msra.mxu3 %v2274_v25  ;;  %v2506_v41 = vld [vmem:[%s3690_s1 + $0x144] sm:$0xf0]  ;;  %v2257_v42 = vld [vmem:[%s3690_s1 + $0x1c0] sm:$0xf]  ;;  %v2130_v45 = vor.u32 %v2490_v39, %v2129_v37  ;;  %v2472_v48 = vld [vmem:[%s3690_s1 + $0x34] sm:$0xf0] }
  0x16   : > { %v2522_v43 = vld [vmem:[%s3690_s1 + $0x1c4] sm:$0xf0]  ;;  %1084 = vmatpush.bf16.msra.mxu0 %v2074_v29  ;;  %v2194_v46 = vor.u32 %v2506_v41, %v2193_v40  ;;  %v2121_v49 = vld [vmem:[%s3690_s1 + $0xb0] sm:$0xf]  ;;  %v2488_v51 = vld [vmem:[%s3690_s1 + $0xb4] sm:$0xf0]  ;;  %v2058_v56 = vor.u32 %v2472_v48, %v2057_v47 }
  0x17   : > { %1133 = vmatpush.bf16.msra.mxu1 %v2138_v33  ;;  %v2258_v50 = vor.u32 %v2522_v43, %v2257_v42  ;;  %v2185_v52 = vld [vmem:[%s3690_s1 + $0x130] sm:$0xf]  ;;  %v2504_v53 = vld [vmem:[%s3690_s1 + $0x134] sm:$0xf0]  ;;  %v2122_v57 = vor.u32 %v2488_v51, %v2121_v49  ;;  %v2049_v59 = vld [vmem:[%s3690_s1 + $0x20] sm:$0xf] }
  0x18   : > { %1182 = vmatpush.bf16.msra.mxu2 %v2202_v34  ;;  %v2249_v54 = vld [vmem:[%s3690_s1 + $0x1b0] sm:$0xf]  ;;  %v2520_v55 = vld [vmem:[%s3690_s1 + $0x1b4] sm:$0xf0]  ;;  %v2186_v58 = vor.u32 %v2504_v53, %v2185_v52  ;;  %v2470_v60 = vld [vmem:[%s3690_s1 + $0x24] sm:$0xf0] }
  0x19   : > { %1231 = vmatpush.bf16.msra.mxu3 %v2266_v38  ;;  %v2113_v61 = vld [vmem:[%s3690_s1 + $0xa0] sm:$0xf]  ;;  %v2250_v62 = vor.u32 %v2520_v55, %v2249_v54  ;;  %v2486_v63 = vld [vmem:[%s3690_s1 + $0xa4] sm:$0xf0]  ;;  %v2050_v4 = vor.u32 %v2470_v60, %v2049_v59  ;;  %v2041_v5 = vld [vmem:[%s3690_s1 + $0x10] sm:$0xf] }
  0x1a   : > { %1085 = vmatpush.bf16.msra.mxu0 %v2066_v44  ;;  %v2177_v0 = vld [vmem:[%s3690_s1 + $0x120] sm:$0xf]  ;;  %v2502_v1 = vld [vmem:[%s3690_s1 + $0x124] sm:$0xf0]  ;;  %v2114_v6 = vor.u32 %v2486_v63, %v2113_v61  ;;  %v2468_v8 = vld [vmem:[%s3690_s1 + $0x14] sm:$0xf0] }
  0x1b   : > { %1134 = vmatpush.bf16.msra.mxu1 %v2130_v45  ;;  %v2241_v2 = vld [vmem:[%s3690_s1 + $0x1a0] sm:$0xf]  ;;  %v2518_v3 = vld [vmem:[%s3690_s1 + $0x1a4] sm:$0xf0]  ;;  %v2178_v7 = vor.u32 %v2502_v1, %v2177_v0  ;;  %v2105_v9 = vld [vmem:[%s3690_s1 + $0x90] sm:$0xf]  ;;  %v2042_v16 = vor.u32 %v2468_v8, %v2041_v5 }
  0x1c   : > { %1183 = vmatpush.bf16.msra.mxu2 %v2194_v46  ;;  %v2484_v10 = vld [vmem:[%s3690_s1 + $0x94] sm:$0xf0]  ;;  %v2242_v11 = vor.u32 %v2518_v3, %v2241_v2  ;;  %v2169_v12 = vld [vmem:[%s3690_s1 + $0x110] sm:$0xf]  ;;  %v2033_v17 = vld [vmem:[%s3690_s1] sm:$0xf] }
  0x1d   : > { %1232 = vmatpush.bf16.msra.mxu3 %v2258_v50  ;;  %v2500_v13 = vld [vmem:[%s3690_s1 + $0x114] sm:$0xf0]  ;;  %v2233_v14 = vld [vmem:[%s3690_s1 + $0x190] sm:$0xf]  ;;  %v2466_v18 = vld [vmem:[%s3690_s1 + $0x4] sm:$0xf0]  ;;  %v2106_v20 = vor.u32 %v2484_v10, %v2105_v9 }
  0x1e   : > { %1086 = vmatpush.bf16.msra.mxu0 %v2058_v56  ;;  %v2516_v15 = vld [vmem:[%s3690_s1 + $0x194] sm:$0xf0]  ;;  %v2097_v19 = vld [vmem:[%s3690_s1 + $0x80] sm:$0xf]  ;;  %v2170_v21 = vor.u32 %v2500_v13, %v2169_v12  ;;  %v2482_v22 = vld [vmem:[%s3690_s1 + $0x84] sm:$0xf0]  ;;  %v2034_v30 = vor.u32 %v2466_v18, %v2033_v17 }
  0x1f   : > { %1135 = vmatpush.bf16.msra.mxu1 %v2122_v57  ;;  %v2161_v23 = vld [vmem:[%s3690_s1 + $0x100] sm:$0xf]  ;;  %s3695_s29 = smov (!%p200_p3, %s1833_s29), 31  ;;  %v2234_v24 = vor.u32 %v2516_v15, %v2233_v14  ;;  %v2498_v25 = vld [vmem:[%s3690_s1 + $0x104] sm:$0xf0]  ;;  %v2098_v35 = vor.u32 %v2482_v22, %v2097_v19 }
  0x20   : > { %1184 = vmatpush.bf16.msra.mxu2 %v2186_v58  ;;  %v2225_v26 = vld [vmem:[%s3690_s1 + $0x180] sm:$0xf]  ;;  %v2514_v27 = vld [vmem:[%s3690_s1 + $0x184] sm:$0xf0]  ;;  %s2608_s25 = smul.u32 24, %s3695_s29  ;;  %v2162_v36 = vor.u32 %v2498_v25, %v2161_v23  ;;  %s1838_s9 = sshll.u32 %s3695_s29, 3 }
  0x21   : > { %1233 = vmatpush.bf16.msra.mxu3 %v2250_v62  ;;  %v2479_v28 = vld [vmem:[%s3690_s1 + $0x74] sm:$0xf]  ;;  %v2091_v29 = vld [vmem:[%s3690_s1 + $0x78] sm:$0xf0]  ;;  %v2345_v31 = vld [vmem:[%s3690_s1 + $0x270] sm:$0xf]  ;;  %v2226_v41 = vor.u32 %v2514_v27, %v2225_v26  ;;  %s3638_s13 = scalar_lea.vmem %s3693_s4, %s1838_s9 }
  0x22   : > { %1087 = vmatpush.bf16.msra.mxu0 %v2050_v4  ;;  %v2544_v32 = vld [vmem:[%s3690_s1 + $0x274] sm:$0xf0]  ;;  %v2495_v33 = vld [vmem:[%s3690_s1 + $0xf4] sm:$0xf]  ;;  %v2155_v34 = vld [vmem:[%s3690_s1 + $0xf8] sm:$0xf0]  ;;  %s2877_s14 = scalar_lea.vmem %s3689_s0, %s2608_s25  ;;  %v2094_v45 = vor.u32 %v2479_v28, %v2091_v29 }
  0x23   : > { %1136 = vmatpush.bf16.msra.mxu1 %v2114_v6  ;;  %v2409_v37 = vld [vmem:[%s3690_s1 + $0x2f0] sm:$0xf]  ;;  %v2560_v38 = vld [vmem:[%s3690_s1 + $0x2f4] sm:$0xf0]  ;;  %v2477_v39 = vld [vmem:[%s3690_s1 + $0x64] sm:$0xf]  ;;  %v2158_v51 = vor.u32 %v2495_v33, %v2155_v34  ;;  %v2346_v58 = vor.u32 %v2544_v32, %v2345_v31 }
  0x24   : > { %1185 = vmatpush.bf16.msra.mxu2 %v2178_v7  ;;  %v2083_v40 = vld [vmem:[%s3690_s1 + $0x68] sm:$0xf0]  ;;  %v1841_v42 = vld [vmem:[%s2877_s14] sm:$0xf]  ;;  %v2420_v43 = vld [vmem:[%s2877_s14 + $0x14] sm:$0xf0]  ;;  %v2410_v59 = vor.u32 %v2560_v38, %v2409_v37 }
  0x25   : > { %1234 = vmatpush.bf16.msra.mxu3 %v2242_v11  ;;  %v2417_v44 = vld [vmem:[%s2877_s14 + $0x4] sm:$0xf]  ;;  %v2897_v47 = vor.u32 %v2420_v43, %v1841_v42  ;;  %v1843_v48 = vld [vmem:[%s2877_s14 + $0x18] sm:$0xf0]  ;;  %v1849_v49 = vld [vmem:[%s2877_s14 + $0x8] sm:$0xf]  ;;  %v2086_v60 = vor.u32 %v2477_v39, %v2083_v40 }
  0x26   : > { %1088 = vmatpush.bf16.msra.mxu0 %v2042_v16  ;;  %v2493_v46 = vld [vmem:[%s3690_s1 + $0xe4] sm:$0xf]  ;;  %v2421_v50 = vld [vmem:[%s2877_s14 + $0x1c] sm:$0xf0]  ;;  %v2902_v52 = vor.u32 %v2417_v44, %v1843_v48  ;;  %v2418_v54 = vld [vmem:[%s2877_s14 + $0xc] sm:$0xf] }
  0x27   : > { %1137 = vmatpush.bf16.msra.mxu1 %v2106_v20  ;;  %v2904_v53 = vor.u32 %v2421_v50, %v1849_v49  ;;  %v1851_v55 = vld [vmem:[%s2877_s14 + $0x20] sm:$0xf0]  ;;  %v2147_v56 = vld [vmem:[%s3690_s1 + $0xe8] sm:$0xf0]  ;;  %v2337_v61 = vld [vmem:[%s3690_s1 + $0x260] sm:$0xf] }
  0x28   : > { %1186 = vmatpush.bf16.msra.mxu2 %v2170_v21  ;;  %v2911_v57 = vor.u32 %v2418_v54, %v1851_v55  ;;  %v2542_v62 = vld [vmem:[%s3690_s1 + $0x264] sm:$0xf0]  ;;  %v2150_v63 = vor.u32 %v2493_v46, %v2147_v56  ;;  %v2401_v0 = vld [vmem:[%s3690_s1 + $0x2e0] sm:$0xf]  ;;  %v2475_v4 = vld [vmem:[%s3690_s1 + $0x54] sm:$0xf] }
  0x29   : > { %1235 = vmatpush.bf16.msra.mxu3 %v2234_v24  ;;  %v2558_v1 = vld [vmem:[%s3690_s1 + $0x2e4] sm:$0xf0]  ;;  %v2338_v2 = vor.u32 %v2542_v62, %v2337_v61  ;;  %v2075_v5 = vld [vmem:[%s3690_s1 + $0x58] sm:$0xf0]  ;;  %v2329_v6 = vld [vmem:[%s3690_s1 + $0x250] sm:$0xf] }
  0x2a   : > { %1089 = vmatpush.bf16.msra.mxu0 %v2034_v30  ;;  %v2402_v3 = vor.u32 %v2558_v1, %v2401_v0  ;;  %v2078_v7 = vor.u32 %v2475_v4, %v2075_v5  ;;  %v2540_v8 = vld [vmem:[%s3690_s1 + $0x254] sm:$0xf0]  ;;  %v2491_v9 = vld [vmem:[%s3690_s1 + $0xd4] sm:$0xf]  ;;  %v2139_v10 = vld [vmem:[%s3690_s1 + $0xd8] sm:$0xf0] }
  0x2b   : > { %1138 = vmatpush.bf16.msra.mxu1 %v2098_v35  ;;  %v2142_v11 = vor.u32 %v2491_v9, %v2139_v10  ;;  %v2393_v12 = vld [vmem:[%s3690_s1 + $0x2d0] sm:$0xf]  ;;  %v2556_v13 = vld [vmem:[%s3690_s1 + $0x2d4] sm:$0xf0]  ;;  %v2330_v14 = vor.u32 %v2540_v8, %v2329_v6  ;;  %v2426_v17 = vld [vmem:[%s2877_s14 + $0x44] sm:$0xf0] }
  0x2c   : > { %1187 = vmatpush.bf16.msra.mxu2 %v2162_v36  ;;  %v2394_v15 = vor.u32 %v2556_v13, %v2393_v12  ;;  %v1865_v16 = vld [vmem:[%s2877_s14 + $0x30] sm:$0xf]  ;;  %v2423_v18 = vld [vmem:[%s2877_s14 + $0x34] sm:$0xf]  ;;  %v1867_v19 = vld [vmem:[%s2877_s14 + $0x48] sm:$0xf0] }
  0x2d   : > { %1236 = vmatpush.bf16.msra.mxu3 %v2226_v41  ;;  %1090 = vmatmul.bf16.vlgmr.msra.gmra.mxu0 %v2897_v47  ;;  %v1873_v20 = vld [vmem:[%s2877_s14 + $0x38] sm:$0xf]  ;;  %v2427_v21 = vld [vmem:[%s2877_s14 + $0x4c] sm:$0xf0]  ;;  %v2424_v22 = vld [vmem:[%s2877_s14 + $0x3c] sm:$0xf]  ;;  %v2961_v24 = vor.u32 %v2426_v17, %v1865_v16  ;;  %v2963_v25 = vor.u32 %v2423_v18, %v1867_v19 }
  0x2e   : > { %1139 = vmatmul.bf16.vlgmr.msra.gmra.mxu1 %v2902_v52  ;;  %1278 = vmatpush.bf16.msrb.mxu0 %v2346_v58  ;;  %v1875_v23 = vld [vmem:[%s2877_s14 + $0x50] sm:$0xf0]  ;;  %v2965_v26 = vor.u32 %v2427_v21, %v1873_v20  ;;  %v2473_v28 = vld [vmem:[%s3690_s1 + $0x44] sm:$0xf]  ;;  %v2067_v29 = vld [vmem:[%s3690_s1 + $0x48] sm:$0xf0] }
  0x2f   : > { %1188 = vmatmul.bf16.vlgmr.msra.gmra.mxu2 %v2904_v53  ;;  %1327 = vmatpush.bf16.msrb.mxu1 %v2410_v59  ;;  %v2967_v27 = vor.u32 %v2424_v22, %v1875_v23  ;;  %v2321_v30 = vld [vmem:[%s3690_s1 + $0x240] sm:$0xf]  ;;  %v2070_v31 = vor.u32 %v2473_v28, %v2067_v29  ;;  %v2538_v32 = vld [vmem:[%s3690_s1 + $0x244] sm:$0xf0]  ;;  %v2489_v33 = vld [vmem:[%s3690_s1 + $0xc4] sm:$0xf] }
  0x30   : > { %1376 = vmatpush.bf16.msrb.mxu2 %v2094_v45  ;;  %1237 = vmatmul.bf16.vlgmr.msra.gmra.mxu3 %v2911_v57  ;;  %v2131_v34 = vld [vmem:[%s3690_s1 + $0xc8] sm:$0xf0]  ;;  %v2322_v35 = vor.u32 %v2538_v32, %v2321_v30  ;;  %v2385_v37 = vld [vmem:[%s3690_s1 + $0x2c0] sm:$0xf]  ;;  %v2554_v38 = vld [vmem:[%s3690_s1 + $0x2c4] sm:$0xf0] }
  0x31   : > { %1425 = vmatpush.bf16.msrb.mxu3 %v2158_v51  ;;  %v2134_v36 = vor.u32 %v2489_v33, %v2131_v34  ;;  %v2386_v39 = vor.u32 %v2554_v38, %v2385_v37  ;;  %v1889_v40 = vld [vmem:[%s2877_s14 + $0x60] sm:$0xf]  ;;  %v2432_v41 = vld [vmem:[%s2877_s14 + $0x74] sm:$0xf0]  ;;  %v2429_v42 = vld [vmem:[%s2877_s14 + $0x64] sm:$0xf] }
  0x32   : > { %1279 = vmatpush.bf16.msrb.mxu0 %v2338_v2  ;;  %v1891_v43 = vld [vmem:[%s2877_s14 + $0x78] sm:$0xf0]  ;;  %v1897_v44 = vld [vmem:[%s2877_s14 + $0x68] sm:$0xf]  ;;  %v2433_v45 = vld [vmem:[%s2877_s14 + $0x7c] sm:$0xf0]  ;;  %v3005_v49 = vor.u32 %v2432_v41, %v1889_v40 }
  0x33   : > { %1328 = vmatpush.bf16.msrb.mxu1 %v2402_v3  ;;  %v2430_v46 = vld [vmem:[%s2877_s14 + $0x6c] sm:$0xf]  ;;  %v1899_v48 = vld [vmem:[%s2877_s14 + $0x80] sm:$0xf0]  ;;  %v3007_v50 = vor.u32 %v2429_v42, %v1891_v43  ;;  %v3009_v51 = vor.u32 %v2433_v45, %v1897_v44  ;;  %v2471_v55 = vld [vmem:[%s3690_s1 + $0x34] sm:$0xf] }
  0x34   : > { %1377 = vmatpush.bf16.msrb.mxu2 %v2086_v60  ;;  %v3011_v54 = vor.u32 %v2430_v46, %v1899_v48  ;;  %v2059_v56 = vld [vmem:[%s3690_s1 + $0x38] sm:$0xf0]  ;;  %v2313_v58 = vld [vmem:[%s3690_s1 + $0x230] sm:$0xf]  ;;  %v2536_v60 = vld [vmem:[%s3690_s1 + $0x234] sm:$0xf0] }
  0x35   : > { %1426 = vmatpush.bf16.msrb.mxu3 %v2150_v63  ;;  %v2062_v59 = vor.u32 %v2471_v55, %v2059_v56  ;;  %v2487_v61 = vld [vmem:[%s3690_s1 + $0xb4] sm:$0xf]  ;;  %v2123_v62 = vld [vmem:[%s3690_s1 + $0xb8] sm:$0xf0]  ;;  %v2314_v63 = vor.u32 %v2536_v60, %v2313_v58  ;;  %v2377_v1 = vld [vmem:[%s3690_s1 + $0x2b0] sm:$0xf] }
  0x36   : > { %1280 = vmatpush.bf16.msrb.mxu0 %v2330_v14  ;;  %v2126_v0 = vor.u32 %v2487_v61, %v2123_v62  ;;  %v2552_v2 = vld [vmem:[%s3690_s1 + $0x2b4] sm:$0xf0]  ;;  %v1913_v4 = vld [vmem:[%s2877_s14 + $0x90] sm:$0xf]  ;;  %v2438_v5 = vld [vmem:[%s2877_s14 + $0xa4] sm:$0xf0] }
  0x37   : > { %1329 = vmatpush.bf16.msrb.mxu1 %v2394_v15  ;;  %v2378_v3 = vor.u32 %v2552_v2, %v2377_v1  ;;  %v2435_v6 = vld [vmem:[%s2877_s14 + $0x94] sm:$0xf]  ;;  %v1921_v8 = vld [vmem:[%s2877_s14 + $0x98] sm:$0xf]  ;;  %v2439_v9 = vld [vmem:[%s2877_s14 + $0xac] sm:$0xf0]  ;;  %v3049_v12 = vor.u32 %v2438_v5, %v1913_v4 }
  0x38   : > { %1378 = vmatpush.bf16.msrb.mxu2 %v2078_v7  ;;  %v1915_v7 = vld [vmem:[%s2877_s14 + $0xa8] sm:$0xf0]  ;;  %v2436_v10 = vld [vmem:[%s2877_s14 + $0x9c] sm:$0xf]  ;;  %v3053_v14 = vor.u32 %v2439_v9, %v1921_v8  ;;  %v2469_v16 = vld [vmem:[%s3690_s1 + $0x24] sm:$0xf] }
  0x39   : > { %1427 = vmatpush.bf16.msrb.mxu3 %v2142_v11  ;;  %v1923_v11 = vld [vmem:[%s2877_s14 + $0xb0] sm:$0xf0]  ;;  %v3051_v13 = vor.u32 %v2435_v6, %v1915_v7  ;;  %v2051_v17 = vld [vmem:[%s3690_s1 + $0x28] sm:$0xf0]  ;;  %v2305_v18 = vld [vmem:[%s3690_s1 + $0x220] sm:$0xf] }
  0x3a   : > { %1281 = vmatpush.bf16.msrb.mxu0 %v2322_v35  ;;  %v3055_v15 = vor.u32 %v2436_v10, %v1923_v11  ;;  %v2054_v19 = vor.u32 %v2469_v16, %v2051_v17  ;;  %v2534_v20 = vld [vmem:[%s3690_s1 + $0x224] sm:$0xf0]  ;;  %v2485_v21 = vld [vmem:[%s3690_s1 + $0xa4] sm:$0xf]  ;;  %v2115_v22 = vld [vmem:[%s3690_s1 + $0xa8] sm:$0xf0] }
  0x3b   : > { %1330 = vmatpush.bf16.msrb.mxu1 %v2386_v39  ;;  %v2306_v23 = vor.u32 %v2534_v20, %v2305_v18  ;;  %v2118_v28 = vor.u32 %v2485_v21, %v2115_v22  ;;  %v2369_v29 = vld [vmem:[%s3690_s1 + $0x2a0] sm:$0xf]  ;;  %v2550_v30 = vld [vmem:[%s3690_s1 + $0x2a4] sm:$0xf0]  ;;  %v2444_v33 = vld [vmem:[%s2877_s14 + $0xd4] sm:$0xf0] }
  0x3c   : > { %1379 = vmatpush.bf16.msrb.mxu2 %v2070_v31  ;;  %v2370_v31 = vor.u32 %v2550_v30, %v2369_v29  ;;  %v1937_v32 = vld [vmem:[%s2877_s14 + $0xc0] sm:$0xf]  ;;  %v2441_v34 = vld [vmem:[%s2877_s14 + $0xc4] sm:$0xf]  ;;  %v1939_v35 = vld [vmem:[%s2877_s14 + $0xd8] sm:$0xf0] }
  0x3d   : > { %1095 = vmatmul.bf16.gmra.mxu0 %v2961_v24  ;;  %1428 = vmatpush.bf16.msrb.mxu3 %v2134_v36  ;;  %v1945_v36 = vld [vmem:[%s2877_s14 + $0xc8] sm:$0xf]  ;;  %v2445_v37 = vld [vmem:[%s2877_s14 + $0xdc] sm:$0xf0]  ;;  %v2442_v38 = vld [vmem:[%s2877_s14 + $0xcc] sm:$0xf]  ;;  %v3093_v40 = vor.u32 %v2444_v33, %v1937_v32  ;;  %v3095_v41 = vor.u32 %v2441_v34, %v1939_v35 }
  0x3e   : > { %1144 = vmatmul.bf16.gmra.mxu1 %v2963_v25  ;;  %1282 = vmatpush.bf16.msrb.mxu0 %v2314_v63  ;;  %v1947_v39 = vld [vmem:[%s2877_s14 + $0xe0] sm:$0xf0]  ;;  %v3097_v42 = vor.u32 %v2445_v37, %v1945_v36  ;;  %v2467_v44 = vld [vmem:[%s3690_s1 + $0x14] sm:$0xf]  ;;  %v2043_v45 = vld [vmem:[%s3690_s1 + $0x18] sm:$0xf0] }
  0x3f   : > { %1193 = vmatmul.bf16.gmra.mxu2 %v2965_v26  ;;  %1331 = vmatpush.bf16.msrb.mxu1 %v2378_v3  ;;  %v3099_v43 = vor.u32 %v2442_v38, %v1947_v39  ;;  %v2297_v46 = vld [vmem:[%s3690_s1 + $0x210] sm:$0xf]  ;;  %v2046_v48 = vor.u32 %v2467_v44, %v2043_v45  ;;  %v2532_v55 = vld [vmem:[%s3690_s1 + $0x214] sm:$0xf0]  ;;  %v2483_v56 = vld [vmem:[%s3690_s1 + $0x94] sm:$0xf] }
  0x40   : > { %1242 = vmatmul.bf16.gmra.mxu3 %v2967_v27  ;;  %1380 = vmatpush.bf16.msrb.mxu2 %v2062_v59  ;;  %v2107_v58 = vld [vmem:[%s3690_s1 + $0x98] sm:$0xf0]  ;;  %v2298_v59 = vor.u32 %v2532_v55, %v2297_v46  ;;  %v2361_v61 = vld [vmem:[%s3690_s1 + $0x290] sm:$0xf]  ;;  %v2548_v62 = vld [vmem:[%s3690_s1 + $0x294] sm:$0xf0] }
  0x41   : > { %1429 = vmatpush.bf16.msrb.mxu3 %v2126_v0  ;;  %v2110_v60 = vor.u32 %v2483_v56, %v2107_v58  ;;  %v2362_v63 = vor.u32 %v2548_v62, %v2361_v61  ;;  %v1961_v0 = vld [vmem:[%s2877_s14 + $0xf0] sm:$0xf]  ;;  %v2450_v1 = vld [vmem:[%s2877_s14 + $0x104] sm:$0xf0]  ;;  %v2447_v2 = vld [vmem:[%s2877_s14 + $0xf4] sm:$0xf] }
  0x42   : > { %1283 = vmatpush.bf16.msrb.mxu0 %v2306_v23  ;;  %v1963_v3 = vld [vmem:[%s2877_s14 + $0x108] sm:$0xf0]  ;;  %v1969_v4 = vld [vmem:[%s2877_s14 + $0xf8] sm:$0xf]  ;;  %v2451_v5 = vld [vmem:[%s2877_s14 + $0x10c] sm:$0xf0]  ;;  %v3137_v8 = vor.u32 %v2450_v1, %v1961_v0 }
  0x43   : > { %1332 = vmatpush.bf16.msrb.mxu1 %v2370_v31  ;;  %v2448_v6 = vld [vmem:[%s2877_s14 + $0xfc] sm:$0xf]  ;;  %v1971_v7 = vld [vmem:[%s2877_s14 + $0x110] sm:$0xf0]  ;;  %v3139_v9 = vor.u32 %v2447_v2, %v1963_v3  ;;  %v3141_v10 = vor.u32 %v2451_v5, %v1969_v4  ;;  %v2465_v16 = vld [vmem:[%s3690_s1 + $0x4] sm:$0xf] }
  0x44   : > { %1381 = vmatpush.bf16.msrb.mxu2 %v2054_v19  ;;  %v3143_v11 = vor.u32 %v2448_v6, %v1971_v7  ;;  %v2035_v17 = vld [vmem:[%s3690_s1 + $0x8] sm:$0xf0]  ;;  %v2289_v18 = vld [vmem:[%s3690_s1 + $0x200] sm:$0xf]  ;;  %v2530_v20 = vld [vmem:[%s3690_s1 + $0x204] sm:$0xf0] }
  0x45   : > { %1430 = vmatpush.bf16.msrb.mxu3 %v2118_v28  ;;  %v2038_v19 = vor.u32 %v2465_v16, %v2035_v17  ;;  %v2481_v21 = vld [vmem:[%s3690_s1 + $0x84] sm:$0xf]  ;;  %v2099_v22 = vld [vmem:[%s3690_s1 + $0x88] sm:$0xf0]  ;;  %v2290_v23 = vor.u32 %v2530_v20, %v2289_v18  ;;  %v2353_v29 = vld [vmem:[%s3690_s1 + $0x280] sm:$0xf] }
  0x46   : > { %1284 = vmatpush.bf16.msrb.mxu0 %v2298_v59  ;;  %v2102_v28 = vor.u32 %v2481_v21, %v2099_v22  ;;  %v2546_v30 = vld [vmem:[%s3690_s1 + $0x284] sm:$0xf0]  ;;  %v1985_v32 = vld [vmem:[%s2877_s14 + $0x120] sm:$0xf]  ;;  %v2456_v33 = vld [vmem:[%s2877_s14 + $0x134] sm:$0xf0] }
  0x47   : > { %1333 = vmatpush.bf16.msrb.mxu1 %v2362_v63  ;;  %v2354_v31 = vor.u32 %v2546_v30, %v2353_v29  ;;  %v2453_v34 = vld [vmem:[%s2877_s14 + $0x124] sm:$0xf]  ;;  %v1987_v35 = vld [vmem:[%s2877_s14 + $0x138] sm:$0xf0]  ;;  %v1993_v36 = vld [vmem:[%s2877_s14 + $0x128] sm:$0xf]  ;;  %v3181_v44 = vor.u32 %v2456_v33, %v1985_v32 }
  0x48   : > { %1382 = vmatpush.bf16.msrb.mxu2 %v2046_v48  ;;  %v2457_v37 = vld [vmem:[%s2877_s14 + $0x13c] sm:$0xf0]  ;;  %v2454_v38 = vld [vmem:[%s2877_s14 + $0x12c] sm:$0xf]  ;;  %v1995_v39 = vld [vmem:[%s2877_s14 + $0x140] sm:$0xf0]  ;;  %v3183_v45 = vor.u32 %v2453_v34, %v1987_v35 }
  0x49   : > { %1431 = vmatpush.bf16.msrb.mxu3 %v2110_v60  ;;  %v3185_v46 = vor.u32 %v2457_v37, %v1993_v36  ;;  %v3187_v48 = vor.u32 %v2454_v38, %v1995_v39  ;;  %v2543_v55 = vld [vmem:[%s3690_s1 + $0x274] sm:$0xf]  ;;  %v2347_v56 = vld [vmem:[%s3690_s1 + $0x278] sm:$0xf0]  ;;  %v2009_v4 = vld [vmem:[%s2877_s14 + $0x150] sm:$0xf] }
  0x4a   : > { %1285 = vmatpush.bf16.msrb.mxu0 %v2290_v23  ;;  %v2511_v58 = vld [vmem:[%s3690_s1 + $0x174] sm:$0xf]  ;;  %v2350_v59 = vor.u32 %v2543_v55, %v2347_v56  ;;  %v2219_v60 = vld [vmem:[%s3690_s1 + $0x178] sm:$0xf0]  ;;  %v2462_v5 = vld [vmem:[%s2877_s14 + $0x164] sm:$0xf0] }
  0x4b   : > { %1334 = vmatpush.bf16.msrb.mxu1 %v2354_v31  ;;  %v2559_v61 = vld [vmem:[%s3690_s1 + $0x2f4] sm:$0xf]  ;;  %v2411_v62 = vld [vmem:[%s3690_s1 + $0x2f8] sm:$0xf0]  ;;  %v2222_v63 = vor.u32 %v2511_v58, %v2219_v60  ;;  %v2011_v7 = vld [vmem:[%s2877_s14 + $0x168] sm:$0xf0]  ;;  %v3225_v20 = vor.u32 %v2462_v5, %v2009_v4 }
  0x4c   : > { %1383 = vmatpush.bf16.msrb.mxu2 %v2038_v19  ;;  %v2414_v0 = vor.u32 %v2559_v61, %v2411_v62  ;;  %v2527_v1 = vld [vmem:[%s3690_s1 + $0x1f4] sm:$0xf]  ;;  %v2283_v2 = vld [vmem:[%s3690_s1 + $0x1f8] sm:$0xf0]  ;;  %v2017_v16 = vld [vmem:[%s2877_s14 + $0x158] sm:$0xf] }
  0x4d   : > { %1100 = vmatmul.bf16.gmra.mxu0 %v3005_v49  ;;  %1432 = vmatpush.bf16.msrb.mxu3 %v2102_v28  ;;  %v2286_v3 = vor.u32 %v2527_v1, %v2283_v2  ;;  %v2459_v6 = vld [vmem:[%s2877_s14 + $0x154] sm:$0xf]  ;;  %v2463_v17 = vld [vmem:[%s2877_s14 + $0x16c] sm:$0xf0]  ;;  %v2460_v18 = vld [vmem:[%s2877_s14 + $0x15c] sm:$0xf] }
  0x4e   : > { %1149 = vmatmul.bf16.gmra.mxu1 %v3007_v50  ;;  %1474 = vmatpush.bf16.msra.mxu0 %v2222_v63  ;;  %v2019_v19 = vld [vmem:[%s2877_s14 + $0x170] sm:$0xf0]  ;;  %v3227_v21 = vor.u32 %v2459_v6, %v2011_v7  ;;  %v3229_v22 = vor.u32 %v2463_v17, %v2017_v16  ;;  %v2541_v28 = vld [vmem:[%s3690_s1 + $0x264] sm:$0xf]  ;;  %v2339_v29 = vld [vmem:[%s3690_s1 + $0x268] sm:$0xf0] }
  0x4f   : > { %1198 = vmatmul.bf16.gmra.mxu2 %v3009_v51  ;;  %1523 = vmatpush.bf16.msra.mxu1 %v2286_v3  ;;  %v3231_v23 = vor.u32 %v2460_v18, %v2019_v19  ;;  %v2509_v30 = vld [vmem:[%s3690_s1 + $0x164] sm:$0xf]  ;;  %v2342_v31 = vor.u32 %v2541_v28, %v2339_v29  ;;  %v2211_v32 = vld [vmem:[%s3690_s1 + $0x168] sm:$0xf0]  ;;  %v1857_v55 = vld [vmem:[%s2877_s14 + $0x10] sm:$0xf] }
  0x50   : > { %1247 = vmatmul.bf16.gmra.mxu3 %v3011_v54  ;;  %1572 = vmatpush.bf16.msra.mxu2 %v2350_v59  ;;  %v2557_v33 = vld [vmem:[%s3690_s1 + $0x2e4] sm:$0xf]  ;;  %v2403_v34 = vld [vmem:[%s3690_s1 + $0x2e8] sm:$0xf0]  ;;  %v2214_v35 = vor.u32 %v2509_v30, %v2211_v32  ;;  %v2422_v56 = vld [vmem:[%s2877_s14 + $0x24] sm:$0xf0] }
  0x51   : > { %1621 = vmatpush.bf16.msra.mxu3 %v2414_v0  ;;  %v2406_v36 = vor.u32 %v2557_v33, %v2403_v34  ;;  %v2525_v37 = vld [vmem:[%s3690_s1 + $0x1e4] sm:$0xf]  ;;  %v2275_v38 = vld [vmem:[%s3690_s1 + $0x1e8] sm:$0xf0]  ;;  %v2419_v58 = vld [vmem:[%s2877_s14 + $0x14] sm:$0xf]  ;;  %v3265_v60 = vor.u32 %v2422_v56, %v1857_v55 }
  0x52   : > { %1475 = vmatpush.bf16.msra.mxu0 %v2214_v35  ;;  %v2278_v39 = vor.u32 %v2525_v37, %v2275_v38  ;;  %v1859_v59 = vld [vmem:[%s2877_s14 + $0x28] sm:$0xf0]  ;;  %v2539_v1 = vld [vmem:[%s3690_s1 + $0x254] sm:$0xf]  ;;  %v2331_v2 = vld [vmem:[%s3690_s1 + $0x258] sm:$0xf0] }
  0x53   : > { %v3267_v62 = vor.u32 %v2419_v58, %v1859_v59  ;;  %v2507_v3 = vld [vmem:[%s3690_s1 + $0x154] sm:$0xf]  ;;  %v2334_v4 = vor.u32 %v2539_v1, %v2331_v2  ;;  %v2203_v5 = vld [vmem:[%s3690_s1 + $0x158] sm:$0xf0]  ;;  %v1881_v34 = vld [vmem:[%s2877_s14 + $0x40] sm:$0xf] }
  0x54   : > { %1573 = vmatpush.bf16.msra.mxu2 %v2342_v31  ;;  %1524 = vmatpush.bf16.msra.mxu1 %v2278_v39  ;;  %v2206_v7 = vor.u32 %v2507_v3, %v2203_v5  ;;  %v2523_v31 = vld [vmem:[%s3690_s1 + $0x1d4] sm:$0xf]  ;;  %v2267_v32 = vld [vmem:[%s3690_s1 + $0x1d8] sm:$0xf0]  ;;  %v2428_v35 = vld [vmem:[%s2877_s14 + $0x54] sm:$0xf0] }
  0x55   : > { %1622 = vmatpush.bf16.msra.mxu3 %v2406_v36  ;;  %v2270_v33 = vor.u32 %v2523_v31, %v2267_v32  ;;  %v2425_v36 = vld [vmem:[%s2877_s14 + $0x44] sm:$0xf]  ;;  %v1883_v37 = vld [vmem:[%s2877_s14 + $0x58] sm:$0xf0]  ;;  %v3303_v39 = vor.u32 %v2428_v35, %v1881_v34  ;;  %v2323_v2 = vld [vmem:[%s3690_s1 + $0x248] sm:$0xf0] }
  0x56   : > { %1476 = vmatpush.bf16.msra.mxu0 %v2206_v7  ;;  %v3305_v59 = vor.u32 %v2425_v36, %v1883_v37  ;;  %v2537_v1 = vld [vmem:[%s3690_s1 + $0x244] sm:$0xf]  ;;  %v2195_v5 = vld [vmem:[%s3690_s1 + $0x148] sm:$0xf0]  ;;  %v2434_v34 = vld [vmem:[%s2877_s14 + $0x84] sm:$0xf0] }
  0x57   : > { %v2505_v3 = vld [vmem:[%s3690_s1 + $0x144] sm:$0xf]  ;;  %v2259_v31 = vld [vmem:[%s3690_s1 + $0x1c8] sm:$0xf0]  ;;  %v2431_v35 = vld [vmem:[%s2877_s14 + $0x74] sm:$0xf] }
  0x58   : > { %1574 = vmatpush.bf16.msra.mxu2 %v2334_v4  ;;  %1525 = vmatpush.bf16.msra.mxu1 %v2270_v33  ;;  %v2326_v4 = vor.u32 %v2537_v1, %v2323_v2  ;;  %v1905_v33 = vld [vmem:[%s2877_s14 + $0x70] sm:$0xf]  ;;  %v1907_v36 = vld [vmem:[%s2877_s14 + $0x88] sm:$0xf0] }
  0x5c   : > { %1575 = vmatpush.bf16.msra.mxu2 %v2326_v4  ;;  %v2315_v4 = vld [vmem:[%s3690_s1 + $0x238] sm:$0xf0] }
  0x5d   : > { %1105 = vmatmul.bf16.gmra.mxu0 %v3049_v12 }
  0x5e   : > { %1154 = vmatmul.bf16.gmra.mxu1 %v3051_v13 }
  0x5f   : > { %1203 = vmatmul.bf16.gmra.mxu2 %v3053_v14 }
  0x60   : > { %1252 = vmatmul.bf16.gmra.mxu3 %v3055_v15 }
  0x6d   : > { %1110 = vmatmul.bf16.gmra.mxu0 %v3093_v40 }
  0x6e   : > { %1159 = vmatmul.bf16.gmra.mxu1 %v3095_v41 }
  0x6f   : > { %1208 = vmatmul.bf16.gmra.mxu2 %v3097_v42 }
  0x70   : > { %1257 = vmatmul.bf16.gmra.mxu3 %v3099_v43 }
  0x7d   : > { %1115 = vmatmul.bf16.gmra.mxu0 %v3137_v8 }
  0x7e   : > { %1164 = vmatmul.bf16.gmra.mxu1 %v3139_v9 }
  0x7f   : > { %1213 = vmatmul.bf16.gmra.mxu2 %v3141_v10 }
  0x80   : > { %1262 = vmatmul.bf16.gmra.mxu3 %v3143_v11 }
  0x8d   : > { %1120 = vmatmul.bf16.gmra.mxu0 %v3181_v44 }
  0x8e   : > { %1169 = vmatmul.bf16.gmra.mxu1 %v3183_v45 }
  0x8f   : > { %1218 = vmatmul.bf16.gmra.mxu2 %v3185_v46 }
  0x90   : > { %1267 = vmatmul.bf16.gmra.mxu3 %v3187_v48 }
  0x9d   : > { %1125 = vmatmul.bf16.gmra.mxu0 %v3225_v20 }
  0x9e   : > { %1174 = vmatmul.bf16.gmra.mxu1 %v3227_v21 }
  0x9f   : > { %1223 = vmatmul.bf16.gmra.mxu2 %v3229_v22 }
  0xa0   : > { %1272 = vmatmul.bf16.gmra.mxu3 %v3231_v23 }
  0xaa   : > { %v1091_v61 = vpop.f32.mrf.mxu0 }
  0xab   : > { %v1140_v63 = vpop.f32.mrf.mxu1 }
  0xac   : > { %v1141_v0 = vadd.f32 %v1140_v63, %v1091_v61 }
  0xad   : > { %1286 = vmatmul.bf16.vlgmr.msrb.gmra.mxu0 %v3265_v60 }
  0xae   : > { %1335 = vmatmul.bf16.vlgmr.msrb.gmra.mxu1 %v3267_v62 }
  0xaf   : > { %1384 = vmatmul.bf16.vlgmr.msrb.gmra.mxu2 %v2897_v47  ;;  %v2555_v47 = vld [vmem:[%s3690_s1 + $0x2d4] sm:$0xf] }
  0xb0   : > { %1433 = vmatmul.bf16.vlgmr.msrb.gmra.mxu3 %v2902_v52  ;;  %v2395_v52 = vld [vmem:[%s3690_s1 + $0x2d8] sm:$0xf0] }
  0xb1   : > { %v2398_v16 = vor.u32 %v2555_v47, %v2395_v52  ;;  %v2198_v52 = vor.u32 %v2505_v3, %v2195_v5  ;;  %v2535_v3 = vld [vmem:[%s3690_s1 + $0x234] sm:$0xf] }
  0xb2   : > { %v1189_v6 = vpop.f32.mrf.mxu2  ;;  %v1093_v19 = vpop.f32.mrf.mxu0  ;;  %v2503_v5 = vld [vmem:[%s3690_s1 + $0x134] sm:$0xf] }
  0xb3   : > { %v1190_v17 = vadd.f32 %v1189_v6, %v1141_v0  ;;  %v1238_v18 = vpop.f32.mrf.mxu3  ;;  %v1142_v28 = vpop.f32.mrf.mxu1  ;;  %1623 = vmatpush.bf16.msra.mxu3 %v2398_v16  ;;  %1477 = vmatpush.bf16.msra.mxu0 %v2198_v52 }
  0xb4   : > { %v1143_v30 = vadd.f32 %v1142_v28, %v1093_v19 }
  0xb5   : > { %v3291_v29 = vadd.f32 %v1238_v18, %v1190_v17 }
  0xba   : > { %v1191_v38 = vpop.f32.mrf.mxu2  ;;  %v1096_v58 = vpop.f32.mrf.mxu0 }
  0xbb   : > { %v1192_v55 = vadd.f32 %v1191_v38, %v1143_v30  ;;  %v1240_v56 = vpop.f32.mrf.mxu3  ;;  %v1145_v61 = vpop.f32.mrf.mxu1  ;;  %v2521_v30 = vld [vmem:[%s3690_s1 + $0x1c4] sm:$0xf]  ;;  %v3343_v38 = vor.u32 %v2434_v34, %v1905_v33  ;;  %v1929_v34 = vld [vmem:[%s2877_s14 + $0xa0] sm:$0xf] }
  0xbc   : > { %v1146_v0 = vadd.f32 %v1145_v61, %v1096_v58  ;;  %v2262_v32 = vor.u32 %v2521_v30, %v2259_v31  ;;  %v3345_v61 = vor.u32 %v2431_v35, %v1907_v36  ;;  %v2519_v31 = vld [vmem:[%s3690_s1 + $0x1b4] sm:$0xf]  ;;  %v2440_v35 = vld [vmem:[%s2877_s14 + $0xb4] sm:$0xf0]  ;;  %v2437_v36 = vld [vmem:[%s2877_s14 + $0xa4] sm:$0xf] }
  0xbd   : > { %v3307_v63 = vadd.f32 %v1240_v56, %v1192_v55  ;;  %1291 = vmatmul.bf16.gmra.mxu0 %v3303_v39 }
  0xbe   : > { %1340 = vmatmul.bf16.gmra.mxu1 %v3305_v59 }
  0xbf   : > { %1389 = vmatmul.bf16.gmra.mxu2 %v2961_v24  ;;  %v2553_v24 = vld [vmem:[%s3690_s1 + $0x2c4] sm:$0xf]  ;;  %1526 = vmatpush.bf16.msra.mxu1 %v2262_v32  ;;  %v2251_v32 = vld [vmem:[%s3690_s1 + $0x1b8] sm:$0xf0] }
  0xc0   : > { %1438 = vmatmul.bf16.gmra.mxu3 %v2963_v25  ;;  %v2387_v25 = vld [vmem:[%s3690_s1 + $0x2c8] sm:$0xf0]  ;;  %v2254_v33 = vor.u32 %v2519_v31, %v2251_v32 }
  0xc1   : > { %v2390_v6 = vor.u32 %v2553_v24, %v2387_v25  ;;  %v2318_v24 = vor.u32 %v2535_v3, %v2315_v4  ;;  %v2187_v25 = vld [vmem:[%s3690_s1 + $0x138] sm:$0xf0] }
  0xc2   : > { %v1194_v47 = vpop.f32.mrf.mxu2  ;;  %v1098_v17 = vpop.f32.mrf.mxu0  ;;  %v2190_v52 = vor.u32 %v2503_v5, %v2187_v25  ;;  %v2533_v25 = vld [vmem:[%s3690_s1 + $0x224] sm:$0xf] }
  0xc3   : > { %v1195_v7 = vadd.f32 %v1194_v47, %v1146_v0  ;;  %v1243_v16 = vpop.f32.mrf.mxu3  ;;  %v1147_v18 = vpop.f32.mrf.mxu1  ;;  %1624 = vmatpush.bf16.msra.mxu3 %v2390_v6  ;;  %1576 = vmatpush.bf16.msra.mxu2 %v2318_v24 }
  0xc4   : > { %v1148_v28 = vadd.f32 %v1147_v18, %v1098_v17  ;;  %1478 = vmatpush.bf16.msra.mxu0 %v2190_v52  ;;  %1527 = vmatpush.bf16.msra.mxu1 %v2254_v33  ;;  %v2179_v52 = vld [vmem:[%s3690_s1 + $0x128] sm:$0xf0] }
  0xc5   : > { %v3331_v19 = vadd.f32 %v1243_v16, %v1195_v7 }
  0xca   : > { %v1196_v37 = vpop.f32.mrf.mxu2  ;;  %v1101_v58 = vpop.f32.mrf.mxu0 }
  0xcb   : > { %v1197_v55 = vadd.f32 %v1196_v37, %v1148_v28  ;;  %v1245_v56 = vpop.f32.mrf.mxu3  ;;  %v1150_v0 = vpop.f32.mrf.mxu1  ;;  %v1931_v37 = vld [vmem:[%s2877_s14 + $0xb8] sm:$0xf0] }
  0xcc   : > { %v1151_v2 = vadd.f32 %v1150_v0, %v1101_v58  ;;  %v3385_v3 = vor.u32 %v2437_v36, %v1931_v37  ;;  %v1953_v37 = vld [vmem:[%s2877_s14 + $0xd0] sm:$0xf] }
  0xcd   : > { %v3347_v1 = vadd.f32 %v1245_v56, %v1197_v55  ;;  %1296 = vmatmul.bf16.gmra.mxu0 %v3343_v38  ;;  %v3383_v56 = vor.u32 %v2440_v35, %v1929_v34  ;;  %v2517_v34 = vld [vmem:[%s3690_s1 + $0x1a4] sm:$0xf]  ;;  %v2243_v35 = vld [vmem:[%s3690_s1 + $0x1a8] sm:$0xf0] }
  0xce   : > { %1345 = vmatmul.bf16.gmra.mxu1 %v3345_v61  ;;  %v2246_v36 = vor.u32 %v2517_v34, %v2243_v35 }
  0xcf   : > { %1394 = vmatmul.bf16.gmra.mxu2 %v3005_v49  ;;  %v2551_v49 = vld [vmem:[%s3690_s1 + $0x2b4] sm:$0xf] }
  0xd0   : > { %1443 = vmatmul.bf16.gmra.mxu3 %v3007_v50  ;;  %v2379_v50 = vld [vmem:[%s3690_s1 + $0x2b8] sm:$0xf0]  ;;  %1528 = vmatpush.bf16.msra.mxu1 %v2246_v36 }
  0xd1   : > { %v2382_v6 = vor.u32 %v2551_v49, %v2379_v50  ;;  %v2307_v49 = vld [vmem:[%s3690_s1 + $0x228] sm:$0xf0]  ;;  %v2501_v50 = vld [vmem:[%s3690_s1 + $0x124] sm:$0xf] }
  0xd2   : > { %v1199_v47 = vpop.f32.mrf.mxu2  ;;  %v1103_v17 = vpop.f32.mrf.mxu0 }
  0xd3   : > { %v1200_v7 = vadd.f32 %v1199_v47, %v1151_v2  ;;  %v1248_v16 = vpop.f32.mrf.mxu3  ;;  %v1152_v18 = vpop.f32.mrf.mxu1  ;;  %1625 = vmatpush.bf16.msra.mxu3 %v2382_v6  ;;  %v2310_v47 = vor.u32 %v2533_v25, %v2307_v49 }
  0xd4   : > { %v1153_v30 = vadd.f32 %v1152_v18, %v1103_v17 }
  0xd5   : > { %v3371_v28 = vadd.f32 %v1248_v16, %v1200_v7  ;;  %v2182_v7 = vor.u32 %v2501_v50, %v2179_v52  ;;  %1577 = vmatpush.bf16.msra.mxu2 %v2310_v47 }
  0xd7   : > { %1479 = vmatpush.bf16.msra.mxu0 %v2182_v7  ;;  %v2499_v7 = vld [vmem:[%s3690_s1 + $0x114] sm:$0xf] }
  0xda   : > { %v1201_v55 = vpop.f32.mrf.mxu2  ;;  %v1106_v2 = vpop.f32.mrf.mxu0 }
  0xdb   : > { %v1202_v58 = vadd.f32 %v1201_v55, %v1153_v30  ;;  %v1250_v0 = vpop.f32.mrf.mxu3  ;;  %v1155_v4 = vpop.f32.mrf.mxu1  ;;  %v2446_v55 = vld [vmem:[%s2877_s14 + $0xe4] sm:$0xf0] }
  0xdc   : > { %v1156_v24 = vadd.f32 %v1155_v4, %v1106_v2  ;;  %v3423_v4 = vor.u32 %v2446_v55, %v1953_v37 }
  0xdd   : > { %v3387_v5 = vadd.f32 %v1250_v0, %v1202_v58  ;;  %1301 = vmatmul.bf16.gmra.mxu0 %v3383_v56  ;;  %v2443_v58 = vld [vmem:[%s2877_s14 + $0xd4] sm:$0xf]  ;;  %v1955_v0 = vld [vmem:[%s2877_s14 + $0xe8] sm:$0xf0] }
  0xde   : > { %1350 = vmatmul.bf16.gmra.mxu1 %v3385_v3  ;;  %v3425_v50 = vor.u32 %v2443_v58, %v1955_v0  ;;  %v2515_v58 = vld [vmem:[%s3690_s1 + $0x194] sm:$0xf]  ;;  %v2235_v0 = vld [vmem:[%s3690_s1 + $0x198] sm:$0xf0] }
  0xdf   : > { %1399 = vmatmul.bf16.gmra.mxu2 %v3049_v12  ;;  %v2549_v12 = vld [vmem:[%s3690_s1 + $0x2a4] sm:$0xf] }
  0xe0   : > { %1448 = vmatmul.bf16.gmra.mxu3 %v3051_v13  ;;  %v2371_v13 = vld [vmem:[%s3690_s1 + $0x2a8] sm:$0xf0] }
  0xe1   : > { %v2374_v16 = vor.u32 %v2549_v12, %v2371_v13  ;;  %v2531_v13 = vld [vmem:[%s3690_s1 + $0x214] sm:$0xf] }
  0xe2   : > { %v1204_v6 = vpop.f32.mrf.mxu2  ;;  %v1108_v30 = vpop.f32.mrf.mxu0 }
  0xe3   : > { %v1205_v17 = vadd.f32 %v1204_v6, %v1156_v24  ;;  %v1253_v18 = vpop.f32.mrf.mxu3  ;;  %v1157_v31 = vpop.f32.mrf.mxu1  ;;  %1626 = vmatpush.bf16.msra.mxu3 %v2374_v16  ;;  %v2299_v6 = vld [vmem:[%s3690_s1 + $0x218] sm:$0xf0] }
  0xe4   : > { %v1158_v33 = vadd.f32 %v1157_v31, %v1108_v30  ;;  %v2302_v16 = vor.u32 %v2531_v13, %v2299_v6 }
  0xe5   : > { %v3411_v32 = vadd.f32 %v1253_v18, %v1205_v17  ;;  %v2171_v17 = vld [vmem:[%s3690_s1 + $0x118] sm:$0xf0] }
  0xe6   : > { %v2174_v30 = vor.u32 %v2499_v7, %v2171_v17  ;;  %1578 = vmatpush.bf16.msra.mxu2 %v2302_v16 }
  0xe8   : > { %1480 = vmatpush.bf16.msra.mxu0 %v2174_v30  ;;  %v2529_v30 = vld [vmem:[%s3690_s1 + $0x204] sm:$0xf] }
  0xea   : > { %v1206_v2 = vpop.f32.mrf.mxu2  ;;  %v1111_v49 = vpop.f32.mrf.mxu0 }
  0xeb   : > { %v1207_v24 = vadd.f32 %v1206_v2, %v1158_v33  ;;  %v1255_v25 = vpop.f32.mrf.mxu3  ;;  %v1160_v47 = vpop.f32.mrf.mxu1  ;;  %v2238_v2 = vor.u32 %v2515_v58, %v2235_v0 }
  0xec   : > { %v1161_v12 = vadd.f32 %v1160_v47, %v1111_v49  ;;  %v2449_v49 = vld [vmem:[%s2877_s14 + $0x104] sm:$0xf]  ;;  %v1979_v47 = vld [vmem:[%s2877_s14 + $0x118] sm:$0xf0] }
  0xed   : > { %v3427_v52 = vadd.f32 %v1255_v25, %v1207_v24  ;;  %1306 = vmatmul.bf16.gmra.mxu0 %v3423_v4  ;;  %v1977_v24 = vld [vmem:[%s2877_s14 + $0x100] sm:$0xf]  ;;  %v2452_v25 = vld [vmem:[%s2877_s14 + $0x114] sm:$0xf0]  ;;  %1529 = vmatpush.bf16.msra.mxu1 %v2238_v2  ;;  %v3465_v17 = vor.u32 %v2449_v49, %v1979_v47 }
  0xee   : > { %1355 = vmatmul.bf16.gmra.mxu1 %v3425_v50  ;;  %v3463_v13 = vor.u32 %v2452_v25, %v1977_v24 }
  0xef   : > { %1404 = vmatmul.bf16.gmra.mxu2 %v3093_v40  ;;  %v2547_v40 = vld [vmem:[%s3690_s1 + $0x294] sm:$0xf] }
  0xf0   : > { %1453 = vmatmul.bf16.gmra.mxu3 %v3095_v41  ;;  %v2363_v41 = vld [vmem:[%s3690_s1 + $0x298] sm:$0xf0] }
  0xf1   : > { %v2366_v31 = vor.u32 %v2547_v40, %v2363_v41 }
  0xf2   : > { %v1209_v18 = vpop.f32.mrf.mxu2  ;;  %v1113_v35 = vpop.f32.mrf.mxu0 }
  0xf3   : > { %v1210_v33 = vadd.f32 %v1209_v18, %v1161_v12  ;;  %v1258_v34 = vpop.f32.mrf.mxu3  ;;  %v1162_v36 = vpop.f32.mrf.mxu1  ;;  %1627 = vmatpush.bf16.msra.mxu3 %v2366_v31  ;;  %v2291_v31 = vld [vmem:[%s3690_s1 + $0x208] sm:$0xf0] }
  0xf4   : > { %v1163_v55 = vadd.f32 %v1162_v36, %v1113_v35  ;;  %v2163_v35 = vld [vmem:[%s3690_s1 + $0x108] sm:$0xf0] }
  0xf5   : > { %v3451_v37 = vadd.f32 %v1258_v34, %v1210_v33  ;;  %v2497_v33 = vld [vmem:[%s3690_s1 + $0x104] sm:$0xf]  ;;  %v2294_v34 = vor.u32 %v2529_v30, %v2291_v31  ;;  %v2003_v30 = vld [vmem:[%s2877_s14 + $0x148] sm:$0xf0] }
  0xf7   : > { %1579 = vmatpush.bf16.msra.mxu2 %v2294_v34 }
  0xfa   : > { %v1211_v12 = vpop.f32.mrf.mxu2  ;;  %v1116_v16 = vpop.f32.mrf.mxu0 }
  0xfb   : > { %v1212_v6 = vadd.f32 %v1211_v12, %v1163_v55  ;;  %v1260_v7 = vpop.f32.mrf.mxu3  ;;  %v1165_v40 = vpop.f32.mrf.mxu1  ;;  %v2166_v55 = vor.u32 %v2497_v33, %v2163_v35  ;;  %v2513_v12 = vld [vmem:[%s3690_s1 + $0x184] sm:$0xf] }
  0xfc   : > { %v1166_v18 = vadd.f32 %v1165_v40, %v1116_v16  ;;  %v2001_v16 = vld [vmem:[%s2877_s14 + $0x130] sm:$0xf]  ;;  %v2458_v40 = vld [vmem:[%s2877_s14 + $0x144] sm:$0xf0] }
  0xfd   : > { %v3467_v41 = vadd.f32 %v1260_v7, %v1212_v6  ;;  %1311 = vmatmul.bf16.gmra.mxu0 %v3463_v13  ;;  %v2227_v6 = vld [vmem:[%s3690_s1 + $0x188] sm:$0xf0]  ;;  %v3503_v33 = vor.u32 %v2458_v40, %v2001_v16  ;;  %v2464_v16 = vld [vmem:[%s2877_s14 + $0x174] sm:$0xf0]  ;;  %v2461_v40 = vld [vmem:[%s2877_s14 + $0x164] sm:$0xf] }
  0xfe   : > { %1360 = vmatmul.bf16.gmra.mxu1 %v3465_v17  ;;  %1481 = vmatpush.bf16.msra.mxu0 %v2166_v55  ;;  %v2230_v7 = vor.u32 %v2513_v12, %v2227_v6 }
  0xff   : > { %1409 = vmatmul.bf16.gmra.mxu2 %v3137_v8  ;;  %v2545_v8 = vld [vmem:[%s3690_s1 + $0x284] sm:$0xf] }
 0x100   : > { %1458 = vmatmul.bf16.gmra.mxu3 %v3139_v9  ;;  %v2355_v9 = vld [vmem:[%s3690_s1 + $0x288] sm:$0xf0]  ;;  %1530 = vmatpush.bf16.msra.mxu1 %v2230_v7  ;;  %v2025_v7 = vld [vmem:[%s2877_s14 + $0x160] sm:$0xf] }
 0x101   : > { %v2358_v58 = vor.u32 %v2545_v8, %v2355_v9 }
 0x102   : > { %v1214_v36 = vpop.f32.mrf.mxu2  ;;  %v1118_v24 = vpop.f32.mrf.mxu0 }
 0x103   : > { %v1215_v0 = vadd.f32 %v1214_v36, %v1166_v18  ;;  %v1263_v2 = vpop.f32.mrf.mxu3  ;;  %v1167_v25 = vpop.f32.mrf.mxu1  ;;  %1628 = vmatpush.bf16.msra.mxu3 %v2358_v58  ;;  %v2455_v18 = vld [vmem:[%s2877_s14 + $0x134] sm:$0xf] }
 0x104   : > { %v1168_v47 = vadd.f32 %v1167_v25, %v1118_v24  ;;  %v3505_v9 = vor.u32 %v2455_v18, %v2003_v30  ;;  %v2027_v18 = vld [vmem:[%s2877_s14 + $0x178] sm:$0xf0]  ;;  %s1836_s14 = sshll.u32 %s3695_s29, 2 }
 0x105   : > { %v3491_v49 = vadd.f32 %v1263_v2, %v1215_v0  ;;  %s3545_s8 = scalar_lea.vmem %s3692_s3, %s1836_s14 }
 0x10a   : > { %v1216_v31 = vpop.f32.mrf.mxu2  ;;  %v1121_v8 = vpop.f32.mrf.mxu0 }
 0x10b   : > { %v1217_v34 = vadd.f32 %v1216_v31, %v1168_v47  ;;  %v1265_v35 = vpop.f32.mrf.mxu3  ;;  %v1170_v36 = vpop.f32.mrf.mxu1  ;;  %v3519_v31 = vor.u32 %v2464_v16, %v2025_v7 }
 0x10c   : > { %v1171_v58 = vadd.f32 %v1170_v36, %v1121_v8  ;;  %v3521_v8 = vor.u32 %v2461_v40, %v2027_v18 }
 0x10d   : > { %v3507_v55 = vadd.f32 %v1265_v35, %v1217_v34  ;;  %1316 = vmatmul.bf16.gmra.mxu0 %v3503_v33 }
 0x10e   : > { %1365 = vmatmul.bf16.gmra.mxu1 %v3505_v9 }
 0x10f   : > { %1414 = vmatmul.bf16.gmra.mxu2 %v3181_v44 }
 0x110   : > { %1463 = vmatmul.bf16.gmra.mxu3 %v3183_v45 }
 0x112   : > { %v1219_v0 = vpop.f32.mrf.mxu2  ;;  %v1123_v25 = vpop.f32.mrf.mxu0 }
 0x113   : > { %v1220_v2 = vadd.f32 %v1219_v0, %v1171_v58  ;;  %v1268_v24 = vpop.f32.mrf.mxu3  ;;  %v1172_v47 = vpop.f32.mrf.mxu1 }
 0x114   : > { %v1173_v6 = vadd.f32 %v1172_v47, %v1123_v25 }
 0x115   : > { %v3513_v12 = vadd.f32 %v1268_v24, %v1220_v2 }
 0x11a   : > { %v1221_v30 = vpop.f32.mrf.mxu2  ;;  %v1126_v44 = vpop.f32.mrf.mxu0 }
 0x11b   : > { %v1222_v34 = vadd.f32 %v1221_v30, %v1173_v6  ;;  %v1270_v35 = vpop.f32.mrf.mxu3  ;;  %v1175_v45 = vpop.f32.mrf.mxu1 }
 0x11c   : > { %v1176_v58 = vadd.f32 %v1175_v45, %v1126_v44 }
 0x11d   : > { %v3523_v36 = vadd.f32 %v1270_v35, %v1222_v34  ;;  %1321 = vmatmul.bf16.gmra.mxu0 %v3519_v31 }
 0x11e   : > { %1370 = vmatmul.bf16.gmra.mxu1 %v3521_v8 }
 0x11f   : > { %1419 = vmatmul.bf16.gmra.mxu2 %v3225_v20 }
 0x120   : > { %1468 = vmatmul.bf16.gmra.mxu3 %v3227_v21 }
 0x122   : > { %v1224_v0 = vpop.f32.mrf.mxu2  ;;  %v1128_v25 = vpop.f32.mrf.mxu0 }
 0x123   : > { %v1225_v2 = vadd.f32 %v1224_v0, %v1176_v58  ;;  %v1273_v24 = vpop.f32.mrf.mxu3  ;;  %v1177_v47 = vpop.f32.mrf.mxu1 }
 0x124   : > { %v1178_v7 = vadd.f32 %v1177_v47, %v1128_v25 }
 0x125   : > { %v3529_v6 = vadd.f32 %v1273_v24, %v1225_v2 }
 0x12a   : > { %v1226_v16 = vpop.f32.mrf.mxu2  ;;  %v1287_v30 = vpop.f32.mrf.mxu0 }
 0x12b   : > { %v1227_v40 = vadd.f32 %v1226_v16, %v1178_v7  ;;  %v1275_v18 = vpop.f32.mrf.mxu3  ;;  %v1336_v34 = vpop.f32.mrf.mxu1  ;;  %v1288_v20 = vadd.f32 %v1287_v30, %v3291_v29 }
 0x12d   : > { %v3531_v35 = vadd.f32 %v1275_v18, %v1227_v40  ;;  %1482 = vmatmul.bf16.vlgmr.msra.gmra.mxu0 %v2904_v53  ;;  %v1337_v24 = vadd.f32 %v1336_v34, %v1288_v20 }
 0x12e   : > { %1531 = vmatmul.bf16.vlgmr.msra.gmra.mxu1 %v2911_v57 }
 0x12f   : > { %1580 = vmatmul.bf16.vlgmr.msra.gmra.mxu2 %v3265_v60 }
 0x130   : > { %1629 = vmatmul.bf16.vlgmr.msra.gmra.mxu3 %v3267_v62 }
 0x132   : > { %v1385_v21 = vpop.f32.mrf.mxu2  ;;  %v1289_v45 = vpop.f32.mrf.mxu0 }
 0x133   : > { %v1434_v44 = vpop.f32.mrf.mxu3  ;;  %v1290_v0 = vadd.f32 %v1289_v45, %v3307_v63  ;;  %v1338_v2 = vpop.f32.mrf.mxu1 }
 0x134   : > { %v3538_v58 = vadd.f32 %v1434_v44, %v1385_v21 }
 0x135   : > { %v1339_v25 = vadd.f32 %v1338_v2, %v1290_v0 }
 0x137   : > { %v2564_v53 = vpack.c.bf16 %v1339_v25, %v1337_v24 }
 0x139   : > { %2565 = vst [vmem:[%s3545_s8] sm:$0xff] %v2564_v53  }
 0x13a   : > { %v1387_v57 = vpop.f32.mrf.mxu2  ;;  %v1292_v62 = vpop.f32.mrf.mxu0 }
 0x13b   : > { %v1436_v60 = vpop.f32.mrf.mxu3  ;;  %v1341_v47 = vpop.f32.mrf.mxu1  ;;  %v1293_v63 = vadd.f32 %v1292_v62, %v3331_v19 }
 0x13c   : > { %v3548_v29 = vadd.f32 %v1436_v60, %v1387_v57 }
 0x13d   : > { %1487 = vmatmul.bf16.gmra.mxu0 %v2965_v26  ;;  %v1342_v20 = vadd.f32 %v1341_v47, %v1293_v63 }
 0x13e   : > { %1536 = vmatmul.bf16.gmra.mxu1 %v2967_v27 }
 0x13f   : > { %1585 = vmatmul.bf16.gmra.mxu2 %v3303_v39 }
 0x140   : > { %1634 = vmatmul.bf16.gmra.mxu3 %v3305_v59 }
 0x142   : > { %v1390_v7 = vpop.f32.mrf.mxu2  ;;  %v1294_v40 = vpop.f32.mrf.mxu0 }
 0x143   : > { %v1439_v16 = vpop.f32.mrf.mxu3  ;;  %v1295_v30 = vadd.f32 %v1294_v40, %v3347_v1  ;;  %v1343_v34 = vpop.f32.mrf.mxu1 }
 0x144   : > { %v3555_v18 = vadd.f32 %v1439_v16, %v1390_v7 }
 0x145   : > { %v1344_v21 = vadd.f32 %v1343_v34, %v1295_v30 }
 0x147   : > { %v2569_v44 = vpack.c.bf16 %v1344_v21, %v1342_v20 }
 0x149   : > { %2601 = vst [vmem:[%s3545_s8 + $0x8] sm:$0xff] %v2569_v44  }
 0x14a   : > { %v1392_v26 = vpop.f32.mrf.mxu2  ;;  %v1297_v45 = vpop.f32.mrf.mxu0 }
 0x14b   : > { %v1441_v27 = vpop.f32.mrf.mxu3  ;;  %v1346_v59 = vpop.f32.mrf.mxu1  ;;  %v1298_v19 = vadd.f32 %v1297_v45, %v3371_v28 }
 0x14c   : > { %v3559_v39 = vadd.f32 %v1441_v27, %v1392_v26 }
 0x14d   : > { %1492 = vmatmul.bf16.gmra.mxu0 %v3009_v51  ;;  %v1347_v57 = vadd.f32 %v1346_v59, %v1298_v19 }
 0x14e   : > { %1541 = vmatmul.bf16.gmra.mxu1 %v3011_v54 }
 0x14f   : > { %1590 = vmatmul.bf16.gmra.mxu2 %v3343_v38 }
 0x150   : > { %1639 = vmatmul.bf16.gmra.mxu3 %v3345_v61 }
 0x152   : > { %v1395_v1 = vpop.f32.mrf.mxu2  ;;  %v1299_v2 = vpop.f32.mrf.mxu0 }
 0x153   : > { %v1444_v0 = vpop.f32.mrf.mxu3  ;;  %v1300_v25 = vadd.f32 %v1299_v2, %v3387_v5  ;;  %v1348_v53 = vpop.f32.mrf.mxu1 }
 0x154   : > { %v3566_v24 = vadd.f32 %v1444_v0, %v1395_v1 }
 0x155   : > { %v1349_v60 = vadd.f32 %v1348_v53, %v1300_v25 }
 0x157   : > { %v2574_v62 = vpack.c.bf16 %v1349_v60, %v1347_v57 }
 0x159   : > { %2602 = vst [vmem:[%s3545_s8 + $0x10] sm:$0xff] %v2574_v62  }
 0x15a   : > { %v1397_v51 = vpop.f32.mrf.mxu2  ;;  %v1302_v47 = vpop.f32.mrf.mxu0 }
 0x15b   : > { %v1446_v54 = vpop.f32.mrf.mxu3  ;;  %v1351_v61 = vpop.f32.mrf.mxu1  ;;  %v1303_v28 = vadd.f32 %v1302_v47, %v3411_v32 }
 0x15c   : > { %v3570_v38 = vadd.f32 %v1446_v54, %v1397_v51 }
 0x15d   : > { %1497 = vmatmul.bf16.gmra.mxu0 %v3053_v14  ;;  %v1352_v34 = vadd.f32 %v1351_v61, %v1303_v28 }
 0x15e   : > { %1546 = vmatmul.bf16.gmra.mxu1 %v3055_v15 }
 0x15f   : > { %1595 = vmatmul.bf16.gmra.mxu2 %v3383_v56 }
 0x160   : > { %1644 = vmatmul.bf16.gmra.mxu3 %v3385_v3 }
 0x162   : > { %v1400_v5 = vpop.f32.mrf.mxu2  ;;  %v1304_v7 = vpop.f32.mrf.mxu0 }
 0x163   : > { %v1449_v63 = vpop.f32.mrf.mxu3  ;;  %v1305_v40 = vadd.f32 %v1304_v7, %v3427_v52  ;;  %v1353_v30 = vpop.f32.mrf.mxu1 }
 0x164   : > { %v3577_v16 = vadd.f32 %v1449_v63, %v1400_v5 }
 0x165   : > { %v1354_v20 = vadd.f32 %v1353_v30, %v1305_v40 }
 0x167   : > { %v2579_v21 = vpack.c.bf16 %v1354_v20, %v1352_v34 }
 0x169   : > { %2603 = vst [vmem:[%s3545_s8 + $0x18] sm:$0xff] %v2579_v21  }
 0x16a   : > { %v1402_v14 = vpop.f32.mrf.mxu2  ;;  %v1307_v44 = vpop.f32.mrf.mxu0 }
 0x16b   : > { %v1451_v15 = vpop.f32.mrf.mxu3  ;;  %v1356_v3 = vpop.f32.mrf.mxu1  ;;  %v1308_v32 = vadd.f32 %v1307_v44, %v3451_v37 }
 0x16c   : > { %v3581_v56 = vadd.f32 %v1451_v15, %v1402_v14 }
 0x16d   : > { %1502 = vmatmul.bf16.gmra.mxu0 %v3097_v42  ;;  %v1357_v1 = vadd.f32 %v1356_v3, %v1308_v32 }
 0x16e   : > { %1551 = vmatmul.bf16.gmra.mxu1 %v3099_v43 }
 0x16f   : > { %1600 = vmatmul.bf16.gmra.mxu2 %v3423_v4 }
 0x170   : > { %1649 = vmatmul.bf16.gmra.mxu3 %v3425_v50 }
 0x172   : > { %v1405_v52 = vpop.f32.mrf.mxu2  ;;  %v1309_v27 = vpop.f32.mrf.mxu0 }
 0x173   : > { %v1454_v26 = vpop.f32.mrf.mxu3  ;;  %v1310_v59 = vadd.f32 %v1309_v27, %v3467_v41  ;;  %v1358_v19 = vpop.f32.mrf.mxu1 }
 0x174   : > { %v3588_v45 = vadd.f32 %v1454_v26, %v1405_v52 }
 0x175   : > { %v1359_v0 = vadd.f32 %v1358_v19, %v1310_v59 }
 0x177   : > { %v2584_v2 = vpack.c.bf16 %v1359_v0, %v1357_v1 }
 0x179   : > { %2604 = vst [vmem:[%s3545_s8 + $0x20] sm:$0xff] %v2584_v2  }
 0x17a   : > { %v1407_v42 = vpop.f32.mrf.mxu2  ;;  %v1312_v25 = vpop.f32.mrf.mxu0 }
 0x17b   : > { %v1456_v43 = vpop.f32.mrf.mxu3  ;;  %v1361_v50 = vpop.f32.mrf.mxu1  ;;  %v1313_v37 = vadd.f32 %v1312_v25, %v3491_v49 }
 0x17c   : > { %v3592_v4 = vadd.f32 %v1456_v43, %v1407_v42 }
 0x17d   : > { %1507 = vmatmul.bf16.gmra.mxu0 %v3141_v10  ;;  %v1362_v54 = vadd.f32 %v1361_v50, %v1313_v37 }
 0x17e   : > { %1556 = vmatmul.bf16.gmra.mxu1 %v3143_v11 }
 0x17f   : > { %1605 = vmatmul.bf16.gmra.mxu2 %v3463_v13 }
 0x180   : > { %1654 = vmatmul.bf16.gmra.mxu3 %v3465_v17 }
 0x182   : > { %v1410_v41 = vpop.f32.mrf.mxu2  ;;  %v1314_v57 = vpop.f32.mrf.mxu0 }
 0x183   : > { %v1459_v53 = vpop.f32.mrf.mxu3  ;;  %v1315_v62 = vadd.f32 %v1314_v57, %v3507_v55  ;;  %v1363_v51 = vpop.f32.mrf.mxu1 }
 0x184   : > { %v3599_v60 = vadd.f32 %v1459_v53, %v1410_v41 }
 0x185   : > { %v1364_v47 = vadd.f32 %v1363_v51, %v1315_v62 }
 0x187   : > { %v2589_v61 = vpack.c.bf16 %v1364_v47, %v1362_v54 }
 0x189   : > { %2605 = vst [vmem:[%s3545_s8 + $0x28] sm:$0xff] %v2589_v61  }
 0x18a   : > { %v1412_v10 = vpop.f32.mrf.mxu2  ;;  %v1317_v28 = vpop.f32.mrf.mxu0 }
 0x18b   : > { %v1461_v11 = vpop.f32.mrf.mxu3  ;;  %v1366_v17 = vpop.f32.mrf.mxu1  ;;  %v1318_v49 = vadd.f32 %v1317_v28, %v3513_v12 }
 0x18c   : > { %v3603_v13 = vadd.f32 %v1461_v11, %v1412_v10 }
 0x18d   : > { %1512 = vmatmul.bf16.gmra.mxu0 %v3185_v46  ;;  %v1367_v34 = vadd.f32 %v1366_v17, %v1318_v49 }
 0x18e   : > { %1561 = vmatmul.bf16.gmra.mxu1 %v3187_v48 }
 0x18f   : > { %1610 = vmatmul.bf16.gmra.mxu2 %v3503_v33 }
 0x190   : > { %1659 = vmatmul.bf16.gmra.mxu3 %v3505_v9 }
 0x192   : > { %v1415_v55 = vpop.f32.mrf.mxu2  ;;  %v1319_v63 = vpop.f32.mrf.mxu0 }
 0x193   : > { %v1464_v5 = vpop.f32.mrf.mxu3  ;;  %v1320_v40 = vadd.f32 %v1319_v63, %v3523_v36  ;;  %v1368_v30 = vpop.f32.mrf.mxu1 }
 0x194   : > { %v3610_v7 = vadd.f32 %v1464_v5, %v1415_v55 }
 0x195   : > { %v1369_v20 = vadd.f32 %v1368_v30, %v1320_v40 }
 0x197   : > { %v2594_v21 = vpack.c.bf16 %v1369_v20, %v1367_v34 }
 0x199   : > { %2606 = vst [vmem:[%s3545_s8 + $0x30] sm:$0xff] %v2594_v21  }
 0x19a   : > { %v1417_v46 = vpop.f32.mrf.mxu2  ;;  %v1322_v14 = vpop.f32.mrf.mxu0 }
 0x19b   : > { %v1466_v48 = vpop.f32.mrf.mxu3  ;;  %v1371_v9 = vpop.f32.mrf.mxu1  ;;  %v1323_v12 = vadd.f32 %v1322_v14, %v3529_v6 }
 0x19c   : > { %v3614_v33 = vadd.f32 %v1466_v48, %v1417_v46 }
 0x19d   : > { %1517 = vmatmul.bf16.gmra.mxu0 %v3229_v22  ;;  %v1372_v26 = vadd.f32 %v1371_v9, %v1323_v12 }
 0x19e   : > { %1566 = vmatmul.bf16.gmra.mxu1 %v3231_v23 }
 0x19f   : > { %1615 = vmatmul.bf16.gmra.mxu2 %v3519_v31 }
 0x1a0   : > { %1664 = vmatmul.bf16.gmra.mxu3 %v3521_v8 }
 0x1a2   : > { %v1420_v36 = vpop.f32.mrf.mxu2  ;;  %v1324_v44 = vpop.f32.mrf.mxu0 }
 0x1a3   : > { %v1469_v15 = vpop.f32.mrf.mxu3  ;;  %v1325_v32 = vadd.f32 %v1324_v44, %v3531_v35  ;;  %v1373_v52 = vpop.f32.mrf.mxu1  ;;  %v3632_v35 = vld [vmem:[%s3691_s2] ss:$0 sm:$0xff] }
 0x1a4   : > { %v3621_v3 = vadd.f32 %v1469_v15, %v1420_v36 }
 0x1a5   : > { %v1374_v27 = vadd.f32 %v1373_v52, %v1325_v32 }
 0x1a7   : > { %v2599_v22 = vpack.c.bf16 %v1374_v27, %v1372_v26 }
 0x1a9   : > { %2607 = vst [vmem:[%s3545_s8 + $0x38] sm:$0xff] %v2599_v22  }
 0x1aa   : > { %v1422_v23 = vpop.f32.mrf.mxu2  ;;  %v1483_v31 = vpop.f32.mrf.mxu0 }
 0x1ab   : > { %v1471_v59 = vpop.f32.mrf.mxu3  ;;  %v1532_v8 = vpop.f32.mrf.mxu1  ;;  %v1484_v6 = vadd.f32 %v1483_v31, %v3538_v58 }
 0x1ac   : > { %v3625_v19 = vadd.f32 %v1471_v59, %v1422_v23 }
 0x1ad   : > { %v1533_v1 = vadd.f32 %v1532_v8, %v1484_v6 }
 0x1b2   : > { %v1581_v0 = vpop.f32.mrf.mxu2  ;;  %v1485_v43 = vpop.f32.mrf.mxu0 }
 0x1b3   : > { %v1582_v2 = vadd.f32 %v1581_v0, %v1533_v1  ;;  %v1630_v42 = vpop.f32.mrf.mxu3  ;;  %v1534_v25 = vpop.f32.mrf.mxu1  ;;  %v1486_v37 = vadd.f32 %v1485_v43, %v3548_v29 }
 0x1b5   : > { %v1631_v50 = vadd.f32 %v1630_v42, %v1582_v2  ;;  %v1535_v41 = vadd.f32 %v1534_v25, %v1486_v37 }
 0x1b7   : > { %v1706_v58 = vadd.f32 %v3632_v35, %v1631_v50 }
 0x1b9   : > { %1722 = vst [vmem:[%s3638_s13] sm:$0xff] %v1706_v58 }
 0x1ba   : > { %v1583_v53 = vpop.f32.mrf.mxu2  ;;  %v1488_v51 = vpop.f32.mrf.mxu0 }
 0x1bb   : > { %v1584_v57 = vadd.f32 %v1583_v53, %v1535_v41  ;;  %v1632_v62 = vpop.f32.mrf.mxu3  ;;  %v1537_v54 = vpop.f32.mrf.mxu1  ;;  %v1489_v29 = vadd.f32 %v1488_v51, %v3555_v18 }
 0x1bd   : > { %v1633_v47 = vadd.f32 %v1632_v62, %v1584_v57  ;;  %v1538_v10 = vadd.f32 %v1537_v54, %v1489_v29 }
 0x1bf   : > { %v1707_v61 = vadd.f32 %v3632_v35, %v1633_v47 }
 0x1c1   : > { %1723 = vst [vmem:[%s3638_s13 + $0x8] sm:$0xff] %v1707_v61 }
 0x1c2   : > { %v1586_v11 = vpop.f32.mrf.mxu2  ;;  %v1490_v49 = vpop.f32.mrf.mxu0 }
 0x1c3   : > { %v1587_v28 = vadd.f32 %v1586_v11, %v1538_v10  ;;  %v1635_v17 = vpop.f32.mrf.mxu3  ;;  %v1539_v55 = vpop.f32.mrf.mxu1  ;;  %v1491_v63 = vadd.f32 %v1490_v49, %v3559_v39 }
 0x1c5   : > { %v1636_v5 = vadd.f32 %v1635_v17, %v1587_v28  ;;  %v1540_v30 = vadd.f32 %v1539_v55, %v1491_v63 }
 0x1c7   : > { %v1708_v40 = vadd.f32 %v3632_v35, %v1636_v5 }
 0x1c9   : > { %1724 = vst [vmem:[%s3638_s13 + $0x10] sm:$0xff] %v1708_v40 }
 0x1ca   : > { %v1588_v34 = vpop.f32.mrf.mxu2  ;;  %v1493_v21 = vpop.f32.mrf.mxu0 }
 0x1cb   : > { %v1589_v20 = vadd.f32 %v1588_v34, %v1540_v30  ;;  %v1637_v18 = vpop.f32.mrf.mxu3  ;;  %v1542_v46 = vpop.f32.mrf.mxu1  ;;  %v1494_v14 = vadd.f32 %v1493_v21, %v3566_v24 }
 0x1cd   : > { %v1638_v48 = vadd.f32 %v1637_v18, %v1589_v20  ;;  %v1543_v12 = vadd.f32 %v1542_v46, %v1494_v14 }
 0x1cf   : > { %v1709_v9 = vadd.f32 %v3632_v35, %v1638_v48 }
 0x1d1   : > { %1725 = vst [vmem:[%s3638_s13 + $0x18] sm:$0xff] %v1709_v9 }
 0x1d2   : > { %v1591_v36 = vpop.f32.mrf.mxu2  ;;  %v1495_v44 = vpop.f32.mrf.mxu0 }
 0x1d3   : > { %v1592_v15 = vadd.f32 %v1591_v36, %v1543_v12  ;;  %v1640_v39 = vpop.f32.mrf.mxu3  ;;  %v1544_v32 = vpop.f32.mrf.mxu1  ;;  %v1496_v26 = vadd.f32 %v1495_v44, %v3570_v38 }
 0x1d5   : > { %v1641_v52 = vadd.f32 %v1640_v39, %v1592_v15  ;;  %v1545_v22 = vadd.f32 %v1544_v32, %v1496_v26 }
 0x1d7   : > { %v1710_v27 = vadd.f32 %v3632_v35, %v1641_v52 }
 0x1d9   : > { %1726 = vst [vmem:[%s3638_s13 + $0x20] sm:$0xff] %v1710_v27 }
 0x1da   : > { %v1593_v23 = vpop.f32.mrf.mxu2  ;;  %v1498_v31 = vpop.f32.mrf.mxu0 }
 0x1db   : > { %v1594_v59 = vadd.f32 %v1593_v23, %v1545_v22  ;;  %v1642_v24 = vpop.f32.mrf.mxu3  ;;  %v1547_v8 = vpop.f32.mrf.mxu1  ;;  %v1499_v1 = vadd.f32 %v1498_v31, %v3577_v16 }
 0x1dd   : > { %v1643_v6 = vadd.f32 %v1642_v24, %v1594_v59  ;;  %v1548_v2 = vadd.f32 %v1547_v8, %v1499_v1 }
 0x1df   : > { %v1711_v0 = vadd.f32 %v3632_v35, %v1643_v6 }
 0x1e1   : > { %1727 = vst [vmem:[%s3638_s13 + $0x28] sm:$0xff] %v1711_v0 }
 0x1e2   : > { %v1596_v42 = vpop.f32.mrf.mxu2  ;;  %v1500_v25 = vpop.f32.mrf.mxu0 }
 0x1e3   : > { %v1597_v43 = vadd.f32 %v1596_v42, %v1548_v2  ;;  %v1645_v38 = vpop.f32.mrf.mxu3  ;;  %v1549_v50 = vpop.f32.mrf.mxu1  ;;  %v1501_v58 = vadd.f32 %v1500_v25, %v3581_v56 }
 0x1e5   : > { %v1646_v37 = vadd.f32 %v1645_v38, %v1597_v43  ;;  %v1550_v53 = vadd.f32 %v1549_v50, %v1501_v58 }
 0x1e7   : > { %v1712_v41 = vadd.f32 %v3632_v35, %v1646_v37 }
 0x1e9   : > { %1728 = vst [vmem:[%s3638_s13 + $0x30] sm:$0xff] %v1712_v41 }
 0x1ea   : > { %v1598_v57 = vpop.f32.mrf.mxu2  ;;  %v1503_v51 = vpop.f32.mrf.mxu0 }
 0x1eb   : > { %v1599_v62 = vadd.f32 %v1598_v57, %v1550_v53  ;;  %v1647_v16 = vpop.f32.mrf.mxu3  ;;  %v1552_v54 = vpop.f32.mrf.mxu1  ;;  %v1504_v29 = vadd.f32 %v1503_v51, %v3588_v45 }
 0x1ed   : > { %v1648_v47 = vadd.f32 %v1647_v16, %v1599_v62  ;;  %v1553_v10 = vadd.f32 %v1552_v54, %v1504_v29 }
 0x1ef   : > { %v1713_v61 = vadd.f32 %v3632_v35, %v1648_v47 }
 0x1f1   : > { %1729 = vst [vmem:[%s3638_s13 + $0x38] sm:$0xff] %v1713_v61 }
 0x1f2   : > { %v1601_v11 = vpop.f32.mrf.mxu2  ;;  %v1505_v17 = vpop.f32.mrf.mxu0 }
 0x1f3   : > { %v1602_v28 = vadd.f32 %v1601_v11, %v1553_v10  ;;  %v1650_v56 = vpop.f32.mrf.mxu3  ;;  %v1554_v49 = vpop.f32.mrf.mxu1  ;;  %v1506_v5 = vadd.f32 %v1505_v17, %v3592_v4 }
 0x1f5   : > { %v1651_v55 = vadd.f32 %v1650_v56, %v1602_v28  ;;  %v1555_v40 = vadd.f32 %v1554_v49, %v1506_v5 }
 0x1f7   : > { %v1714_v63 = vadd.f32 %v3632_v35, %v1651_v55 }
 0x1f9   : > { %1730 = vst [vmem:[%s3638_s13 + $0x40] sm:$0xff] %v1714_v63 }
 0x1fa   : > { %v1603_v30 = vpop.f32.mrf.mxu2  ;;  %v1508_v20 = vpop.f32.mrf.mxu0 }
 0x1fb   : > { %v1604_v34 = vadd.f32 %v1603_v30, %v1555_v40  ;;  %v1652_v45 = vpop.f32.mrf.mxu3  ;;  %v1557_v18 = vpop.f32.mrf.mxu1  ;;  %v1509_v46 = vadd.f32 %v1508_v20, %v3599_v60 }
 0x1fd   : > { %v1653_v21 = vadd.f32 %v1652_v45, %v1604_v34  ;;  %v1558_v14 = vadd.f32 %v1557_v18, %v1509_v46 }
 0x1ff   : > { %v1715_v48 = vadd.f32 %v3632_v35, %v1653_v21 }
 0x201   : > { %1731 = vst [vmem:[%s3638_s13 + $0x48] sm:$0xff] %v1715_v48 }
 0x202   : > { %v1606_v9 = vpop.f32.mrf.mxu2  ;;  %v1510_v36 = vpop.f32.mrf.mxu0 }
 0x203   : > { %v1607_v12 = vadd.f32 %v1606_v9, %v1558_v14  ;;  %v1655_v4 = vpop.f32.mrf.mxu3  ;;  %v1559_v15 = vpop.f32.mrf.mxu1  ;;  %v1511_v44 = vadd.f32 %v1510_v36, %v3603_v13 }
 0x205   : > { %v1656_v39 = vadd.f32 %v1655_v4, %v1607_v12  ;;  %v1560_v52 = vadd.f32 %v1559_v15, %v1511_v44 }
 0x207   : > { %v1716_v32 = vadd.f32 %v3632_v35, %v1656_v39 }
 0x209   : > { %1732 = vst [vmem:[%s3638_s13 + $0x50] sm:$0xff] %v1716_v32 }
 0x20a   : > { %v1608_v26 = vpop.f32.mrf.mxu2  ;;  %v1513_v22 = vpop.f32.mrf.mxu0 }
 0x20b   : > { %v1609_v27 = vadd.f32 %v1608_v26, %v1560_v52  ;;  %v1657_v60 = vpop.f32.mrf.mxu3  ;;  %v1562_v23 = vpop.f32.mrf.mxu1  ;;  %v1514_v24 = vadd.f32 %v1513_v22, %v3610_v7 }
 0x20d   : > { %v1658_v59 = vadd.f32 %v1657_v60, %v1609_v27  ;;  %v1563_v8 = vadd.f32 %v1562_v23, %v1514_v24 }
 0x20f   : > { %v1717_v31 = vadd.f32 %v3632_v35, %v1658_v59 }
 0x211   : > { %1733 = vst [vmem:[%s3638_s13 + $0x58] sm:$0xff] %v1717_v31 }
 0x212   : > { %v1611_v6 = vpop.f32.mrf.mxu2  ;;  %v1515_v0 = vpop.f32.mrf.mxu0 }
 0x213   : > { %v1612_v1 = vadd.f32 %v1611_v6, %v1563_v8  ;;  %v1660_v13 = vpop.f32.mrf.mxu3  ;;  %v1564_v2 = vpop.f32.mrf.mxu1  ;;  %v1516_v43 = vadd.f32 %v1515_v0, %v3614_v33 }
 0x215   : > { %v1661_v42 = vadd.f32 %v1660_v13, %v1612_v1  ;;  %v1565_v25 = vadd.f32 %v1564_v2, %v1516_v43 }
 0x217   : > { %v1718_v38 = vadd.f32 %v3632_v35, %v1661_v42 }
 0x219   : > { %1734 = vst [vmem:[%s3638_s13 + $0x60] sm:$0xff] %v1718_v38 }
 0x21a   : > { %v1613_v50 = vpop.f32.mrf.mxu2  ;;  %v1518_v58 = vpop.f32.mrf.mxu0 }
 0x21b   : > { %v1614_v37 = vadd.f32 %v1613_v50, %v1565_v25  ;;  %v1662_v7 = vpop.f32.mrf.mxu3  ;;  %v1519_v53 = vadd.f32 %v1518_v58, %v3621_v3  ;;  %v1567_v57 = vpop.f32.mrf.mxu1 }
 0x21d   : > { %v1663_v41 = vadd.f32 %v1662_v7, %v1614_v37  ;;  %v1568_v16 = vadd.f32 %v1567_v57, %v1519_v53 }
 0x21f   : > { %v1719_v62 = vadd.f32 %v3632_v35, %v1663_v41 }
 0x221   : > { %1735 = vst [vmem:[%s3638_s13 + $0x68] sm:$0xff] %v1719_v62 }
 0x222   : > { %v1616_v51 = vpop.f32.mrf.mxu2  ;;  %v1520_v47 = vpop.f32.mrf.mxu0 }
 0x223   : > { %v1617_v33 = vadd.f32 %v1616_v51, %v1568_v16  ;;  %v1665_v54 = vpop.f32.mrf.mxu3  ;;  %v1521_v61 = vadd.f32 %v1520_v47, %v3625_v19  ;;  %v1569_v11 = vpop.f32.mrf.mxu1 }
 0x225   : > { %v1666_v29 = vadd.f32 %v1665_v54, %v1617_v33  ;;  %v1570_v28 = vadd.f32 %v1569_v11, %v1521_v61 }
 0x227   : > { %v1720_v10 = vadd.f32 %v3632_v35, %v1666_v29 }
 0x229   : > { %1736 = vst [vmem:[%s3638_s13 + $0x70] sm:$0xff] %v1720_v10 }
 0x22a   : > { %v1618_v56 = vpop.f32.mrf.mxu2 }
 0x22b   : > { %v1619_v3 = vadd.f32 %v1618_v56, %v1570_v28  ;;  %v1667_v17 = vpop.f32.mrf.mxu3 }
 0x22d   : > { %v1668_v49 = vadd.f32 %v1667_v17, %v1619_v3 }
 0x22f   : > { %v1721_v55 = vadd.f32 %v3632_v35, %v1668_v49 }
 0x231   : > { %1737 = vst [vmem:[%s3638_s13 + $0x78] sm:$0xff] %v1721_v55 }
 0x232 PF: > { %s15_s15 = sadd.s32 1, %s2624_s15  }
 0x233   : > { %p12_p4 = scmp.ge.s32.totalorder %s15_s15, 4  }
 0x235   :  { %14 = sbr.rel (!%p12_p4) target bundleno = 1 (0x1), region = 74 }

// kernel: causal_attnet_forward.7
= control target key start
LH: loop header
LB: loop body
LE: loop exit
PB: predicated region body
PF: predicated region fallthrough
CT: control target
= control target key end

     0   :  { %s2221_s26 = smov 0   ;;  %s2877_s0 = inlined_call_operand.vmem [shape: bf16[512,128], index: 0, kind: input, shape index: {}]   ;;  %s2878_s1 = inlined_call_operand.vmem [shape: bf16[512,128], index: 1, kind: input, shape index: {}]   ;;  %s2879_s2 = inlined_call_operand.vmem [shape: bf16[128,512], index: 2, kind: input, shape index: {}]   ;;  %s2880_s3 = inlined_call_operand.vmem [shape: bf16[128,512], index: 3, kind: input, shape index: {}]   ;;  %s2881_s4 = inlined_call_operand.vmem [shape: f32[1,512], index: 4, kind: input, shape index: {}]   ;;  %s2882_s5 = inlined_call_operand.vmem [shape: f32[1,512], index: 5, kind: input, shape index: {}]   ;;  %s2883_s6 = inlined_call_operand.<no memory space> [shape: f32[1,1], index: 6, kind: input, shape index: {}]   ;;  %s2884_s7 = inlined_call_operand.vmem [shape: f32[512,1], index: 7, kind: output, shape index: {}]  }
   0x1   :  { %v12_v0 = vstv %s2883_s6 }
   0x2   :  { %13 = vst [vmem:[#allocation2] sm:$0x1] %v12_v0 }
   0x3 LB: > { %s1359_s27 = sadd.s32 4294967295, %s2044_s26   ;;  %p1363_p0 = scmp.ge.s32.totalorder %s2044_s26, 1  ;;  %s2044_s26 = sphi %s2221_s26, %s19_s26  }
   0x4   : > { %p251_p1 = scmp.lt.s32.totalorder %s2044_s26, 3 }
   0x6   : > { %p252_p2 = pnand %p1363_p0, %p251_p1 }
   0x8   : > { %255 = sbr.rel (%p252_p2) target bundleno = 456 (0x1c8), region = 48 }
   0xd   : > { %s1364_s28 = sshll.u32 %s1359_s27, 5  ;;  %v2244_v1 = vmov 0.0   ;;  %v2246_v2 = vmov 0.0   ;;  %v2248_v3 = vmov 0.0   ;;  %v2250_v4 = vmov 0.0   ;;  %s2308_s16 = smov 0  }
   0xe   : > { %p289_p3 = scmp.lt.s32.totalorder %s1364_s28, 63  ;;  %v2252_v5 = vmov 0.0   ;;  %v2254_v6 = vmov 0.0   ;;  %v2256_v7 = vmov 0.0   ;;  %v2258_v8 = vmov 0.0  }
   0xf   : > { %v2260_v9 = vmov 0.0   ;;  %v2262_v10 = vmov 0.0   ;;  %v2264_v11 = vmov 0.0   ;;  %v2266_v12 = vmov 0.0  }
  0x10   : > { %s2967_s28 = smov (!%p289_p3, %s1364_s28), 63  ;;  %v2268_v13 = vmov 0.0   ;;  %v2270_v14 = vmov 0.0   ;;  %v2272_v15 = vmov 0.0   ;;  %v2274_v16 = vmov 0.0  }
  0x11   : > { %s1365_s6 = sshll.u32 %s2967_s28, 2  ;;  %s1369_s29 = sshll.u32 %s2967_s28, 3  ;;  %v2276_v17 = vmov 0.0   ;;  %v2278_v18 = vmov 0.0   ;;  %v2280_v19 = vmov 0.0   ;;  %v2282_v20 = vmov 0.0  }
  0x12   : > { %s2232_s9 = scalar_lea.vmem %s2877_s0, %s1365_s6  ;;  %s2237_s12 = scalar_lea.vmem %s2878_s1, %s1365_s6  ;;  %v2284_v21 = vmov 0.0   ;;  %v2286_v22 = vmov 0.0   ;;  %v2288_v23 = vmov 0.0   ;;  %v2290_v24 = vmov 0.0  }
  0x13   : > { %s2242_s15 = scalar_lea.vmem %s2884_s7, %s1369_s29  ;;  %v2292_v25 = vmov 0.0   ;;  %v2294_v26 = vmov 0.0   ;;  %v2296_v27 = vmov 0.0   ;;  %v2298_v28 = vmov 0.0  }
  0x14   : > { %v2300_v29 = vmov 0.0   ;;  %v2302_v30 = vmov 0.0   ;;  %v2304_v31 = vmov 0.0   ;;  %v2306_v32 = vmov 0.0  }
  0x15 LB: >> { %s1370_s17 = sshll.u32 %s2176_s16, 7  ;;  %s2176_s16 = sphi %s2308_s16, %s2961_s16   ;;  %v2172_v32 = vphi %v2306_v32, %v2960_v32   ;;  %v2168_v31 = vphi %v2304_v31, %v2959_v31   ;;  %v2164_v30 = vphi %v2302_v30, %v2958_v30   ;;  %v2160_v29 = vphi %v2300_v29, %v2957_v29   ;;  %v2156_v28 = vphi %v2298_v28, %v2956_v28   ;;  %v2152_v27 = vphi %v2296_v27, %v2955_v27   ;;  %v2148_v26 = vphi %v2294_v26, %v2954_v26   ;;  %v2144_v25 = vphi %v2292_v25, %v2953_v25   ;;  %v2140_v24 = vphi %v2290_v24, %v2952_v24   ;;  %v2136_v23 = vphi %v2288_v23, %v2951_v23   ;;  %v2132_v22 = vphi %v2286_v22, %v2950_v22   ;;  %v2128_v21 = vphi %v2284_v21, %v2949_v21   ;;  %v2124_v20 = vphi %v2282_v20, %v2948_v20   ;;  %v2120_v19 = vphi %v2280_v19, %v2947_v19   ;;  %v2116_v18 = vphi %v2278_v18, %v2946_v18   ;;  %v2112_v17 = vphi %v2276_v17, %v2945_v17   ;;  %v2108_v16 = vphi %v2274_v16, %v2944_v16   ;;  %v2104_v15 = vphi %v2272_v15, %v2943_v15   ;;  %v2100_v14 = vphi %v2270_v14, %v2942_v14   ;;  %v2096_v13 = vphi %v2268_v13, %v2941_v13   ;;  %v2092_v12 = vphi %v2266_v12, %v2940_v12   ;;  %v2088_v11 = vphi %v2264_v11, %v2939_v11   ;;  %v2084_v10 = vphi %v2262_v10, %v2938_v10   ;;  %v2080_v9 = vphi %v2260_v9, %v2937_v9   ;;  %v2076_v8 = vphi %v2258_v8, %v2936_v8   ;;  %v2072_v7 = vphi %v2256_v7, %v2935_v7   ;;  %v2068_v6 = vphi %v2254_v6, %v2934_v6   ;;  %v2064_v5 = vphi %v2252_v5, %v2933_v5   ;;  %v2060_v4 = vphi %v2250_v4, %v2932_v4   ;;  %v2056_v3 = vphi %v2248_v3, %v2931_v3   ;;  %v2052_v2 = vphi %v2246_v2, %v2929_v2   ;;  %v2048_v1 = vphi %v2244_v1, %v2927_v1  }
  0x16   : >> { %s2410_s18 = sshra.s32 %s1370_s17, 7  ;;  %s311_s17 = sadd.s32 1, %s2176_s16  }
  0x17   : >> { %s1371_s19 = sshll.u32 %s2410_s18, 2  ;;  %s913_s22 = scalar_lea.vmem %s2881_s4, %s2410_s18 }
  0x18   : >> { %s2420_s25 = scalar_lea.vmem %s2880_s3, %s1371_s19  ;;  %s982_s6 = scalar_lea.vmem %s2882_s5, %s2410_s18 }
  0x19   : >> { %v1467_v33 = vld [vmem:[%s2420_s25 + $0xe0] sm:$0xf]  ;;  %v1614_v34 = vld [vmem:[%s2420_s25 + $0xec] sm:$0xf0]  ;;  %s2431_s8 = scalar_lea.vmem %s2879_s2, %s1371_s19  ;;  %p2672_p4 = scmp.ge.s32.totalorder %s311_s17, 4  }
  0x1a   : >> { %v1468_v35 = vor.u32 %v1614_v34, %v1467_v33  ;;  %v1563_v36 = vld [vmem:[%s2431_s8 + $0xe0] sm:$0xf]  ;;  %v1590_v37 = vld [vmem:[%s2431_s8 + $0xec] sm:$0xf0]  ;;  %s2961_s16 = smov %s311_s17  ;;  %vm1151_vm0 = vcmask (%p2672_p4), 7168  }
  0x1b   : >> { %v1564_v38 = vor.u32 %v1590_v37, %v1563_v36  ;;  %v1463_v39 = vld [vmem:[%s2420_s25 + $0xc0] sm:$0xf]  ;;  %v1613_v40 = vld [vmem:[%s2420_s25 + $0xcc] sm:$0xf0] }
  0x1c   : >> { %v1559_v41 = vld [vmem:[%s2431_s8 + $0xc0] sm:$0xf]  ;;  %591 = vmatpush.bf16.msra.mxu0 %v1468_v35  ;;  %1615 = vmatpush.bf16.msra.mxu2 %v1468_v35  ;;  %v1464_v42 = vor.u32 %v1613_v40, %v1463_v39  ;;  %v1589_v43 = vld [vmem:[%s2431_s8 + $0xcc] sm:$0xf0] }
  0x1d   : >> { %824 = vmatpush.bf16.msra.mxu1 %v1564_v38  ;;  %1623 = vmatpush.bf16.msra.mxu3 %v1564_v38  ;;  %v1560_v44 = vor.u32 %v1589_v43, %v1559_v41  ;;  %v1459_v45 = vld [vmem:[%s2420_s25 + $0xa0] sm:$0xf]  ;;  %v1612_v46 = vld [vmem:[%s2420_s25 + $0xac] sm:$0xf0] }
  0x1e   : >> { %v1555_v47 = vld [vmem:[%s2431_s8 + $0xa0] sm:$0xf]  ;;  %v1588_v48 = vld [vmem:[%s2431_s8 + $0xac] sm:$0xf0]  ;;  %v1460_v49 = vor.u32 %v1612_v46, %v1459_v45 }
  0x1f   : >> { %v1556_v50 = vor.u32 %v1588_v48, %v1555_v47  ;;  %v1455_v51 = vld [vmem:[%s2420_s25 + $0x80] sm:$0xf]  ;;  %v1611_v52 = vld [vmem:[%s2420_s25 + $0x8c] sm:$0xf0] }
  0x20   : >> { %592 = vmatpush.bf16.msra.mxu0 %v1464_v42  ;;  %1616 = vmatpush.bf16.msra.mxu2 %v1464_v42  ;;  %v1551_v53 = vld [vmem:[%s2431_s8 + $0x80] sm:$0xf]  ;;  %v1587_v54 = vld [vmem:[%s2431_s8 + $0x8c] sm:$0xf0]  ;;  %v1456_v55 = vor.u32 %v1611_v52, %v1455_v51 }
  0x21   : >> { %825 = vmatpush.bf16.msra.mxu1 %v1560_v44  ;;  %1624 = vmatpush.bf16.msra.mxu3 %v1560_v44  ;;  %v1552_v56 = vor.u32 %v1587_v54, %v1551_v53  ;;  %v1451_v57 = vld [vmem:[%s2420_s25 + $0x60] sm:$0xf]  ;;  %v1610_v58 = vld [vmem:[%s2420_s25 + $0x6c] sm:$0xf0]  ;;  %v1592_v53 = vld [vmem:[%s2237_s12 + $0x8] sm:$0xff] }
  0x22   : >> { %v1547_v59 = vld [vmem:[%s2431_s8 + $0x60] sm:$0xf]  ;;  %v1586_v60 = vld [vmem:[%s2431_s8 + $0x6c] sm:$0xf0]  ;;  %v1452_v61 = vor.u32 %v1610_v58, %v1451_v57  ;;  %v1600_v54 = vld [vmem:[%s2237_s12 + $0x48] sm:$0xff] }
  0x23   : >> { %v1548_v62 = vor.u32 %v1586_v60, %v1547_v59  ;;  %v1447_v63 = vld [vmem:[%s2420_s25 + $0x40] sm:$0xf]  ;;  %v1609_v0 = vld [vmem:[%s2420_s25 + $0x4c] sm:$0xf0] }
  0x24   : >> { %593 = vmatpush.bf16.msra.mxu0 %v1460_v49  ;;  %1617 = vmatpush.bf16.msra.mxu2 %v1460_v49  ;;  %v1543_v33 = vld [vmem:[%s2431_s8 + $0x40] sm:$0xf]  ;;  %v1585_v34 = vld [vmem:[%s2431_s8 + $0x4c] sm:$0xf0]  ;;  %v1448_v35 = vor.u32 %v1609_v0, %v1447_v63  ;;  %v1570_v63 = vld [vmem:[%s2232_s9 + $0x18] sm:$0xff] }
  0x25   : >> { %826 = vmatpush.bf16.msra.mxu1 %v1556_v50  ;;  %1625 = vmatpush.bf16.msra.mxu3 %v1556_v50  ;;  %v1544_v36 = vor.u32 %v1585_v34, %v1543_v33  ;;  %v1443_v37 = vld [vmem:[%s2420_s25 + $0x20] sm:$0xf]  ;;  %v1608_v38 = vld [vmem:[%s2420_s25 + $0x2c] sm:$0xf0]  ;;  %v1578_v0 = vld [vmem:[%s2232_s9 + $0x58] sm:$0xff] }
  0x26   : >> { %v1539_v39 = vld [vmem:[%s2431_s8 + $0x20] sm:$0xf]  ;;  %v1584_v40 = vld [vmem:[%s2431_s8 + $0x2c] sm:$0xf0]  ;;  %v1444_v41 = vor.u32 %v1608_v38, %v1443_v37  ;;  %v1596_v37 = vld [vmem:[%s2237_s12 + $0x28] sm:$0xff] }
  0x27   : >> { %v1540_v42 = vor.u32 %v1584_v40, %v1539_v39  ;;  %v1439_v43 = vld [vmem:[%s2420_s25] sm:$0xf]  ;;  %v1607_v44 = vld [vmem:[%s2420_s25 + $0xc] sm:$0xf0]  ;;  %v1604_v38 = vld [vmem:[%s2237_s12 + $0x68] sm:$0xff] }
  0x28   : >> { %594 = vmatpush.bf16.msra.mxu0 %v1456_v55  ;;  %1618 = vmatpush.bf16.msra.mxu2 %v1456_v55  ;;  %v1535_v45 = vld [vmem:[%s2431_s8] sm:$0xf]  ;;  %v1583_v46 = vld [vmem:[%s2431_s8 + $0xc] sm:$0xf0]  ;;  %v1440_v47 = vor.u32 %v1607_v44, %v1439_v43  ;;  %v1568_v55 = vld [vmem:[%s2232_s9 + $0x8] sm:$0xff] }
  0x29   : >> { %827 = vmatpush.bf16.msra.mxu1 %v1552_v56  ;;  %1626 = vmatpush.bf16.msra.mxu3 %v1552_v56  ;;  %v1536_v48 = vor.u32 %v1583_v46, %v1535_v45  ;;  %v1591_v49 = vld [vmem:[%s2237_s12] sm:$0xff]  ;;  %v1576_v56 = vld [vmem:[%s2232_s9 + $0x48] sm:$0xff]  ;;  %v1593_v57 = vld [vmem:[%s2237_s12 + $0x10] sm:$0xff] }
  0x2a   : >> { %v1599_v50 = vld [vmem:[%s2237_s12 + $0x40] sm:$0xff]  ;;  %v1601_v58 = vld [vmem:[%s2237_s12 + $0x50] sm:$0xff]  ;;  %v1572_v39 = vld [vmem:[%s2232_s9 + $0x28] sm:$0xff] }
  0x2b   : >> { %v1567_v51 = vld [vmem:[%s2232_s9] sm:$0xff]  ;;  %v1569_v59 = vld [vmem:[%s2232_s9 + $0x10] sm:$0xff]  ;;  %v1580_v40 = vld [vmem:[%s2232_s9 + $0x68] sm:$0xff] }
  0x2c   : >> { %595 = vmatpush.bf16.msra.mxu0 %v1452_v61  ;;  %1619 = vmatpush.bf16.msra.mxu2 %v1452_v61  ;;  %v1575_v52 = vld [vmem:[%s2232_s9 + $0x40] sm:$0xff]  ;;  %v1577_v60 = vld [vmem:[%s2232_s9 + $0x50] sm:$0xff]  ;;  %v1594_v61 = vld [vmem:[%s2237_s12 + $0x18] sm:$0xff] }
  0x2d   : >> { %828 = vmatpush.bf16.msra.mxu1 %v1548_v62  ;;  %1627 = vmatpush.bf16.msra.mxu3 %v1548_v62  ;;  %v1602_v62 = vld [vmem:[%s2237_s12 + $0x58] sm:$0xff]  ;;  %v1595_v33 = vld [vmem:[%s2237_s12 + $0x20] sm:$0xff]  ;;  %v1573_v43 = vld [vmem:[%s2232_s9 + $0x30] sm:$0xff] }
  0x2e   : >> { %v1603_v34 = vld [vmem:[%s2237_s12 + $0x60] sm:$0xff]  ;;  %v1581_v44 = vld [vmem:[%s2232_s9 + $0x70] sm:$0xff]  ;;  %v1598_v45 = vld [vmem:[%s2237_s12 + $0x38] sm:$0xff] }
  0x2f   : >> { %v1606_v46 = vld [vmem:[%s2237_s12 + $0x78] sm:$0xff] }
  0x30   : >> { %596 = vmatpush.bf16.msra.mxu0 %v1448_v35  ;;  %1620 = vmatpush.bf16.msra.mxu2 %v1448_v35  ;;  %v1571_v35 = vld [vmem:[%s2232_s9 + $0x20] sm:$0xff] }
  0x31   : >> { %829 = vmatpush.bf16.msra.mxu1 %v1544_v36  ;;  %1628 = vmatpush.bf16.msra.mxu3 %v1544_v36  ;;  %v1579_v36 = vld [vmem:[%s2232_s9 + $0x60] sm:$0xff] }
  0x34   : >> { %597 = vmatpush.bf16.msra.mxu0 %v1444_v41  ;;  %1621 = vmatpush.bf16.msra.mxu2 %v1444_v41  ;;  %v1597_v41 = vld [vmem:[%s2237_s12 + $0x30] sm:$0xff] }
  0x35   : >> { %830 = vmatpush.bf16.msra.mxu1 %v1540_v42  ;;  %1629 = vmatpush.bf16.msra.mxu3 %v1540_v42  ;;  %v1605_v42 = vld [vmem:[%s2237_s12 + $0x70] sm:$0xff] }
  0x38   : >> { %598 = vmatpush.bf16.msra.mxu0 %v1440_v47  ;;  %1622 = vmatpush.bf16.msra.mxu2 %v1440_v47  ;;  %v1574_v47 = vld [vmem:[%s2232_s9 + $0x38] sm:$0xff] }
  0x39   : >> { %831 = vmatpush.bf16.msra.mxu1 %v1536_v48  ;;  %1630 = vmatpush.bf16.msra.mxu3 %v1536_v48  ;;  %v1582_v48 = vld [vmem:[%s2232_s9 + $0x78] sm:$0xff] }
  0x3b   : >> { %599 = vmatmul.bf16.vlgmr.msra.gmra.mxu0 %v1591_v49  ;;  %639 = vmatmul.bf16.vlgmr.msra.gmra.mxu2 %v1599_v50  ;;  %v2500_v49 = vld [vmem:[%s913_s22] ss:$0 sm:$0xff] }
  0x3c   : >> { %832 = vmatmul.bf16.vlgmr.msra.gmra.mxu1 %v1567_v51  ;;  %872 = vmatmul.bf16.vlgmr.msra.gmra.mxu3 %v1575_v52 }
  0x4b   : >> { %604 = vmatmul.bf16.gmra.mxu0 %v1592_v53  ;;  %644 = vmatmul.bf16.gmra.mxu2 %v1600_v54  ;;  %v2507_v53 = vld [vmem:[%s982_s6] ss:$0 sm:$0xff] }
  0x4c   : >> { %837 = vmatmul.bf16.gmra.mxu1 %v1568_v55  ;;  %877 = vmatmul.bf16.gmra.mxu3 %v1576_v56 }
  0x5b   : >> { %609 = vmatmul.bf16.gmra.mxu0 %v1593_v57  ;;  %649 = vmatmul.bf16.gmra.mxu2 %v1601_v58 }
  0x5c   : >> { %842 = vmatmul.bf16.gmra.mxu1 %v1569_v59  ;;  %882 = vmatmul.bf16.gmra.mxu3 %v1577_v60 }
  0x6b   : >> { %614 = vmatmul.bf16.gmra.mxu0 %v1594_v61  ;;  %654 = vmatmul.bf16.gmra.mxu2 %v1602_v62 }
  0x6c   : >> { %847 = vmatmul.bf16.gmra.mxu1 %v1570_v63  ;;  %887 = vmatmul.bf16.gmra.mxu3 %v1578_v0 }
  0x7b   : >> { %619 = vmatmul.bf16.gmra.mxu0 %v1595_v33  ;;  %659 = vmatmul.bf16.gmra.mxu2 %v1603_v34 }
  0x7c   : >> { %852 = vmatmul.bf16.gmra.mxu1 %v1571_v35  ;;  %892 = vmatmul.bf16.gmra.mxu3 %v1579_v36 }
  0x8b   : >> { %624 = vmatmul.bf16.gmra.mxu0 %v1596_v37  ;;  %664 = vmatmul.bf16.gmra.mxu2 %v1604_v38 }
  0x8c   : >> { %857 = vmatmul.bf16.gmra.mxu1 %v1572_v39  ;;  %897 = vmatmul.bf16.gmra.mxu3 %v1580_v40 }
  0x9b   : >> { %629 = vmatmul.bf16.gmra.mxu0 %v1597_v41  ;;  %669 = vmatmul.bf16.gmra.mxu2 %v1605_v42 }
  0x9c   : >> { %862 = vmatmul.bf16.gmra.mxu1 %v1573_v43  ;;  %902 = vmatmul.bf16.gmra.mxu3 %v1581_v44 }
  0xab   : >> { %634 = vmatmul.bf16.gmra.mxu0 %v1598_v45  ;;  %674 = vmatmul.bf16.gmra.mxu2 %v1606_v46 }
  0xac   : >> { %867 = vmatmul.bf16.gmra.mxu1 %v1574_v47  ;;  %907 = vmatmul.bf16.gmra.mxu3 %v1582_v48 }
  0xb8   : >> { %v600_v50 = vpop.f32.mrf.mxu0 }
  0xb9   : >> { %v833_v51 = vpop.f32.mrf.mxu1 }
  0xba   : >> { %v834_v52 = vadd.f32 %v833_v51, %v600_v50 }
  0xbc   : >> { %v918_v54 = vadd.f32 %v2500_v49, %v834_v52 }
  0xbe   : >> { %v640_v55 = vpop.f32.mrf.mxu2  ;;  %v950_v56 = vmax.f32 %v918_v54, 0.0 }
  0xbf   : >> { %v873_v57 = vpop.f32.mrf.mxu3 }
  0xc0   : >> { %v874_v58 = vadd.f32 %v873_v57, %v640_v55  ;;  %v602_v59 = vpop.f32.mrf.mxu0  ;;  %v987_v60 = vmul.f32 %v2507_v53, %v950_v56 }
  0xc1   : >> { %v835_v61 = vpop.f32.mrf.mxu1 }
  0xc2   : >> { %v836_v62 = vadd.f32 %v835_v61, %v602_v59  ;;  %1019 = vadd.xlane.f32.xlu0 %v987_v60  ;;  %v934_v63 = vadd.f32 %v2500_v49, %v874_v58 }
  0xc4   : >> { %v919_v0 = vadd.f32 %v2500_v49, %v836_v62  ;;  %v966_v33 = vmax.f32 %v934_v63, 0.0 }
  0xc6   : >> { %v951_v34 = vmax.f32 %v919_v0, 0.0  ;;  %v642_v35 = vpop.f32.mrf.mxu2  ;;  %v1003_v36 = vmul.f32 %v2507_v53, %v966_v33 }
  0xc7   : >> { %v875_v37 = vpop.f32.mrf.mxu3 }
  0xc8   : >> { %v876_v38 = vadd.f32 %v875_v37, %v642_v35  ;;  %v605_v39 = vpop.f32.mrf.mxu0  ;;  %1051 = vadd.xlane.f32.xlu1 %v1003_v36  ;;  %v988_v40 = vmul.f32 %v2507_v53, %v951_v34 }
  0xc9   : >> { %v838_v41 = vpop.f32.mrf.mxu1 }
  0xca   : >> { %v839_v42 = vadd.f32 %v838_v41, %v605_v39  ;;  %1021 = vadd.xlane.f32.xlu0 %v988_v40  ;;  %v935_v43 = vadd.f32 %v2500_v49, %v876_v38 }
  0xcc   : >> { %v920_v44 = vadd.f32 %v2500_v49, %v839_v42  ;;  %v967_v45 = vmax.f32 %v935_v43, 0.0 }
  0xce   : >> { %v952_v46 = vmax.f32 %v920_v44, 0.0  ;;  %v645_v47 = vpop.f32.mrf.mxu2  ;;  %v1004_v48 = vmul.f32 %v2507_v53, %v967_v45 }
  0xcf   : >> { %v878_v50 = vpop.f32.mrf.mxu3 }
  0xd0   : >> { %v879_v51 = vadd.f32 %v878_v50, %v645_v47  ;;  %1053 = vadd.xlane.f32.xlu2 %v1004_v48  ;;  %v607_v52 = vpop.f32.mrf.mxu0  ;;  %v989_v54 = vmul.f32 %v2507_v53, %v952_v46 }
  0xd1   : >> { %v840_v55 = vpop.f32.mrf.mxu1 }
  0xd2   : >> { %v936_v56 = vadd.f32 %v2500_v49, %v879_v51  ;;  %v841_v57 = vadd.f32 %v840_v55, %v607_v52  ;;  %1023 = vadd.xlane.f32.xlu1 %v989_v54 }
  0xd4   : >> { %v968_v58 = vmax.f32 %v936_v56, 0.0  ;;  %v921_v59 = vadd.f32 %v2500_v49, %v841_v57 }
  0xd6   : >> { %v953_v60 = vmax.f32 %v921_v59, 0.0  ;;  %v647_v61 = vpop.f32.mrf.mxu2  ;;  %v1005_v62 = vmul.f32 %v2507_v53, %v968_v58 }
  0xd7   : >> { %v880_v63 = vpop.f32.mrf.mxu3 }
  0xd8   : >> { %v881_v0 = vadd.f32 %v880_v63, %v647_v61  ;;  %v610_v33 = vpop.f32.mrf.mxu0  ;;  %v990_v34 = vmul.f32 %v2507_v53, %v953_v60  ;;  %1055 = vadd.xlane.f32.xlu0 %v1005_v62 }
  0xd9   : >> { %v843_v35 = vpop.f32.mrf.mxu1 }
  0xda   : >> { %v937_v36 = vadd.f32 %v2500_v49, %v881_v0  ;;  %v844_v37 = vadd.f32 %v843_v35, %v610_v33  ;;  %1025 = vadd.xlane.f32.xlu1 %v990_v34 }
  0xdc   : >> { %v969_v38 = vmax.f32 %v937_v36, 0.0  ;;  %v922_v39 = vadd.f32 %v2500_v49, %v844_v37 }
  0xde   : >> { %v954_v40 = vmax.f32 %v922_v39, 0.0  ;;  %v650_v41 = vpop.f32.mrf.mxu2  ;;  %v1006_v46 = vmul.f32 %v2507_v53, %v969_v38 }
  0xdf   : >> { %v883_v42 = vpop.f32.mrf.mxu3 }
  0xe0   : >> { %v884_v43 = vadd.f32 %v883_v42, %v650_v41  ;;  %v612_v44 = vpop.f32.mrf.mxu0  ;;  %v991_v45 = vmul.f32 %v2507_v53, %v954_v40 }
  0xe1   : >> { %v845_v47 = vpop.f32.mrf.mxu1 }
  0xe2   : >> { %v938_v48 = vadd.f32 %v2500_v49, %v884_v43  ;;  %1027 = vadd.xlane.f32.xlu2 %v991_v45  ;;  %1057 = vadd.xlane.f32.xlu1 %v1006_v46  ;;  %v846_v51 = vadd.f32 %v845_v47, %v612_v44 }
  0xe4   : >> { %v970_v50 = vmax.f32 %v938_v48, 0.0  ;;  %v923_v56 = vadd.f32 %v2500_v49, %v846_v51 }
  0xe6   : >> { %v652_v52 = vpop.f32.mrf.mxu2  ;;  %v1007_v54 = vmul.f32 %v2507_v53, %v970_v50  ;;  %v955_v62 = vmax.f32 %v923_v56, 0.0 }
  0xe7   : >> { %v885_v55 = vpop.f32.mrf.mxu3 }
  0xe8   : >> { %v886_v57 = vadd.f32 %v885_v55, %v652_v52  ;;  %v615_v58 = vpop.f32.mrf.mxu0  ;;  %v992_v38 = vmul.f32 %v2507_v53, %v955_v62 }
  0xe9   : >> { %v848_v59 = vpop.f32.mrf.mxu1 }
  0xea   : >> { %v939_v60 = vadd.f32 %v2500_v49, %v886_v57  ;;  %v849_v61 = vadd.f32 %v848_v59, %v615_v58  ;;  %1059 = vadd.xlane.f32.xlu2 %v1007_v54 }
  0xec   : >> { %v971_v63 = vmax.f32 %v939_v60, 0.0  ;;  %v924_v0 = vadd.f32 %v2500_v49, %v849_v61 }
  0xee   : >> { %v655_v33 = vpop.f32.mrf.mxu2  ;;  %v1008_v34 = vmul.f32 %v2507_v53, %v971_v63  ;;  %v956_v40 = vmax.f32 %v924_v0, 0.0 }
  0xef   : >> { %v888_v35 = vpop.f32.mrf.mxu3 }
  0xf0   : >> { %v889_v36 = vadd.f32 %v888_v35, %v655_v33  ;;  %1061 = vadd.xlane.f32.xlu0 %v1008_v34  ;;  %v617_v37 = vpop.f32.mrf.mxu0  ;;  %v993_v47 = vmul.f32 %v2507_v53, %v956_v40 }
  0xf1   : >> { %v850_v39 = vpop.f32.mrf.mxu1 }
  0xf2   : >> { %v940_v41 = vadd.f32 %v2500_v49, %v889_v36  ;;  %v851_v42 = vadd.f32 %v850_v39, %v617_v37  ;;  %1029 = vadd.xlane.f32.xlu2 %v992_v38 }
  0xf4   : >> { %v972_v43 = vmax.f32 %v940_v41, 0.0  ;;  %v925_v44 = vadd.f32 %v2500_v49, %v851_v42 }
  0xf6   : >> { %v657_v45 = vpop.f32.mrf.mxu2  ;;  %v1009_v46 = vmul.f32 %v2507_v53, %v972_v43  ;;  %v957_v54 = vmax.f32 %v925_v44, 0.0 }
  0xf7   : >> { %v890_v48 = vpop.f32.mrf.mxu3 }
  0xf8   : >> { %v891_v50 = vadd.f32 %v890_v48, %v657_v45  ;;  %1063 = vadd.xlane.f32.xlu1 %v1009_v46  ;;  %1031 = vadd.xlane.f32.xlu0 %v993_v47  ;;  %v620_v51 = vpop.f32.mrf.mxu0  ;;  %v994_v61 = vmul.f32 %v2507_v53, %v957_v54 }
  0xf9   : >> { %v853_v52 = vpop.f32.mrf.mxu1 }
  0xfa   : >> { %v941_v55 = vadd.f32 %v2500_v49, %v891_v50  ;;  %v854_v56 = vadd.f32 %v853_v52, %v620_v51 }
  0xfc   : >> { %v973_v57 = vmax.f32 %v941_v55, 0.0  ;;  %v926_v58 = vadd.f32 %v2500_v49, %v854_v56 }
  0xfe   : >> { %v660_v59 = vpop.f32.mrf.mxu2  ;;  %v1010_v60 = vmul.f32 %v2507_v53, %v973_v57  ;;  %v958_v34 = vmax.f32 %v926_v58, 0.0 }
  0xff   : >> { %v893_v62 = vpop.f32.mrf.mxu3 }
 0x100   : >> { %v894_v63 = vadd.f32 %v893_v62, %v660_v59  ;;  %1065 = vadd.xlane.f32.xlu2 %v1010_v60  ;;  %1033 = vadd.xlane.f32.xlu1 %v994_v61  ;;  %v622_v0 = vpop.f32.mrf.mxu0  ;;  %v995_v40 = vmul.f32 %v2507_v53, %v958_v34 }
 0x101   : >> { %v855_v33 = vpop.f32.mrf.mxu1 }
 0x102   : >> { %v942_v35 = vadd.f32 %v2500_v49, %v894_v63  ;;  %v856_v36 = vadd.f32 %v855_v33, %v622_v0 }
 0x104   : >> { %v974_v37 = vmax.f32 %v942_v35, 0.0  ;;  %v927_v38 = vadd.f32 %v2500_v49, %v856_v36 }
 0x106   : >> { %v662_v39 = vpop.f32.mrf.mxu2  ;;  %v1011_v41 = vmul.f32 %v2507_v53, %v974_v37  ;;  %v959_v46 = vmax.f32 %v927_v38, 0.0 }
 0x107   : >> { %v895_v42 = vpop.f32.mrf.mxu3 }
 0x108   : >> { %v896_v43 = vadd.f32 %v895_v42, %v662_v39  ;;  %1035 = vadd.xlane.f32.xlu2 %v995_v40  ;;  %1067 = vadd.xlane.f32.xlu0 %v1011_v41  ;;  %v625_v44 = vpop.f32.mrf.mxu0  ;;  %v996_v55 = vmul.f32 %v2507_v53, %v959_v46 }
 0x109   : >> { %v858_v45 = vpop.f32.mrf.mxu1 }
 0x10a   : >> { %v943_v47 = vadd.f32 %v2500_v49, %v896_v43  ;;  %v859_v48 = vadd.f32 %v858_v45, %v625_v44 }
 0x10c   : >> { %v975_v50 = vmax.f32 %v943_v47, 0.0  ;;  %v928_v51 = vadd.f32 %v2500_v49, %v859_v48 }
 0x10e   : >> { %v665_v52 = vpop.f32.mrf.mxu2  ;;  %v1012_v54 = vmul.f32 %v2507_v53, %v975_v50  ;;  %v960_v60 = vmax.f32 %v928_v51, 0.0 }
 0x10f   : >> { %v898_v56 = vpop.f32.mrf.mxu3 }
 0x110   : >> { %v899_v57 = vadd.f32 %v898_v56, %v665_v52  ;;  %1069 = vadd.xlane.f32.xlu1 %v1012_v54  ;;  %1037 = vadd.xlane.f32.xlu0 %v996_v55  ;;  %v627_v58 = vpop.f32.mrf.mxu0  ;;  %v997_v35 = vmul.f32 %v2507_v53, %v960_v60 }
 0x111   : >> { %v860_v59 = vpop.f32.mrf.mxu1 }
 0x112   : >> { %v944_v61 = vadd.f32 %v2500_v49, %v899_v57  ;;  %v861_v62 = vadd.f32 %v860_v59, %v627_v58 }
 0x114   : >> { %v976_v63 = vmax.f32 %v944_v61, 0.0  ;;  %v929_v0 = vadd.f32 %v2500_v49, %v861_v62 }
 0x116   : >> { %v667_v33 = vpop.f32.mrf.mxu2  ;;  %v1013_v34 = vmul.f32 %v2507_v53, %v976_v63  ;;  %v961_v40 = vmax.f32 %v929_v0, 0.0 }
 0x117   : >> { %v900_v36 = vpop.f32.mrf.mxu3 }
 0x118   : >> { %v901_v37 = vadd.f32 %v900_v36, %v667_v33  ;;  %1071 = vadd.xlane.f32.xlu2 %v1013_v34  ;;  %1039 = vadd.xlane.f32.xlu1 %v997_v35  ;;  %v630_v38 = vpop.f32.mrf.mxu0  ;;  %v998_v46 = vmul.f32 %v2507_v53, %v961_v40 }
 0x119   : >> { %v863_v39 = vpop.f32.mrf.mxu1 }
 0x11a   : >> { %v945_v41 = vadd.f32 %v2500_v49, %v901_v37  ;;  %v864_v42 = vadd.f32 %v863_v39, %v630_v38 }
 0x11c   : >> { %v977_v43 = vmax.f32 %v945_v41, 0.0  ;;  %v930_v44 = vadd.f32 %v2500_v49, %v864_v42 }
 0x11e   : >> { %v670_v45 = vpop.f32.mrf.mxu2  ;;  %v1014_v47 = vmul.f32 %v2507_v53, %v977_v43  ;;  %v962_v54 = vmax.f32 %v930_v44, 0.0 }
 0x11f   : >> { %v903_v48 = vpop.f32.mrf.mxu3 }
 0x120   : >> { %v904_v50 = vadd.f32 %v903_v48, %v670_v45  ;;  %1041 = vadd.xlane.f32.xlu2 %v998_v46  ;;  %1073 = vadd.xlane.f32.xlu0 %v1014_v47  ;;  %v632_v51 = vpop.f32.mrf.mxu0  ;;  %v999_v61 = vmul.f32 %v2507_v53, %v962_v54 }
 0x121   : >> { %v865_v52 = vpop.f32.mrf.mxu1 }
 0x122   : >> { %v946_v55 = vadd.f32 %v2500_v49, %v904_v50  ;;  %v866_v56 = vadd.f32 %v865_v52, %v632_v51 }
 0x124   : >> { %v978_v57 = vmax.f32 %v946_v55, 0.0  ;;  %v931_v58 = vadd.f32 %v2500_v49, %v866_v56 }
 0x126   : >> { %v672_v59 = vpop.f32.mrf.mxu2  ;;  %v1015_v60 = vmul.f32 %v2507_v53, %v978_v57  ;;  %v963_v33 = vmax.f32 %v931_v58, 0.0 }
 0x127   : >> { %v905_v62 = vpop.f32.mrf.mxu3 }
 0x128   : >> { %1075 = vadd.xlane.f32.xlu1 %v1015_v60  ;;  %1043 = vadd.xlane.f32.xlu0 %v999_v61  ;;  %v635_v63 = vpop.f32.mrf.mxu0  ;;  %v906_v35 = vadd.f32 %v905_v62, %v672_v59  ;;  %v1000_v39 = vmul.f32 %v2507_v53, %v963_v33 }
 0x129   : >> { %v868_v0 = vpop.f32.mrf.mxu1 }
 0x12a   : >> { %v869_v34 = vadd.f32 %v868_v0, %v635_v63  ;;  %v947_v41 = vadd.f32 %v2500_v49, %v906_v35 }
 0x12c   : >> { %v932_v36 = vadd.f32 %v2500_v49, %v869_v34  ;;  %v979_v46 = vmax.f32 %v947_v41, 0.0 }
 0x12e   : >> { %v964_v37 = vmax.f32 %v932_v36, 0.0  ;;  %v675_v38 = vpop.f32.mrf.mxu2  ;;  %v1016_v58 = vmul.f32 %v2507_v53, %v979_v46 }
 0x12f   : >> { %v908_v40 = vpop.f32.mrf.mxu3 }
 0x130   : >> { %1045 = vadd.xlane.f32.xlu1 %v1000_v39  ;;  %v637_v42 = vpop.f32.mrf.mxu0  ;;  %v1001_v43 = vmul.f32 %v2507_v53, %v964_v37  ;;  %v909_v47 = vadd.f32 %v908_v40, %v675_v38 }
 0x131   : >> { %v870_v44 = vpop.f32.mrf.mxu1 }
 0x132   : >> { %v871_v45 = vadd.f32 %v870_v44, %v637_v42  ;;  %1047 = vadd.xlane.f32.xlu2 %v1001_v43  ;;  %v948_v56 = vadd.f32 %v2500_v49, %v909_v47 }
 0x134   : >> { %v933_v48 = vadd.f32 %v2500_v49, %v871_v45  ;;  %v980_v62 = vmax.f32 %v948_v56, 0.0 }
 0x135   : >> { %v1020_v50 = vpop.xlane.xlu0 %1019 }
 0x136   : >> { %v965_v51 = vmax.f32 %v933_v48, 0.0  ;;  %v2568_v32 = vadd.f32 %v2172_v32, %v1020_v50   ;;  %v677_v54 = vpop.f32.mrf.mxu2  ;;  %v1017_v35 = vmul.f32 %v2507_v53, %v980_v62 }
 0x137   : >> { %v910_v55 = vpop.f32.mrf.mxu3 }
 0x138   : >> { %v2889_v52 = vmov %v2568_v32  ;;  %v911_v57 = vadd.f32 %v910_v55, %v677_v54  ;;  %v1002_v59 = vmul.f32 %v2507_v53, %v965_v51 }
 0x13a   : >> { %v949_v60 = vadd.f32 %v2500_v49, %v911_v57  ;;  %1077 = vadd.xlane.f32.xlu2 %v1016_v58  ;;  %1049 = vadd.xlane.f32.xlu0 %v1002_v59 }
 0x13b   : >> { %v1052_v61 = vpop.xlane.xlu1 %1051 }
 0x13c   : >> { %v981_v63 = vmax.f32 %v949_v60, 0.0  ;;  %v2575_v16 = vadd.f32 %v2108_v16, %v1052_v61  }
 0x13d   : >> { %v1022_v32 = vpop.xlane.xlu0 %1021 }
 0x13e   : >> { %v2890_v0 = vmov %v2575_v16  ;;  %v2578_v31 = vadd.f32 %v2168_v31, %v1022_v32   ;;  %v1018_v34 = vmul.f32 %v2507_v53, %v981_v63  ;;  %v2960_v32 = vmov %v2889_v52 }
 0x13f   : > { %v1905_v32 = vld [vmem:[#allocation2] ss:$0 sm:$0xff] (%p2672_p4) }
 0x140   : >> { %v2891_v33 = vmov %v2578_v31  ;;  %1081 = vadd.xlane.f32.xlu1 %v1018_v34 }
 0x142   : >> { %1079 = vadd.xlane.f32.xlu0 %v1017_v35 }
 0x143   : >> { %v1054_v36 = vpop.xlane.xlu2 %1053 }
 0x144   : >> { %v2583_v15 = vadd.f32 %v2104_v15, %v1054_v36  }
 0x145   : >> { %v1024_v37 = vpop.xlane.xlu1 %1023 }
 0x146   : >> { %v2892_v49 = vmov %v2583_v15  ;;  %v2586_v30 = vadd.f32 %v2164_v30, %v1024_v37  }
 0x148   : >> { %v2893_v38 = vmov %v2586_v30 }
 0x14b   : >> { %v1056_v39 = vpop.xlane.xlu0 %1055 }
 0x14c   : >> { %v2589_v14 = vadd.f32 %v2100_v14, %v1056_v39  }
 0x14d   : >> { %v1026_v16 = vpop.xlane.xlu1 %1025 }
 0x14e   : >> { %v2894_v40 = vmov %v2589_v14  ;;  %v2592_v29 = vadd.f32 %v2160_v29, %v1026_v16   ;;  %v2944_v16 = vmov %v2890_v0 }
 0x150   : >> { %v2895_v41 = vmov %v2592_v29 }
 0x155   : >> { %v1028_v31 = vpop.xlane.xlu2 %1027  ;;  %v1058_v42 = vpop.xlane.xlu1 %1057 }
 0x156   : >> { %v2595_v28 = vadd.f32 %v2156_v28, %v1028_v31   ;;  %v2598_v13 = vadd.f32 %v2096_v13, %v1058_v42   ;;  %v2959_v31 = vmov %v2891_v33 }
 0x157   : > { %v1135_v31 = vadd.f32 (%p2672_p4), %v1905_v32, %v2890_v0 }
 0x158   : >> { %v2896_v53 = vmov %v2595_v28  ;;  %v2897_v43 = vmov %v2598_v13 }
 0x159   : > { %1168 = vst.msk [vmem:[%s2242_s15 + $0x80] sm:$0xff] (%p2672_p4), %vm1151_vm0, %v1135_v31 }
 0x15d   : >> { %v1060_v15 = vpop.xlane.xlu2 %1059 }
 0x15e   : >> { %v2601_v12 = vadd.f32 %v2092_v12, %v1060_v15   ;;  %v2943_v15 = vmov %v2892_v49 }
 0x15f   : > { %v1137_v15 = vadd.f32 (%p2672_p4), %v1905_v32, %v2894_v40 }
 0x160   : >> { %v2898_v44 = vmov %v2601_v12 }
 0x161   : > { %v1139_v0 = vadd.f32 (%p2672_p4), %v1905_v32, %v2898_v44  ;;  %1170 = vst.msk [vmem:[%s2242_s15 + $0x90] sm:$0xff] (%p2672_p4), %vm1151_vm0, %v1137_v15 }
 0x163   : >> { %v1062_v30 = vpop.xlane.xlu0 %1061  ;;  %1172 = vst.msk [vmem:[%s2242_s15 + $0xa0] sm:$0xff] (%p2672_p4), %vm1151_vm0, %v1139_v0 }
 0x164   : >> { %v2604_v11 = vadd.f32 %v2088_v11, %v1062_v30   ;;  %v2958_v30 = vmov %v2893_v38 }
 0x165   : >> { %v1030_v14 = vpop.xlane.xlu2 %1029  ;;  %v1138_v30 = vadd.f32 (%p2672_p4), %v1905_v32, %v2897_v43 }
 0x166   : >> { %v2899_v45 = vmov %v2604_v11  ;;  %v2607_v27 = vadd.f32 %v2152_v27, %v1030_v14   ;;  %v2942_v14 = vmov %v2894_v40 }
 0x167   : > { %1171 = vst.msk [vmem:[%s2242_s15 + $0x98] sm:$0xff] (%p2672_p4), %vm1151_vm0, %v1138_v30 }
 0x168   : >> { %v2900_v46 = vmov %v2607_v27 }
 0x16b   : >> { %v1064_v29 = vpop.xlane.xlu1 %1063  ;;  %v1032_v47 = vpop.xlane.xlu0 %1031 }
 0x16c   : >> { %v2610_v10 = vadd.f32 %v2084_v10, %v1064_v29   ;;  %v2613_v26 = vadd.f32 %v2148_v26, %v1032_v47   ;;  %v2957_v29 = vmov %v2895_v41 }
 0x16e   : >> { %v2901_v48 = vmov %v2610_v10  ;;  %v2902_v50 = vmov %v2613_v26 }
 0x16f   : > { %v1141_v40 = vadd.f32 (%p2672_p4), %v1905_v32, %v2901_v48 }
 0x171   : > { %1174 = vst.msk [vmem:[%s2242_s15 + $0xb0] sm:$0xff] (%p2672_p4), %vm1151_vm0, %v1141_v40 }
 0x173   : >> { %v1066_v13 = vpop.xlane.xlu2 %1065  ;;  %v1034_v28 = vpop.xlane.xlu1 %1033 }
 0x174   : >> { %v2616_v9 = vadd.f32 %v2080_v9, %v1066_v13   ;;  %v2619_v25 = vadd.f32 %v2144_v25, %v1034_v28   ;;  %v2941_v13 = vmov %v2897_v43  ;;  %v2956_v28 = vmov %v2896_v53 }
 0x176   : >> { %v2903_v51 = vmov %v2616_v9  ;;  %v2904_v54 = vmov %v2619_v25 }
 0x177   : > { %v1142_v43 = vadd.f32 (%p2672_p4), %v1905_v32, %v2903_v51 }
 0x179   : > { %1175 = vst.msk [vmem:[%s2242_s15 + $0xb8] sm:$0xff] (%p2672_p4), %vm1151_vm0, %v1142_v43 }
 0x17b   : >> { %v1036_v11 = vpop.xlane.xlu2 %1035  ;;  %v1068_v12 = vpop.xlane.xlu0 %1067 }
 0x17c   : >> { %v2622_v24 = vadd.f32 %v2140_v24, %v1036_v11   ;;  %v2625_v8 = vadd.f32 %v2076_v8, %v1068_v12   ;;  %v2939_v11 = vmov %v2899_v45  ;;  %v2940_v12 = vmov %v2898_v44 }
 0x17e   : >> { %v2905_v55 = vmov %v2622_v24  ;;  %v2906_v56 = vmov %v2625_v8 }
 0x17f   : > { %v1143_v44 = vadd.f32 (%p2672_p4), %v1905_v32, %v2906_v56 }
 0x181   : > { %1176 = vst.msk [vmem:[%s2242_s15 + $0xc0] sm:$0xff] (%p2672_p4), %vm1151_vm0, %v1143_v44 }
 0x183   : >> { %v1070_v10 = vpop.xlane.xlu1 %1069  ;;  %v1038_v27 = vpop.xlane.xlu0 %1037 }
 0x184   : >> { %v2628_v7 = vadd.f32 %v2072_v7, %v1070_v10   ;;  %v2631_v23 = vadd.f32 %v2136_v23, %v1038_v27   ;;  %v2938_v10 = vmov %v2901_v48  ;;  %v2955_v27 = vmov %v2900_v46 }
 0x186   : >> { %v2907_v57 = vmov %v2628_v7  ;;  %v2908_v58 = vmov %v2631_v23 }
 0x18b   : >> { %v1072_v9 = vpop.xlane.xlu2 %1071  ;;  %v1040_v26 = vpop.xlane.xlu1 %1039 }
 0x18c   : >> { %v2634_v6 = vadd.f32 %v2068_v6, %v1072_v9   ;;  %v2637_v22 = vadd.f32 %v2132_v22, %v1040_v26   ;;  %v2937_v9 = vmov %v2903_v51  ;;  %v2954_v26 = vmov %v2902_v50 }
 0x18e   : >> { %v2909_v59 = vmov %v2634_v6  ;;  %v2910_v60 = vmov %v2637_v22 }
 0x18f   : > { %v1145_v14 = vadd.f32 (%p2672_p4), %v1905_v32, %v2909_v59 }
 0x191   : > { %1178 = vst.msk [vmem:[%s2242_s15 + $0xd0] sm:$0xff] (%p2672_p4), %vm1151_vm0, %v1145_v14 }
 0x193   : >> { %v1042_v24 = vpop.xlane.xlu2 %1041  ;;  %v1074_v25 = vpop.xlane.xlu0 %1073 }
 0x194   : >> { %v2640_v21 = vadd.f32 %v2128_v21, %v1042_v24   ;;  %v2643_v5 = vadd.f32 %v2064_v5, %v1074_v25   ;;  %v2952_v24 = vmov %v2905_v55  ;;  %v2953_v25 = vmov %v2904_v54 }
 0x196   : >> { %v2911_v61 = vmov %v2640_v21  ;;  %v2912_v62 = vmov %v2643_v5 }
 0x19b   : >> { %v1076_v7 = vpop.xlane.xlu1 %1075  ;;  %v1044_v8 = vpop.xlane.xlu0 %1043 }
 0x19c   : >> { %v2646_v4 = vadd.f32 %v2060_v4, %v1076_v7   ;;  %v2649_v20 = vadd.f32 %v2124_v20, %v1044_v8   ;;  %v2935_v7 = vmov %v2907_v57  ;;  %v2936_v8 = vmov %v2906_v56 }
 0x19e   : >> { %2913 = vst [vmem:[#allocation3_spill] sm:$0xff] %v2646_v4  ;;  %v2914_v63 = vmov %v2646_v4  ;;  %v2915_v34 = vmov %v2649_v20 }
 0x19f   : >> { %v2948_v20 = vmov %v2915_v34 }
 0x1a0   : > { %v1129_v20 = vadd.f32 (%p2672_p4), %v1905_v32, %v2910_v60 }
 0x1a2   : > { %1162 = vst.msk [vmem:[%s2242_s15 + $0x50] sm:$0xff] (%p2672_p4), %vm1151_vm0, %v1129_v20 }
 0x1a3   : >> { %v1046_v6 = vpop.xlane.xlu1 %1045 }
 0x1a4   : >> { %v2652_v19 = vadd.f32 %v2120_v19, %v1046_v6   ;;  %v2934_v6 = vmov %v2909_v59 }
 0x1a5   : >> { %v1048_v22 = vpop.xlane.xlu2 %1047  ;;  %v2962_v29 = vld [vmem:[#allocation3_spill] sm:$0xff] (%p2672_p4) }
 0x1a6   : >> { %v2916_v35 = vmov %v2652_v19  ;;  %v2655_v18 = vadd.f32 %v2116_v18, %v1048_v22   ;;  %v2950_v22 = vmov %v2910_v60  ;;  %v1147_v48 = vadd.f32 (%p2672_p4), %v1905_v32, %v2962_v29 }
 0x1a7   : >> { %v2947_v19 = vmov %v2916_v35 }
 0x1a8   : >> { %v2917_v36 = vmov %v2655_v18  ;;  %v1128_v19 = vadd.f32 (%p2672_p4), %v1905_v32, %v2908_v58  ;;  %1180 = vst.msk [vmem:[%s2242_s15 + $0xe0] sm:$0xff] (%p2672_p4), %vm1151_vm0, %v1147_v48 }
 0x1a9   : >> { %v2946_v18 = vmov %v2917_v36  ;;  %v1133_v16 = vadd.f32 (%p2672_p4), %v1905_v32, %v2917_v36 }
 0x1aa   : > { %v1127_v18 = vadd.f32 (%p2672_p4), %v1905_v32, %v2905_v55  ;;  %1161 = vst.msk [vmem:[%s2242_s15 + $0x48] sm:$0xff] (%p2672_p4), %vm1151_vm0, %v1128_v19 }
 0x1ab   : > { %1166 = vst.msk [vmem:[%s2242_s15 + $0x70] sm:$0xff] (%p2672_p4), %vm1151_vm0, %v1133_v16 }
 0x1ac   : > { %1160 = vst.msk [vmem:[%s2242_s15 + $0x40] sm:$0xff] (%p2672_p4), %vm1151_vm0, %v1127_v18 }
 0x1ad   : >> { %v1078_v21 = vpop.xlane.xlu2 %1077  ;;  %v1050_v23 = vpop.xlane.xlu0 %1049 }
 0x1ae   : >> { %v2658_v3 = vadd.f32 %v2056_v3, %v1078_v21   ;;  %v2661_v17 = vadd.f32 %v2112_v17, %v1050_v23   ;;  %v2949_v21 = vmov %v2911_v61  ;;  %v2951_v23 = vmov %v2908_v58 }
 0x1b0   : >> { %2918 = vst [vmem:[#allocation4_spill] sm:$0xff] %v2658_v3  ;;  %v2920_v39 = vmov %v2661_v17  ;;  %v2930_v37 = vmov %v2658_v3 }
 0x1b1   : >> { %v2931_v3 = vmov %v2930_v37  ;;  %v2945_v17 = vmov %v2920_v39  ;;  %v1121_v37 = vadd.f32 (%p2672_p4), %v1905_v32, %v2893_v38  ;;  %v1132_v38 = vadd.f32 (%p2672_p4), %v1905_v32, %v2916_v35 }
 0x1b2   : > { %v1125_v3 = vadd.f32 (%p2672_p4), %v1905_v32, %v2902_v50  ;;  %v1126_v17 = vadd.f32 (%p2672_p4), %v1905_v32, %v2904_v54 }
 0x1b3   : >> { %v1082_v4 = vpop.xlane.xlu1 %1081  ;;  %1154 = vst.msk [vmem:[%s2242_s15 + $0x10] sm:$0xff] (%p2672_p4), %vm1151_vm0, %v1121_v37 }
 0x1b4   : >> { %v2664_v1 = vadd.f32 %v2048_v1, %v1082_v4   ;;  %v2932_v4 = vmov %v2914_v63  ;;  %v1122_v63 = vadd.f32 (%p2672_p4), %v1905_v32, %v2895_v41  ;;  %1158 = vst.msk [vmem:[%s2242_s15 + $0x30] sm:$0xff] (%p2672_p4), %vm1151_vm0, %v1125_v3  ;;  %v1134_v41 = vadd.f32 (%p2672_p4), %v1905_v32, %v2920_v39 }
 0x1b5   : >> { %v1080_v5 = vpop.xlane.xlu0 %1079  ;;  %310 = sbr.rel (!%p2672_p4) target bundleno = 21 (0x15), region = 92  ;;  %1159 = vst.msk [vmem:[%s2242_s15 + $0x38] sm:$0xff] (%p2672_p4), %vm1151_vm0, %v1126_v17 }
 0x1b6   : >> { %2921 = vst [vmem:[#allocation5_spill] sm:$0xff] %v2664_v1  ;;  %v2667_v2 = vadd.f32 %v2052_v2, %v1080_v5   ;;  %v2926_v42 = vmov %v2664_v1  ;;  %v2933_v5 = vmov %v2912_v62 }
 0x1b7   : >> { %v2927_v1 = vmov %v2926_v42  ;;  %v1119_v42 = vadd.f32 (%p2672_p4), %v1905_v32, %v2889_v52  ;;  %1155 = vst.msk [vmem:[%s2242_s15 + $0x18] sm:$0xff] (%p2672_p4), %vm1151_vm0, %v1122_v63  ;;  %v1130_v52 = vadd.f32 (%p2672_p4), %v1905_v32, %v2911_v61  ;;  %v2963_v50 = vld [vmem:[#allocation4_spill] sm:$0xff] (%p2672_p4) }
 0x1b8   : >> { %2923 = vst [vmem:[#allocation6_spill] sm:$0xff] %v2667_v2  ;;  %v2928_v47 = vmov %v2667_v2  ;;  %v1123_v1 = vadd.f32 (%p2672_p4), %v1905_v32, %v2896_v53  ;;  %v1136_v53 = vadd.f32 (%p2672_p4), %v1905_v32, %v2892_v49  ;;  %v1140_v49 = vadd.f32 (%p2672_p4), %v1905_v32, %v2899_v45 }
 0x1b9   : >> { %v2929_v2 = vmov %v2928_v47  ;;  %v1120_v47 = vadd.f32 (%p2672_p4), %v1905_v32, %v2891_v33  ;;  %1152 = vst.msk [vmem:[%s2242_s15] sm:$0xff] (%p2672_p4), %vm1151_vm0, %v1119_v42  ;;  %v1131_v33 = vadd.f32 (%p2672_p4), %v1905_v32, %v2915_v34  ;;  %v1144_v45 = vadd.f32 (%p2672_p4), %v1905_v32, %v2907_v57 }
 0x1ba   : > { %v1124_v2 = vadd.f32 %v1905_v32, %v2900_v46  ;;  %1156 = vst.msk [vmem:[%s2242_s15 + $0x20] sm:$0xff] %vm1151_vm0, %v1123_v1  ;;  %v1146_v46 = vadd.f32 %v1905_v32, %v2912_v62  ;;  %v1148_v13 = vadd.f32 %v1905_v32, %v2963_v50 }
 0x1bb   : > { %1153 = vst.msk [vmem:[%s2242_s15 + $0x8] sm:$0xff] %vm1151_vm0, %v1120_v47 }
 0x1bc   : > { %1157 = vst.msk [vmem:[%s2242_s15 + $0x28] sm:$0xff] %vm1151_vm0, %v1124_v2 }
 0x1bd   : > { %1163 = vst.msk [vmem:[%s2242_s15 + $0x58] sm:$0xff] %vm1151_vm0, %v1130_v52  ;;  %v2965_v54 = vld [vmem:[#allocation5_spill] sm:$0xff] }
 0x1be   : > { %1164 = vst.msk [vmem:[%s2242_s15 + $0x60] sm:$0xff] %vm1151_vm0, %v1131_v33  ;;  %v1150_v11 = vadd.f32 %v1905_v32, %v2965_v54 }
 0x1bf   : > { %1165 = vst.msk [vmem:[%s2242_s15 + $0x68] sm:$0xff] %vm1151_vm0, %v1132_v38  ;;  %v2964_v28 = vld [vmem:[#allocation6_spill] sm:$0xff] }
 0x1c0   : > { %1167 = vst.msk [vmem:[%s2242_s15 + $0x78] sm:$0xff] %vm1151_vm0, %v1134_v41  ;;  %v1149_v51 = vadd.f32 %v1905_v32, %v2964_v28 }
 0x1c1   : > { %1169 = vst.msk [vmem:[%s2242_s15 + $0x88] sm:$0xff] %vm1151_vm0, %v1136_v53 }
 0x1c2   : > { %1173 = vst.msk [vmem:[%s2242_s15 + $0xa8] sm:$0xff] %vm1151_vm0, %v1140_v49 }
 0x1c3   : > { %1177 = vst.msk [vmem:[%s2242_s15 + $0xc8] sm:$0xff] %vm1151_vm0, %v1144_v45 }
 0x1c4   : > { %1179 = vst.msk [vmem:[%s2242_s15 + $0xd8] sm:$0xff] %vm1151_vm0, %v1146_v46 }
 0x1c5   : > { %1181 = vst.msk [vmem:[%s2242_s15 + $0xe8] sm:$0xff] %vm1151_vm0, %v1148_v13 }
 0x1c6   : > { %1182 = vst.msk [vmem:[%s2242_s15 + $0xf0] sm:$0xff] %vm1151_vm0, %v1149_v51 }
 0x1c7   : > { %1183 = vst.msk [vmem:[%s2242_s15 + $0xf8] sm:$0xff] %vm1151_vm0, %v1150_v11 }
 0x1c8 PF: > { %s19_s26 = sadd.s32 1, %s2044_s26  }
 0x1c9   : > { %p16_p5 = scmp.ge.s32.totalorder %s19_s26, 4  }
 0x1cb   :  { %18 = sbr.rel (!%p16_p5) target bundleno = 3 (0x3), region = 103 }

</bundles_post_ra>
